<compile_context>
chip_gen: v7x
topology: tpu7x:2x2x1
jax: 0.10.0
libtpu: 0.0.40
codegen_flags: <defaults>
</compile_context>

<pallas_src>
from dataclasses import dataclass

import numpy as np
import jax
import jax.numpy as jnp
from jax.experimental import pallas as pl
from jax.experimental.pallas import tpu as pltpu


# Tile sizes: per-step VMEM use (incl. double buffering) is well under 2 MiB,
# safe for v7x's 64 MiB VMEM and below every generation's default scoped limit,
# while edge tiles of 512 keep the per-grid-step overhead amortized.
TILE_N = 256          # nodes per output tile
TILE_E = 512          # edges (messages) per edge block
TILE_M = 128          # clusters per segment-max tile
_VMEM_LIMIT = 32 * 1024 * 1024


def _round_up(a, b):
    return ((a + b - 1) // b) * b


# ---------------------------------------------------------------------------
# Pallas kernels
# ---------------------------------------------------------------------------

def _spline_conv_kernel(ebs_ref, ebc_ref,                 # scalar prefetch (SMEM)
                        xb_ref, dst_ref, w_ref, invdeg_ref,
                        act_ref, stats_ref, acc_ref):
    """Fused SplineConv(kernel_size=2, dim=3, degree=1, aggr='mean', bias=False,
    root_weight=False) + ELU, plus per-node-tile BatchNorm partial statistics.

    grid = (node_tiles, edge_blocks).  Edges are dst-sorted on the host, so
    node tile i only touches the contiguous edge-block range
    [ebs[i], ebs[i] + ebc[i]); blocks outside it are skipped with pl.when.
    """
    i = pl.program_id(0)                  # node tile
    j = pl.program_id(1)                  # edge-block step inside the tile range
    tile_n = acc_ref.shape[0]
    tile_e = xb_ref.shape[0]

    @pl.when(j == 0)
    def _init():
        acc_ref[...] = jnp.zeros_like(acc_ref)

    @pl.when(j < ebc_ref[i])
    def _accumulate():
        # one K = 8*Cin bf16 MXU matmul covers all 8 spline basis terms
        msg = jnp.dot(xb_ref[...], w_ref[...],
                      preferred_element_type=jnp.float32)            # [TE, Cout]
        # scatter edge messages onto this node tile: local one-hot (dst match),
        # contracted on the MXU.  dst travels as f32 (exact for indices < 2^24);
        # padded edges carry dst = -1 and never match.
        node_ids = (i * tile_n
                    + jax.lax.broadcasted_iota(jnp.int32, (tile_e, tile_n), 1)
                    ).astype(jnp.float32)                            # [TE, TN]
        onehot_t = (node_ids == dst_ref[...]).astype(jnp.float32)    # [TE, TN]
        acc_ref[...] += jax.lax.dot_general(
            onehot_t, msg, (((0,), (0,)), ((), ())),
            preferred_element_type=jnp.float32)                      # [TN, Cout]

    @pl.when(j == pl.num_programs(1) - 1)
    def _finalize():
        agg = acc_ref[...] * invdeg_ref[...]                         # mean aggregation
        act = jnp.where(agg > 0, agg, jnp.exp(jnp.minimum(agg, 0.0)) - 1.0)  # ELU
        act_ref[...] = act
        # BatchNorm partial stats; padded node rows are exactly 0 (deg = 0) so
        # they contribute nothing, and the final divide uses the true N.
        s0 = jnp.sum(act, axis=0, keepdims=True)
        s1 = jnp.sum(act * act, axis=0, keepdims=True)
        stats_ref[...] = jnp.concatenate([s0, s1], axis=0)[None, :, :]


def _bn_kernel(x_ref, scale_ref, shift_ref, out_ref):
    """Training-mode BatchNorm apply (gamma=1, beta=0): x * scale + shift."""
    out_ref[...] = x_ref[...] * scale_ref[...] + shift_ref[...]


def _bn_residual_kernel(x_ref, scale_ref, shift_ref, res_ref, out_ref):
    """BatchNorm apply fused with the backbone residual add."""
    out_ref[...] = x_ref[...] * scale_ref[...] + shift_ref[...] + res_ref[...]


def _segment_max_kernel(g_ref, out_ref):
    """Max over the member axis of gathered node features.  Missing member
    slots hold a -1e30 sentinel; empty segments produce 0 (PyG scatter fill)."""
    mx = jnp.max(g_ref[...], axis=1)
    out_ref[...] = jnp.where(mx < -1e29, 0.0, mx)


# ---------------------------------------------------------------------------
# Per-stage graph metadata (built once, reused by every conv layer of a stage)
# ---------------------------------------------------------------------------

@dataclass
class GraphStage:
    num_nodes: int
    n_pad: int
    e_pad: int
    max_blocks: int
    src: jnp.ndarray        # [E_pad]    int32  dst-sorted source node of each edge
    basis: jnp.ndarray      # [E_pad, 8] f32    degree-1 B-spline basis products
    dst_f: jnp.ndarray      # [E_pad, 1] f32    destination index (-1 for padding)
    inv_deg: jnp.ndarray    # [N_pad, 1] f32    1/deg (0 for isolated/padded nodes)
    eb_start: jnp.ndarray   # [T] int32  first edge block of node tile t
    eb_count: jnp.ndarray   # [T] int32  number of edge blocks of node tile t


def build_graph_stage(edge_index, edge_attr, num_nodes):
    """Host-side preprocessing shared by all conv layers of a graph stage."""
    ei = np.asarray(edge_index).astype(np.int64).reshape(2, -1)
    ea = np.asarray(edge_attr, dtype=np.float32).reshape(-1, 3)
    e = int(ei.shape[1])

    n_pad = _round_up(max(num_nodes, 1), TILE_N)
    e_pad = _round_up(max(e, 1), TILE_E)
    num_node_tiles = n_pad // TILE_N
    num_edge_blocks = e_pad // TILE_E

    if e > 0:
        order = np.argsort(ei[1], kind="stable")
        src, dst, attr = ei[0][order], ei[1][order], ea[order]
    else:
        src = np.zeros((0,), np.int64)
        dst = np.zeros((0,), np.int64)
        attr = np.zeros((0, 3), np.float32)

    pad = e_pad - e
    src_p = np.concatenate([src, np.zeros(pad, np.int64)]).astype(np.int32)
    dst_f = np.concatenate([dst.astype(np.float32),
                            np.full(pad, -1.0, np.float32)]).reshape(-1, 1)
    attr_p = np.concatenate([attr, np.zeros((pad, 3), np.float32)], axis=0)

    # degree-1 open-spline basis over 3-D pseudo coords: 2^3 products
    basis = np.ones((e_pad, 8), np.float32)
    for k in range(8):
        for d in range(3):
            u = attr_p[:, d]
            basis[:, k] *= u if ((k >> d) & 1) else (1.0 - u)

    # per-node-tile contiguous edge-block ranges (edges are dst-sorted)
    bounds = np.arange(num_node_tiles + 1) * TILE_N
    cut = np.searchsorted(dst, bounds, side="left")
    tile_lo, tile_hi = cut[:-1], cut[1:]
    eb_start = np.minimum(tile_lo // TILE_E, num_edge_blocks - 1).astype(np.int32)
    eb_end = (tile_hi + TILE_E - 1) // TILE_E
    eb_count = np.where(tile_hi > tile_lo,
                        eb_end - tile_lo // TILE_E, 0).astype(np.int32)
    max_blocks = max(int(eb_count.max()) if eb_count.size else 1, 1)

    deg = np.bincount(dst, minlength=num_nodes)[:num_nodes].astype(np.float32)
    inv_deg = np.zeros((n_pad, 1), np.float32)
    inv_deg[:num_nodes, 0] = np.where(deg > 0, 1.0 / np.maximum(deg, 1.0), 0.0)

    return GraphStage(
        num_nodes=num_nodes, n_pad=n_pad, e_pad=e_pad, max_blocks=max_blocks,
        src=jnp.asarray(src_p), basis=jnp.asarray(basis), dst_f=jnp.asarray(dst_f),
        inv_deg=jnp.asarray(inv_deg),
        eb_start=jnp.asarray(eb_start), eb_count=jnp.asarray(eb_count))


# ---------------------------------------------------------------------------
# Layer wrappers
# ---------------------------------------------------------------------------

def spline_conv_elu_bn(x_pad, weight2d, stage, *, residual=None, eps=1e-5):
    """One backbone layer: SplineConv + ELU + training-mode BatchNorm
    (weight=1, bias=0), with an optional fused residual add after the BN.

    x_pad:    [N_pad, Cin]   f32 node features (rows >= num_nodes are inert)
    weight2d: [8*Cin, Cout]  bf16 SplineConv weight reshaped for one MXU matmul
    """
    _, cin = x_pad.shape
    cout = weight2d.shape[1]
    assert weight2d.shape[0] == 8 * cin
    num_node_tiles = stage.n_pad // TILE_N

    # Gather source features into dst-sorted edge order and fold in the 8
    # spline basis weights -> single [E_pad, 8*Cin] bf16 MXU operand.
    x_src = jnp.take(x_pad, stage.src, axis=0)                        # [E_pad, Cin]
    xb = (stage.basis[:, :, None] * x_src[:, None, :]).reshape(
        stage.e_pad, 8 * cin).astype(jnp.bfloat16)

    def edge_map(i, j, ebs, ebc):
        # clamp so skipped steps (j >= ebc[i]) still DMA a valid block
        return (ebs[i] + jnp.minimum(j, jnp.maximum(ebc[i] - 1, 0)), 0)

    flops = int(2 * stage.e_pad * 8 * cin * cout
                + 2 * num_node_tiles * stage.max_blocks * TILE_E * TILE_N * cout)
    bytes_accessed = int(xb.size * 2 + stage.dst_f.size * 4 + weight2d.size * 2
                         + stage.inv_deg.size * 4 + stage.n_pad * cout * 4)

    act, stats = pl.pallas_call(
        _spline_conv_kernel,
        out_shape=(jax.ShapeDtypeStruct((stage.n_pad, cout), jnp.float32),
                   jax.ShapeDtypeStruct((num_node_tiles, 2, cout), jnp.float32)),
        grid_spec=pltpu.PrefetchScalarGridSpec(
            num_scalar_prefetch=2,
            grid=(num_node_tiles, stage.max_blocks),
            in_specs=[
                pl.BlockSpec((TILE_E, 8 * cin), edge_map),                      # xb
                pl.BlockSpec((TILE_E, 1), edge_map),                            # dst
                pl.BlockSpec((8 * cin, cout), lambda i, j, ebs, ebc: (0, 0)),   # W
                pl.BlockSpec((TILE_N, 1), lambda i, j, ebs, ebc: (i, 0)),       # 1/deg
            ],
            out_specs=[
                pl.BlockSpec((TILE_N, cout), lambda i, j, ebs, ebc: (i, 0)),
                pl.BlockSpec((1, 2, cout), lambda i, j, ebs, ebc: (i, 0, 0)),
            ],
            scratch_shapes=[pltpu.VMEM((TILE_N, cout), jnp.float32)]),
        compiler_params=pltpu.CompilerParams(
            dimension_semantics=("parallel", "arbitrary"),
            vmem_limit_bytes=_VMEM_LIMIT),
        cost_estimate=pl.CostEstimate(flops=flops,
                                      transcendentals=int(stage.n_pad * cout),
                                      bytes_accessed=bytes_accessed),
    )(stage.eb_start, stage.eb_count, xb, stage.dst_f, weight2d, stage.inv_deg)

    # Cross-tile BatchNorm: reduce tiny per-tile partials (JAX), then a tiled
    # Pallas normalize pass (biased variance, as torch uses for normalization).
    tot = jnp.sum(stats, axis=0)                                      # [2, Cout]
    n = jnp.float32(stage.num_nodes)
    mean = tot[0] / n
    var = jnp.maximum(tot[1] / n - mean * mean, 0.0)
    inv_std = jax.lax.rsqrt(var + eps)
    scale = inv_std.reshape(1, cout)
    shift = (-mean * inv_std).reshape(1, cout)

    node_spec = pl.BlockSpec((TILE_N, cout), lambda i: (i, 0))
    vec_spec = pl.BlockSpec((1, cout), lambda i: (0, 0))
    bn_params = pltpu.CompilerParams(dimension_semantics=("parallel",),
                                     vmem_limit_bytes=_VMEM_LIMIT)
    out_shape = jax.ShapeDtypeStruct((stage.n_pad, cout), jnp.float32)

    if residual is None:
        return pl.pallas_call(
            _bn_kernel, out_shape=out_shape, grid=(num_node_tiles,),
            in_specs=[node_spec, vec_spec, vec_spec], out_specs=node_spec,
            compiler_params=bn_params,
        )(act, scale, shift)
    return pl.pallas_call(
        _bn_residual_kernel, out_shape=out_shape, grid=(num_node_tiles,),
        in_specs=[node_spec, vec_spec, vec_spec, node_spec], out_specs=node_spec,
        compiler_params=bn_params,
    )(act, scale, shift, residual)


def segment_max(x, member_idx):
    """x: [N, C] f32; member_idx: [M, S] int (numpy) with -1 padding.
    Returns [M, C] per-cluster max (empty clusters -> 0)."""
    n, c = x.shape
    member_idx = np.asarray(member_idx)
    m, s = member_idx.shape
    m_pad = _round_up(max(m, 1), TILE_M)
    idx = np.full((m_pad, s), n, np.int32)
    idx[:m] = np.where(member_idx < 0, n, member_idx)

    pad_row = jnp.full((1, c), -1e30, jnp.float32)
    x_pad = jnp.concatenate([x.astype(jnp.float32), pad_row], axis=0)
    gathered = jnp.take(x_pad, jnp.asarray(idx.reshape(-1)), axis=0
                        ).reshape(m_pad, s, c)
    # TODO(synk): the member gather could move in-kernel (pl.Element index_map +
    # scalar-prefetched member table) to avoid this extra HBM round trip.
    out = pl.pallas_call(
        _segment_max_kernel,
        out_shape=jax.ShapeDtypeStruct((m_pad, c), jnp.float32),
        grid=(m_pad // TILE_M,),
        in_specs=[pl.BlockSpec((TILE_M, s, c), lambda i: (i, 0, 0))],
        out_specs=pl.BlockSpec((TILE_M, c), lambda i: (i, 0)),
        compiler_params=pltpu.CompilerParams(
            dimension_semantics=("parallel",),
            vmem_limit_bytes=_VMEM_LIMIT),
    )(gathered)
    return out[:m]


# ---------------------------------------------------------------------------
# Graph coarsening glue (data-dependent restructuring; numpy)
# ---------------------------------------------------------------------------

def _cartesian_norm(pos, edge_index):
    """PyG Cartesian(norm=True, cat=False): normalized relative positions."""
    row, col = edge_index[0], edge_index[1]
    cart = pos[row] - pos[col]
    max_abs = max(float(np.abs(cart).max()) if cart.size else 1.0, 1e-12)
    return cart / (2.0 * max_abs) + 0.5


def _members_table(cluster, num_clusters):
    """Vectorized [num_clusters, max_members] member table (-1 padded)."""
    cluster = np.asarray(cluster, dtype=np.int64)
    counts = np.bincount(cluster, minlength=num_clusters)
    s = max(int(counts.max()) if counts.size else 1, 1)
    order = np.argsort(cluster, kind="stable")
    starts = np.zeros(num_clusters + 1, np.int64)
    starts[1:] = np.cumsum(counts)
    sorted_c = cluster[order]
    rank = np.arange(cluster.shape[0], dtype=np.int64) - starts[sorted_c]
    table = np.full((num_clusters, s), -1, np.int32)
    table[sorted_c, rank] = order.astype(np.int32)
    return table


def _voxel_cluster(pos2d, batch, voxel_size):
    vs = np.asarray(voxel_size, dtype=np.float64)
    p = pos2d - pos2d.min(axis=0, keepdims=True)
    idx = np.floor(p / vs).astype(np.int64)
    nvox = idx.max(axis=0) + 1
    return (batch.astype(np.int64) * int(nvox[0] * nvox[1])
            + idx[:, 0] + idx[:, 1] * int(nvox[0]))


def max_pooling_graph(x, pos, batch, edge_index, voxel_size):
    """aegnn MaxPooling: voxel-grid cluster, max-pool x (Pallas), avg-pool pos,
    coalesce edges, recompute Cartesian(norm=True) edge_attr."""
    # TODO(synk): voxel-grid clustering / edge coalescing is data-dependent
    # graph restructuring with no clean Pallas equivalent; done in numpy glue.
    pos_np = np.asarray(pos, dtype=np.float64)
    batch_np = np.asarray(batch)
    ei_np = np.asarray(edge_index)

    cluster_raw = _voxel_cluster(pos_np[:, :2], batch_np, voxel_size)
    uniq, cluster = np.unique(cluster_raw, return_inverse=True)
    m = int(uniq.shape[0])
    table = _members_table(cluster, m)

    x_new = segment_max(x, table)                    # Pallas hot path

    counts = np.bincount(cluster, minlength=m).astype(np.float64)[:, None]
    pos_new = np.zeros((m, pos_np.shape[1]), np.float64)
    np.add.at(pos_new, cluster, pos_np)
    pos_new = pos_new / counts
    batch_new = np.zeros((m,), np.int32)
    batch_new[cluster] = batch_np

    src_new = cluster[ei_np[0]]
    dst_new = cluster[ei_np[1]]
    keep = src_new != dst_new
    pairs = np.unique(np.stack([src_new[keep], dst_new[keep]], axis=1), axis=0)
    ei_new = pairs.T.astype(np.int32) if pairs.size else np.zeros((2, 0), np.int32)
    attr_new = _cartesian_norm(pos_new, ei_new).astype(np.float32)

    return x_new, pos_new.astype(np.float32), batch_new, ei_new, attr_new


def max_pooling_x(x, pos2d, batch, batch_size, voxel=0.25, size=16):
    """aegnn MaxPoolingX(0.25, size=16): 4x4 grid per sample, max-pool features
    to a fixed [batch_size*size, C] slab (empty voxels -> 0)."""
    pos_np = np.asarray(pos2d, dtype=np.float64)
    batch_np = np.asarray(batch)
    nvx = int(round(1.0 / voxel))
    ix = np.clip(np.floor(pos_np[:, 0] / voxel).astype(np.int64), 0, nvx - 1)
    iy = np.clip(np.floor(pos_np[:, 1] / voxel).astype(np.int64), 0, nvx - 1)
    cluster = batch_np.astype(np.int64) * size + (ix + nvx * iy)
    table = _members_table(cluster, batch_size * size)
    return segment_max(x, table)


# ---------------------------------------------------------------------------
# Backbone (more_layer=False, more_block=False, pooling_after_conv2=False)
# ---------------------------------------------------------------------------

def _pad_rows(x, n_pad):
    n, c = x.shape
    x = x.astype(jnp.float32)
    if n == n_pad:
        return x
    return jnp.concatenate([x, jnp.zeros((n_pad - n, c), jnp.float32)], axis=0)


class BackbonePallas:
    def __init__(self, key, pooling_size=(16 / 346, 12 / 260), pooling_outputs=32):
        self.pooling_size = np.array(pooling_size)
        self.pooling_outputs = pooling_outputs
        dims = [("conv1", 1, 8), ("conv2", 8, 16), ("conv2_1", 16, 16),
                ("conv3", 16, 16), ("conv4", 16, 16), ("conv5", 16, pooling_outputs),
                ("conv6", pooling_outputs, pooling_outputs),
                ("conv7", pooling_outputs, pooling_outputs)]
        self.weights = {}
        for name, cin, cout in dims:
            key, sub = jax.random.split(key)
            bound = 1.0 / np.sqrt(cin * 8)           # SplineConv: 2^3 kernel weights
            w = jax.random.uniform(sub, (8, cin, cout), jnp.float32,
                                   minval=-bound, maxval=bound)
            # reshaped once for the fused K = 8*Cin matmul, bf16 MXU operands
            self.weights[name] = w.reshape(8 * cin, cout).astype(jnp.bfloat16)
        # NOTE: self.fc (Linear(512, 2, bias=False)) exists in the PyTorch module
        # but is never applied in its forward(); we match that behavior.

    def __call__(self, x, pos, batch, edge_index, edge_attr):
        w = self.weights
        n = x.shape[0]

        # ---- stage 1: full-resolution graph (metadata built once, reused 6x)
        stage1 = build_graph_stage(edge_index, edge_attr, n)
        xp = _pad_rows(jnp.asarray(x, jnp.float32), stage1.n_pad)
        xp = spline_conv_elu_bn(xp, w["conv1"], stage1)
        xp = spline_conv_elu_bn(xp, w["conv2"], stage1)
        xp = spline_conv_elu_bn(xp, w["conv2_1"], stage1)
        x_sc = xp
        xp = spline_conv_elu_bn(xp, w["conv3"], stage1)
        xp = spline_conv_elu_bn(xp, w["conv4"], stage1, residual=x_sc)
        xp = spline_conv_elu_bn(xp, w["conv5"], stage1)

        # ---- graph coarsening (voxel max-pool)
        x1, pos1, batch1, ei1, ea1 = max_pooling_graph(
            xp[:n], pos, batch, edge_index, self.pooling_size)
        m = x1.shape[0]

        # ---- stage 2: pooled graph (metadata built once, reused 2x)
        stage2 = build_graph_stage(ei1, ea1, m)
        xq = _pad_rows(x1, stage2.n_pad)
        x_sc = xq
        xq = spline_conv_elu_bn(xq, w["conv6"], stage2)
        xq = spline_conv_elu_bn(xq, w["conv7"], stage2, residual=x_sc)

        batch_size = int(batch1.max()) + 1 if m > 0 else 1
        out = max_pooling_x(xq[:m], pos1[:, :2], batch1, batch_size)
        return out.reshape(batch_size, -1)           # [batch, pooling_outputs*16]


# ---------------------------------------------------------------------------
# Deterministic synthetic graph + run
# ---------------------------------------------------------------------------

if __name__ == "__main__":
    key = jax.random.PRNGKey(0)
    batch_size = 2
    nodes_per_sample = 100
    n = batch_size * nodes_per_sample

    key, kpos, kt, kx, kw = jax.random.split(key, 5)
    pos_xy = np.asarray(jax.random.uniform(kpos, (n, 2), jnp.float32,
                                           minval=0.0, maxval=0.999))
    t = np.asarray(jax.random.uniform(kt, (n, 1), jnp.float32))
    pos_np = np.concatenate([pos_xy, t], axis=1).astype(np.float32)   # [N, 3]
    batch_np = np.repeat(np.arange(batch_size), nodes_per_sample).astype(np.int32)

    # radius graph (r = 0.15) within each sample, both directions, no self-loops
    edge_list = []
    for b in range(batch_size):
        sl = slice(b * nodes_per_sample, (b + 1) * nodes_per_sample)
        p = pos_xy[sl]
        d2 = ((p[:, None, :] - p[None, :, :]) ** 2).sum(-1)
        src, dst = np.nonzero((d2 < 0.15 ** 2) & (d2 > 0.0))
        edge_list.append(np.stack([src, dst]) + b * nodes_per_sample)
    edge_index_np = np.concatenate(edge_list, axis=1).astype(np.int32)   # [2, E]
    edge_attr_np = _cartesian_norm(pos_np.astype(np.float64),
                                   edge_index_np).astype(np.float32)     # [E, 3]

    x_np = np.asarray(jax.random.normal(kx, (n, 1), jnp.float32))        # [N, 1]

    model = BackbonePallas(kw)
    out = model(jnp.asarray(x_np),
                pos_np,
                batch_np,
                jnp.asarray(edge_index_np),
                jnp.asarray(edge_attr_np))
    out = jax.block_until_ready(out)

    assert out.shape == (batch_size, model.pooling_outputs * 16), out.shape
    assert bool(jnp.all(jnp.isfinite(out)))
    print("KERNEL_OK")
</pallas_src>

<mosaic_0001>
module attributes {stable_mosaic.version = 11 : i64} {
  func.func @_spline_conv_kernel(%arg0: i32, %arg1: i32, %arg2: memref<1xi32, #tpu.memory_space<smem>>, %arg3: memref<1xi32, #tpu.memory_space<smem>>, %arg4: memref<512x8xbf16, #tpu.memory_space<vmem>>, %arg5: memref<512x1xf32, #tpu.memory_space<vmem>>, %arg6: memref<8x8xbf16, #tpu.memory_space<vmem>>, %arg7: memref<256x1xf32, #tpu.memory_space<vmem>>, %arg8: memref<256x8xf32, #tpu.memory_space<vmem>>, %arg9: memref<1x2x8xf32, #tpu.memory_space<vmem>>, %arg10: memref<256x8xf32, #tpu.memory_space<vmem>>) attributes {dimension_semantics = [#tpu.dimension_semantics<parallel>, #tpu.dimension_semantics<arbitrary>], iteration_bounds = array<i64: 1, 3>, scalar_prefetch = 2 : i64, scratch_operands = 1 : i64, tpu.core_type = #tpu.core_type<tc>, window_params = [{transform_indices = @transform_0, window_bounds = array<i64: 512, 8>}, {transform_indices = @transform_1, window_bounds = array<i64: 512, 1>}, {pipeline_mode = #tpu.pipeline_mode<synchronous>, transform_indices = @transform_2, window_bounds = array<i64: 8, 8>}, {transform_indices = @transform_3, window_bounds = array<i64: 256, 1>}, {transform_indices = @transform_4, window_bounds = array<i64: 256, 8>}, {transform_indices = @transform_5, window_bounds = array<i64: 1, 2, 8>}]} {
    %c0_i32 = arith.constant 0 : i32
    %0 = arith.cmpi eq, %arg1, %c0_i32 : i32
    %1 = arith.extui %0 : i1 to i32
    %c0_i32_0 = arith.constant 0 : i32
    %2 = arith.cmpi ne, %1, %c0_i32_0 : i32
    scf.if %2 {
      %cst = arith.constant 0.000000e+00 : f32
      %11 = vector.broadcast %cst : f32 to vector<256x8xf32>
      %c0 = arith.constant 0 : index
      %c0_3 = arith.constant 0 : index
      %12 = vector.load %arg10[%c0, %c0_3] : memref<256x8xf32, #tpu.memory_space<vmem>>, vector<256x8xf32>
      tpu.vector_store %arg10[%c0, %c0_3], %11 {strides = array<i32>} : memref<256x8xf32, #tpu.memory_space<vmem>>, vector<256x8xf32>,
    } else {
    }
    %3 = arith.index_cast %arg0 : i32 to index
    %4 = memref.load %arg3[%3] : memref<1xi32, #tpu.memory_space<smem>>
    %5 = arith.cmpi slt, %arg1, %4 : i32
    %6 = arith.extui %5 : i1 to i32
    %c0_i32_1 = arith.constant 0 : i32
    %7 = arith.cmpi ne, %6, %c0_i32_1 : i32
    scf.if %7 {
      %c0 = arith.constant 0 : index
      %c0_3 = arith.constant 0 : index
      %11 = vector.load %arg4[%c0, %c0_3] : memref<512x8xbf16, #tpu.memory_space<vmem>>, vector<512x8xbf16>
      %c0_4 = arith.constant 0 : index
      %c0_5 = arith.constant 0 : index
      %12 = vector.load %arg6[%c0_4, %c0_5] : memref<8x8xbf16, #tpu.memory_space<vmem>>, vector<8x8xbf16>
      %cst = arith.constant dense<0.000000e+00> : vector<512x8xf32>
      %13 = tpu.matmul %11, %12, %cst {dimension_numbers = #tpu.dot_dimension_numbers<[1], [0], [0], [1], [0, 0, 1, 1], [], []>} : vector<512x8xbf16>, vector<8x8xbf16>, vector<512x8xf32> -> vector<512x8xf32>
      %c256_i32 = arith.constant 256 : i32
      %14 = arith.muli %arg0, %c256_i32 : i32
      %15 = tpu.iota {dimensions = array<i32: 1>} : vector<512x256xi32>
      %16 = vector.broadcast %14 : i32 to vector<512x256xi32>
      %17 = arith.addi %16, %15 : vector<512x256xi32>
      %18 = arith.sitofp %17 : vector<512x256xi32> to vector<512x256xf32>
      %c0_6 = arith.constant 0 : index
      %c0_7 = arith.constant 0 : index
      %19 = vector.load %arg5[%c0_6, %c0_7] : memref<512x1xf32, #tpu.memory_space<vmem>>, vector<512x1xf32>
      %20 = vector.broadcast %19 : vector<512x1xf32> to vector<512x256xf32>
      %21 = arith.cmpf oeq, %18, %20 : vector<512x256xf32>
      %22 = arith.extui %21 : vector<512x256xi1> to vector<512x256xi32>
      %23 = arith.sitofp %22 : vector<512x256xi32> to vector<512x256xf32>
      %c0_8 = arith.constant 0 : index
      %c0_9 = arith.constant 0 : index
      %24 = vector.load %arg10[%c0_8, %c0_9] : memref<256x8xf32, #tpu.memory_space<vmem>>, vector<256x8xf32>
      %cst_10 = arith.constant dense<0.000000e+00> : vector<256x8xf32>
      %25 = tpu.matmul %23, %13, %cst_10 {dimension_numbers = #tpu.dot_dimension_numbers<[0], [0], [1], [1], [0, 1, 1, 1], [], []>} : vector<512x256xf32>, vector<512x8xf32>, vector<256x8xf32> -> vector<256x8xf32>
      %26 = arith.addf %24, %25 : vector<256x8xf32>
      %c0_11 = arith.constant 0 : index
      %c0_12 = arith.constant 0 : index
      %27 = vector.load %arg10[%c0_11, %c0_12] : memref<256x8xf32, #tpu.memory_space<vmem>>, vector<256x8xf32>
      tpu.vector_store %arg10[%c0_11, %c0_12], %26 {strides = array<i32>} : memref<256x8xf32, #tpu.memory_space<vmem>>, vector<256x8xf32>,
    } else {
    }
    %c2_i32 = arith.constant 2 : i32
    %8 = arith.cmpi eq, %arg1, %c2_i32 : i32
    %9 = arith.extui %8 : i1 to i32
    %c0_i32_2 = arith.constant 0 : i32
    %10 = arith.cmpi ne, %9, %c0_i32_2 : i32
    scf.if %10 {
      %c0 = arith.constant 0 : index
      %c0_3 = arith.constant 0 : index
      %11 = vector.load %arg10[%c0, %c0_3] : memref<256x8xf32, #tpu.memory_space<vmem>>, vector<256x8xf32>
      %c0_4 = arith.constant 0 : index
      %c0_5 = arith.constant 0 : index
      %12 = vector.load %arg7[%c0_4, %c0_5] : memref<256x1xf32, #tpu.memory_space<vmem>>, vector<256x1xf32>
      %13 = vector.broadcast %12 : vector<256x1xf32> to vector<256x8xf32>
      %14 = arith.mulf %11, %13 : vector<256x8xf32>
      %cst = arith.constant 0.000000e+00 : f32
      %15 = vector.broadcast %cst : f32 to vector<256x8xf32>
      %16 = arith.cmpf ogt, %14, %15 : vector<256x8xf32>
      %cst_6 = arith.constant 0.000000e+00 : f32
      %17 = vector.broadcast %cst_6 : f32 to vector<256x8xf32>
      %18 = arith.minimumf %14, %17 : vector<256x8xf32>
      %19 = math.exp %18 : vector<256x8xf32>
      %cst_7 = arith.constant 1.000000e+00 : f32
      %20 = vector.broadcast %cst_7 : f32 to vector<256x8xf32>
      %21 = arith.subf %19, %20 : vector<256x8xf32>
      %22 = arith.select %16, %14, %21 : vector<256x8xi1>, vector<256x8xf32>
      %c0_8 = arith.constant 0 : index
      %c0_9 = arith.constant 0 : index
      %23 = vector.load %arg8[%c0_8, %c0_9] : memref<256x8xf32, #tpu.memory_space<vmem>>, vector<256x8xf32>
      tpu.vector_store %arg8[%c0_8, %c0_9], %22 {strides = array<i32>} : memref<256x8xf32, #tpu.memory_space<vmem>>, vector<256x8xf32>,
      %cst_10 = arith.constant dense<0.000000e+00> : vector<8xf32>
      %24 = vector.multi_reduction <add>, %22, %cst_10 [0] : vector<256x8xf32> to vector<8xf32>
      %25 = vector.shape_cast %24 : vector<8xf32> to vector<1x8xf32>
      %26 = arith.mulf %22, %22 : vector<256x8xf32>
      %cst_11 = arith.constant dense<0.000000e+00> : vector<8xf32>
      %27 = vector.multi_reduction <add>, %26, %cst_11 [0] : vector<256x8xf32> to vector<8xf32>
      %28 = vector.shape_cast %27 : vector<8xf32> to vector<1x8xf32>
      %29 = tpu.concatenate %25, %28 in 0 : vector<1x8xf32>, vector<1x8xf32> -> vector<2x8xf32>
      %30 = vector.shape_cast %29 : vector<2x8xf32> to vector<1x2x8xf32>
      %c0_12 = arith.constant 0 : index
      %c0_13 = arith.constant 0 : index
      %c0_14 = arith.constant 0 : index
      %31 = vector.load %arg9[%c0_12, %c0_13, %c0_14] : memref<1x2x8xf32, #tpu.memory_space<vmem>>, vector<1x2x8xf32>
      tpu.vector_store %arg9[%c0_12, %c0_13, %c0_14], %30 {strides = array<i32>} : memref<1x2x8xf32, #tpu.memory_space<vmem>>, vector<1x2x8xf32>,
    } else {
    }
    return
  }
  func.func @transform_0(%arg0: i32, %arg1: i32, %arg2: memref<1xi32, #tpu.memory_space<smem>>, %arg3: memref<1xi32, #tpu.memory_space<smem>>) -> (i32, i32) {
    %0 = arith.index_cast %arg0 : i32 to index
    %1 = memref.load %arg2[%0] : memref<1xi32, #tpu.memory_space<smem>>
    %2 = arith.index_cast %arg0 : i32 to index
    %3 = memref.load %arg3[%2] : memref<1xi32, #tpu.memory_space<smem>>
    %c1_i32 = arith.constant 1 : i32
    %4 = arith.subi %3, %c1_i32 : i32
    %c0_i32 = arith.constant 0 : i32
    %5 = arith.maxsi %4, %c0_i32 : i32
    %6 = arith.minsi %arg1, %5 : i32
    %7 = arith.addi %1, %6 : i32
    %c0_i32_0 = arith.constant 0 : i32
    %c0_i32_1 = arith.constant 0 : i32
    return %7, %c0_i32_0 : i32, i32
  }
  func.func @transform_1(%arg0: i32, %arg1: i32, %arg2: memref<1xi32, #tpu.memory_space<smem>>, %arg3: memref<1xi32, #tpu.memory_space<smem>>) -> (i32, i32) {
    %0 = arith.index_cast %arg0 : i32 to index
    %1 = memref.load %arg2[%0] : memref<1xi32, #tpu.memory_space<smem>>
    %2 = arith.index_cast %arg0 : i32 to index
    %3 = memref.load %arg3[%2] : memref<1xi32, #tpu.memory_space<smem>>
    %c1_i32 = arith.constant 1 : i32
    %4 = arith.subi %3, %c1_i32 : i32
    %c0_i32 = arith.constant 0 : i32
    %5 = arith.maxsi %4, %c0_i32 : i32
    %6 = arith.minsi %arg1, %5 : i32
    %7 = arith.addi %1, %6 : i32
    %c0_i32_0 = arith.constant 0 : i32
    %c0_i32_1 = arith.constant 0 : i32
    return %7, %c0_i32_0 : i32, i32
  }
  func.func @transform_2(%arg0: i32, %arg1: i32, %arg2: memref<1xi32, #tpu.memory_space<smem>>, %arg3: memref<1xi32, #tpu.memory_space<smem>>) -> (i32, i32) {
    %c0_i32 = arith.constant 0 : i32
    %c0_i32_0 = arith.constant 0 : i32
    %c0_i32_1 = arith.constant 0 : i32
    return %c0_i32, %c0_i32_0 : i32, i32
  }
  func.func @transform_3(%arg0: i32, %arg1: i32, %arg2: memref<1xi32, #tpu.memory_space<smem>>, %arg3: memref<1xi32, #tpu.memory_space<smem>>) -> (i32, i32) {
    %c0_i32 = arith.constant 0 : i32
    %c0_i32_0 = arith.constant 0 : i32
    return %arg0, %c0_i32 : i32, i32
  }
  func.func @transform_4(%arg0: i32, %arg1: i32, %arg2: memref<1xi32, #tpu.memory_space<smem>>, %arg3: memref<1xi32, #tpu.memory_space<smem>>) -> (i32, i32) {
    %c0_i32 = arith.constant 0 : i32
    %c0_i32_0 = arith.constant 0 : i32
    return %arg0, %c0_i32 : i32, i32
  }
  func.func @transform_5(%arg0: i32, %arg1: i32, %arg2: memref<1xi32, #tpu.memory_space<smem>>, %arg3: memref<1xi32, #tpu.memory_space<smem>>) -> (i32, i32, i32) {
    %c0_i32 = arith.constant 0 : i32
    %c0_i32_0 = arith.constant 0 : i32
    %c0_i32_1 = arith.constant 0 : i32
    return %arg0, %c0_i32, %c0_i32_0 : i32, i32, i32
  }
}

</mosaic_0001>

<bundles_post_ra>
// kernel: tpu_custom_call.1
= control target key start
LH: loop header
LB: loop body
LE: loop exit
PB: predicated region body
PF: predicated region fallthrough
CT: control target
= control target key end

     0   :  { %s6007_s0 = inlined_call_operand.<no memory space> [shape: s32[1], index: 0, kind: input, shape index: {}]   ;;  %s6008_s1 = inlined_call_operand.<no memory space> [shape: s32[1], index: 1, kind: input, shape index: {}]   ;;  %s6009_s2 = inlined_call_operand.vmem [shape: bf16[1536,8], index: 2, kind: input, shape index: {}]   ;;  %s6010_s3 = inlined_call_operand.vmem [shape: f32[1536,1], index: 3, kind: input, shape index: {}]   ;;  %s6011_s4 = inlined_call_operand.vmem [shape: bf16[8,8], index: 4, kind: input, shape index: {}]   ;;  %s6012_s5 = inlined_call_operand.vmem [shape: f32[256,1], index: 5, kind: input, shape index: {}]   ;;  %s6013_s6 = inlined_call_operand.vmem [shape: f32[256,8], index: 6, kind: output, shape index: {0}]   ;;  %s6014_s7 = inlined_call_operand.hbm [shape: f32[1,2,8], index: 7, kind: output, shape index: {1}]  }
   0x1   :  { %13 = sst [smem:[#allocation4]] %s6007_s0 }
   0x2   :  { %14 = sst [smem:[#allocation5]] %s6008_s1 }
   0x3   :  { %15 = vsyncpa [#allocation7], 0  ;;  %s4554_s28 = smov 0   ;;  %s4556_s29 = smov 0  }
   0x4   :  { %s4558_s30 = smov 0  }
   0x5 LB: > { %s3417_s0 = sadd.s32 4294967295, %s4500_s30   ;;  %s30_s1 = sadd.s32 1, %s4496_s29  ;;  %s4500_s30 = sphi %s4558_s30, %s21_s30   ;;  %s4496_s29 = sphi %s4556_s29, %s6151_s29   ;;  %s4492_s28 = sphi %s4554_s28, %s6150_s28  }
   0x6   : > { %p31_p0 = scmp.ge.s32.totalorder %s30_s1, 3  ;;  %p3425_p1 = scmp.ge.s32.totalorder %s4500_s30, 1 }
   0x7   : > { %p294_p2 = scmp.lt.s32.totalorder %s4500_s30, 4 }
   0x8   : > { %s6153_s1 = smov (%p31_p0, %s30_s1), 0 }
   0x9   : > { %p295_p3 = pnand %p3425_p1, %p294_p2 }
   0xa   : > { %s349_s8 = sld [smem:[#allocation5]] (!%p295_p3)  ;;  %p3432_p7 = scmp.ne.s32.totalorder (!%p295_p3), %s4492_s28, 0 }
   0xb   : > { %298 = sbr.rel (%p295_p3) target bundleno = 1004 (0x3ec), region = 36  ;;  %s348_s10 = sld [smem:[#allocation4]] (!%p295_p3) }
  0x10   : > { %s3426_s9 = sadd.s32 (!%p295_p3), 4294967295, %s349_s8 }
  0x11   : > { %p351_p4 = scmp.gt.s32.totalorder (!%p295_p3), %s3426_s9, 0 }
  0x12   : > { %vm409_vm0 = vcmask (!%p3432_p7), 64512   ;;  %v4502_v0 = vmov (!%p3432_p7), 0.0  }
  0x13   : > { %s6155_s9 = smov (!%p351_p4, %s3426_s9), 0  ;;  %410 = vst.msk [vmem:[#allocation2] sm:$0xff] (!%p3432_p7), %vm409_vm0, %v4502_v0  ;;  %411 = vst.msk [vmem:[#allocation2 + $0x8] sm:$0xff] (!%p3432_p7), %vm409_vm0, %v4502_v0 }
  0x14   : > { %p353_p5 = scmp.lt.s32.totalorder %s4492_s28, %s6155_s9  ;;  %412 = vst.msk [vmem:[#allocation2 + $0x10] sm:$0xff] (!%p3432_p7), %vm409_vm0, %v4502_v0  ;;  %413 = vst.msk [vmem:[#allocation2 + $0x18] sm:$0xff] (!%p3432_p7), %vm409_vm0, %v4502_v0 }
  0x15   : > { %414 = vst.msk [vmem:[#allocation2 + $0x20] sm:$0xff] (!%p3432_p7), %vm409_vm0, %v4502_v0  ;;  %415 = vst.msk [vmem:[#allocation2 + $0x28] sm:$0xff] (!%p3432_p7), %vm409_vm0, %v4502_v0 }
  0x16   : > { %s354_s11 = scalar_select %p353_p5, %s4492_s28, %s6155_s9 }
  0x17   : > { %416 = vst.msk [vmem:[#allocation2 + $0x30] sm:$0xff] (!%p3432_p7), %vm409_vm0, %v4502_v0  ;;  %417 = vst.msk [vmem:[#allocation2 + $0x38] sm:$0xff] (!%p3432_p7), %vm409_vm0, %v4502_v0 }
  0x18   : > { %s355_s12 = sadd.s32 %s354_s11, %s348_s10  ;;  %408 = sbr.rel (%p3432_p7) target bundleno = 36 (0x24), region = 40  ;;  %418 = vst.msk [vmem:[#allocation2 + $0x40] sm:$0xff] (!%p3432_p7), %vm409_vm0, %v4502_v0  ;;  %419 = vst.msk [vmem:[#allocation2 + $0x48] sm:$0xff] (!%p3432_p7), %vm409_vm0, %v4502_v0 }
  0x19   : > { %s3427_s13 = sshll.u32 %s355_s12, 6  ;;  %420 = vst.msk [vmem:[#allocation2 + $0x50] sm:$0xff] (!%p3432_p7), %vm409_vm0, %v4502_v0  ;;  %421 = vst.msk [vmem:[#allocation2 + $0x58] sm:$0xff] (!%p3432_p7), %vm409_vm0, %v4502_v0 }
  0x1a   : > { %p357_p6 = scmp.lt.s32.totalorder %s3427_s13, 191  ;;  %422 = vst.msk [vmem:[#allocation2 + $0x60] sm:$0xff] (!%p3432_p7), %vm409_vm0, %v4502_v0  ;;  %423 = vst.msk [vmem:[#allocation2 + $0x68] sm:$0xff] (!%p3432_p7), %vm409_vm0, %v4502_v0 }
  0x1b   : > { %424 = vst.msk [vmem:[#allocation2 + $0x70] sm:$0xff] (!%p3432_p7), %vm409_vm0, %v4502_v0  ;;  %425 = vst.msk [vmem:[#allocation2 + $0x78] sm:$0xff] (!%p3432_p7), %vm409_vm0, %v4502_v0 }
  0x1c   : > { %s6157_s13 = smov (!%p357_p6, %s3427_s13), 191  ;;  %426 = vst.msk [vmem:[#allocation2 + $0x80] sm:$0xff] (!%p3432_p7), %vm409_vm0, %v4502_v0  ;;  %427 = vst.msk [vmem:[#allocation2 + $0x88] sm:$0xff] (!%p3432_p7), %vm409_vm0, %v4502_v0 }
  0x1d   : > { %s3428_s14 = sshll.u32 %s6157_s13, 2  ;;  %s3431_s15 = sshll.u32 %s6157_s13, 3  ;;  %428 = vst.msk [vmem:[#allocation2 + $0x90] sm:$0xff] (!%p3432_p7), %vm409_vm0, %v4502_v0  ;;  %429 = vst.msk [vmem:[#allocation2 + $0x98] sm:$0xff] (!%p3432_p7), %vm409_vm0, %v4502_v0 }
  0x1e   : > { %s4580_s18 = scalar_lea.vmem %s6009_s2, %s3428_s14  ;;  %s4585_s21 = scalar_lea.vmem %s6010_s3, %s3431_s15  ;;  %430 = vst.msk [vmem:[#allocation2 + $0xa0] sm:$0xff] (!%p3432_p7), %vm409_vm0, %v4502_v0  ;;  %431 = vst.msk [vmem:[#allocation2 + $0xa8] sm:$0xff] (!%p3432_p7), %vm409_vm0, %v4502_v0 }
  0x1f   : > { %432 = vst.msk [vmem:[#allocation2 + $0xb0] sm:$0xff] %vm409_vm0, %v4502_v0  ;;  %433 = vst.msk [vmem:[#allocation2 + $0xb8] sm:$0xff] %vm409_vm0, %v4502_v0 }
  0x20   : > { %434 = vst.msk [vmem:[#allocation2 + $0xc0] sm:$0xff] %vm409_vm0, %v4502_v0  ;;  %435 = vst.msk [vmem:[#allocation2 + $0xc8] sm:$0xff] %vm409_vm0, %v4502_v0 }
  0x21   : > { %436 = vst.msk [vmem:[#allocation2 + $0xd0] sm:$0xff] %vm409_vm0, %v4502_v0  ;;  %437 = vst.msk [vmem:[#allocation2 + $0xd8] sm:$0xff] %vm409_vm0, %v4502_v0 }
  0x22   : > { %438 = vst.msk [vmem:[#allocation2 + $0xe0] sm:$0xff] %vm409_vm0, %v4502_v0  ;;  %439 = vst.msk [vmem:[#allocation2 + $0xe8] sm:$0xff] %vm409_vm0, %v4502_v0 }
  0x23   : > { %440 = vst.msk [vmem:[#allocation2 + $0xf0] sm:$0xff] %vm409_vm0, %v4502_v0  ;;  %441 = vst.msk [vmem:[#allocation2 + $0xf8] sm:$0xff] %vm409_vm0, %v4502_v0 }
  0x24 PF: > { %s442_s22 = sld [smem:[#allocation5]] }
  0x2a   : > { %p3433_p8 = scmp.ge.s32.totalorder %s4492_s28, %s442_s22 }
  0x2c   : > { %446 = sbr.rel (%p3433_p8) target bundleno = 721 (0x2d1), region = 44 }
  0x33   : > { %v1073_v1 = vld [vmem:[%s4585_s21 + $0x10] sm:$0xff]  ;;  %v1071_v2 = vld [vmem:[%s4585_s21] sm:$0xff]  ;;  %v4503_v3 = vmov 0   ;;  %v1074_v4 = vld [vmem:[%s4585_s21 + $0x18] sm:$0xff]  ;;  %vm769_vm1 = vcmask 1043456   ;;  %vm6015_vm2 = vcmask 64512  }
  0x34   : > { %3901 = vset.pattern.permute.xlu1 %v4503_v3  ;;  %3900 = vset.pattern.permute.xlu0 %v4503_v3  ;;  %v1072_v5 = vld [vmem:[%s4585_s21 + $0x8] sm:$0xff]  ;;  %v1075_v7 = vld [vmem:[%s4585_s21 + $0x20] sm:$0xff]  ;;  %v1078_v14 = vld [vmem:[%s4585_s21 + $0x38] sm:$0xff] }
  0x35   : > { %1147 = vperm.xlu1 %3901, %v1073_v1   ;;  %1137 = vperm.xlu0 %3900, %v1071_v2   ;;  %v1076_v6 = vld [vmem:[%s4585_s21 + $0x28] sm:$0xff]  ;;  %v511_v8 = vld [vmem:[%s6011_s4] sm:$0xf]  ;;  %v1077_v15 = vld [vmem:[%s4585_s21 + $0x30] sm:$0xff] }
  0x36   : > { %3862 = vmatprep.subr.msk.bf16.mxu0 %vm769_vm1, %v511_v8  ;;  %3863 = vmatprep.subr.msk.bf16.mxu1 %vm769_vm1, %v511_v8  ;;  %v771_v9 = vsel %vm769_vm1, %v511_v8, 0  ;;  %v4350_v10 = vld [vmem:[%s4580_s18] sm:$0xff]   ;;  %v4352_v12 = vld [vmem:[%s4580_s18 + $0x8] sm:$0xff]   ;;  %v4354_v18 = vld [vmem:[%s4580_s18 + $0x10] sm:$0xff]  }
  0x37   : > { %3699 = vmatpush3.bf16.msra.mxu0 %v771_v9  ;;  %3861 = vmatpush3.bf16.msra.mxu1 %v771_v9  ;;  %v4351_v11 = vld [vmem:[%s4580_s18 + $0x80] sm:$0xff]   ;;  %v4353_v13 = vld [vmem:[%s4580_s18 + $0x88] sm:$0xff]   ;;  %v4355_v19 = vld [vmem:[%s4580_s18 + $0x90] sm:$0xff]  }
  0x38   : > { %3700 = vmatprep.mubr.msk.bf16.mxu0 %vm6015_vm2, %v4350_v10  ;;  %3732 = vmatprep.mubr.msk.bf16.mxu1 %vm6015_vm2, %v4351_v11  ;;  %v1080_v16 = vld [vmem:[%s4585_s21 + $0x48] sm:$0xff]  ;;  %v1079_v17 = vld [vmem:[%s4585_s21 + $0x40] sm:$0xff]  ;;  %v4356_v20 = vld [vmem:[%s4580_s18 + $0x18] sm:$0xff]  }
  0x39   : > { %1152 = vperm.xlu1 %3901, %v1074_v4   ;;  %1142 = vperm.xlu0 %3900, %v1072_v5   ;;  %v4357_v21 = vld [vmem:[%s4580_s18 + $0x98] sm:$0xff]   ;;  %v1081_v23 = vld [vmem:[%s4585_s21 + $0x50] sm:$0xff]  ;;  %v4358_v24 = vld [vmem:[%s4580_s18 + $0x20] sm:$0xff]  }
  0x3a   : > { %3701 = vmatmul.mubr.msk.bf16.vlgmr.msra.gmra.mrb[0].mxu0 %vm6015_vm2, %v4352_v12  ;;  %3733 = vmatmul.mubr.msk.bf16.vlgmr.msra.gmra.mrb[0].mxu1 %vm6015_vm2, %v4353_v13  ;;  %v1082_v22 = vld [vmem:[%s4585_s21 + $0x58] sm:$0xff]  ;;  %v4359_v25 = vld [vmem:[%s4580_s18 + $0xa0] sm:$0xff]   ;;  %v4360_v28 = vld [vmem:[%s4580_s18 + $0x28] sm:$0xff]  }
  0x3b   : > { %3704 = vmatprep.mubr.msk.bf16.mxu0 %vm6015_vm2, %v4354_v18  ;;  %3736 = vmatprep.mubr.msk.bf16.mxu1 %vm6015_vm2, %v4355_v19  ;;  %v1087_v26 = vld [vmem:[%s4585_s21 + $0x80] sm:$0xff]  ;;  %v4361_v29 = vld [vmem:[%s4580_s18 + $0xa8] sm:$0xff]   ;;  %v4362_v30 = vld [vmem:[%s4580_s18 + $0x30] sm:$0xff]  }
  0x3c   : > { %v1083_v27 = vld [vmem:[%s4585_s21 + $0x60] sm:$0xff]  ;;  %v4363_v31 = vld [vmem:[%s4580_s18 + $0xb0] sm:$0xff]   ;;  %v1120_v34 = vld [vmem:[%s4585_s21 + $0x188] sm:$0xff] }
  0x3d   : > { %1162 = vperm.xlu1 %3901, %v1076_v6   ;;  %1157 = vperm.xlu0 %3900, %v1075_v7   ;;  %v1103_v32 = vld [vmem:[%s4585_s21 + $0x100] sm:$0xff]  ;;  %v1088_v35 = vld [vmem:[%s4585_s21 + $0x88] sm:$0xff]  ;;  %v4364_v36 = vld [vmem:[%s4580_s18 + $0x38] sm:$0xff]  }
  0x3e   : > { %v1119_v33 = vld [vmem:[%s4585_s21 + $0x180] sm:$0xff]  ;;  %v4365_v37 = vld [vmem:[%s4580_s18 + $0xb8] sm:$0xff]   ;;  %v1089_v40 = vld [vmem:[%s4585_s21 + $0x90] sm:$0xff] }
  0x3f   : > { %v4366_v38 = vld [vmem:[%s4580_s18 + $0x40] sm:$0xff]   ;;  %v1104_v41 = vld [vmem:[%s4585_s21 + $0x108] sm:$0xff]  ;;  %v1105_v42 = vld [vmem:[%s4585_s21 + $0x110] sm:$0xff] }
  0x40   : > { %v4367_v39 = vld [vmem:[%s4580_s18 + $0xc0] sm:$0xff]   ;;  %v1121_v43 = vld [vmem:[%s4585_s21 + $0x190] sm:$0xff]  ;;  %v4368_v44 = vld [vmem:[%s4580_s18 + $0x48] sm:$0xff]  }
  0x41   : > { %1172 = vperm.xlu1 %3901, %v1078_v14   ;;  %1167 = vperm.xlu0 %3900, %v1077_v15   ;;  %v4369_v45 = vld [vmem:[%s4580_s18 + $0xc8] sm:$0xff]   ;;  %v4370_v46 = vld [vmem:[%s4580_s18 + $0x50] sm:$0xff]   ;;  %v1122_v48 = vld [vmem:[%s4585_s21 + $0x198] sm:$0xff] }
  0x42   : > { %3705 = vmatmul.mubr.msk.bf16.gmra.mrb[4].mxu0 %vm6015_vm2, %v4356_v20  ;;  %3737 = vmatmul.mubr.msk.bf16.gmra.mrb[4].mxu1 %vm6015_vm2, %v4357_v21  ;;  %v4371_v47 = vld [vmem:[%s4580_s18 + $0xd0] sm:$0xff]   ;;  %v1090_v49 = vld [vmem:[%s4585_s21 + $0x98] sm:$0xff]  ;;  %v1091_v50 = vld [vmem:[%s4585_s21 + $0xa0] sm:$0xff] }
  0x43   : > { %3708 = vmatprep.mubr.msk.bf16.mxu0 %vm6015_vm2, %v4358_v24  ;;  %3740 = vmatprep.mubr.msk.bf16.mxu1 %vm6015_vm2, %v4359_v25  ;;  %v1106_v51 = vld [vmem:[%s4585_s21 + $0x118] sm:$0xff]  ;;  %v4374_v54 = vld [vmem:[%s4580_s18 + $0x60] sm:$0xff]   ;;  %v1124_v58 = vld [vmem:[%s4585_s21 + $0x1a8] sm:$0xff] }
  0x44   : > { %v4372_v52 = vld [vmem:[%s4580_s18 + $0x58] sm:$0xff]   ;;  %v4375_v55 = vld [vmem:[%s4580_s18 + $0xe0] sm:$0xff]   ;;  %v1092_v59 = vld [vmem:[%s4585_s21 + $0xa8] sm:$0xff] }
  0x45   : > { %1182 = vperm.xlu1 %3901, %v1080_v16   ;;  %1177 = vperm.xlu0 %3900, %v1079_v17   ;;  %v4373_v53 = vld [vmem:[%s4580_s18 + $0xd8] sm:$0xff]   ;;  %v1107_v56 = vld [vmem:[%s4585_s21 + $0x120] sm:$0xff]  ;;  %v4376_v60 = vld [vmem:[%s4580_s18 + $0x68] sm:$0xff]  }
  0x46   : > { %v1123_v57 = vld [vmem:[%s4585_s21 + $0x1a0] sm:$0xff]  ;;  %v4377_v61 = vld [vmem:[%s4580_s18 + $0xe8] sm:$0xff]   ;;  %v4378_v62 = vld [vmem:[%s4580_s18 + $0x70] sm:$0xff]  }
  0x47   : > { %v4379_v63 = vld [vmem:[%s4580_s18 + $0xf0] sm:$0xff]   ;;  %v1108_v1 = vld [vmem:[%s4585_s21 + $0x128] sm:$0xff]  ;;  %v4380_v4 = vld [vmem:[%s4580_s18 + $0x78] sm:$0xff]  }
  0x48   : > { %v1093_v0 = vld [vmem:[%s4585_s21 + $0xb0] sm:$0xff]  ;;  %v4381_v5 = vld [vmem:[%s4580_s18 + $0xf8] sm:$0xff]   ;;  %v1095_v8 = vld [vmem:[%s4585_s21 + $0xc0] sm:$0xff] }
  0x49   : > { %1192 = vperm.xlu1 %3901, %v1082_v22   ;;  %1187 = vperm.xlu0 %3900, %v1081_v23   ;;  %v1109_v2 = vld [vmem:[%s4585_s21 + $0x130] sm:$0xff]  ;;  %v1126_v6 = vld [vmem:[%s4585_s21 + $0x1b8] sm:$0xff]  ;;  %v1111_v10 = vld [vmem:[%s4585_s21 + $0x140] sm:$0xff] }
  0x4a   : > { %3709 = vmatmul.mubr.msk.bf16.gmra.mrb[8].mxu0 %vm6015_vm2, %v4360_v28  ;;  %3741 = vmatmul.mubr.msk.bf16.gmra.mrb[8].mxu1 %vm6015_vm2, %v4361_v29  ;;  %v1125_v3 = vld [vmem:[%s4585_s21 + $0x1b0] sm:$0xff]  ;;  %v1094_v7 = vld [vmem:[%s4585_s21 + $0xb8] sm:$0xff]  ;;  %v1127_v11 = vld [vmem:[%s4585_s21 + $0x1c0] sm:$0xff] }
  0x4b   : > { %3712 = vmatprep.mubr.msk.bf16.mxu0 %vm6015_vm2, %v4362_v30  ;;  %3744 = vmatprep.mubr.msk.bf16.mxu1 %vm6015_vm2, %v4363_v31  ;;  %v1110_v9 = vld [vmem:[%s4585_s21 + $0x138] sm:$0xff]  ;;  %v1128_v12 = vld [vmem:[%s4585_s21 + $0x1c8] sm:$0xff]  ;;  %v1097_v14 = vld [vmem:[%s4585_s21 + $0xd0] sm:$0xff]  ;;  %v1063_v30 = vlaneseq }
  0x4c   : > { %v1096_v13 = vld [vmem:[%s4585_s21 + $0xc8] sm:$0xff]  ;;  %v1113_v16 = vld [vmem:[%s4585_s21 + $0x150] sm:$0xff]  ;;  %v1130_v18 = vld [vmem:[%s4585_s21 + $0x1d8] sm:$0xff] }
  0x4d   : > { %1217 = vperm.xlu1 %3901, %v1087_v26   ;;  %1197 = vperm.xlu0 %3900, %v1083_v27   ;;  %v1112_v15 = vld [vmem:[%s4585_s21 + $0x148] sm:$0xff]  ;;  %v1129_v17 = vld [vmem:[%s4585_s21 + $0x1d0] sm:$0xff]  ;;  %v1098_v19 = vld [vmem:[%s4585_s21 + $0xd8] sm:$0xff] }
  0x4e   : > { %v1099_v20 = vld [vmem:[%s4585_s21 + $0xe0] sm:$0xff]  ;;  %v1114_v21 = vld [vmem:[%s4585_s21 + $0x158] sm:$0xff]  ;;  %v1132_v24 = vld [vmem:[%s4585_s21 + $0x1e8] sm:$0xff] }
  0x4f   : > { %v1115_v22 = vld [vmem:[%s4585_s21 + $0x160] sm:$0xff]  ;;  %v1100_v25 = vld [vmem:[%s4585_s21 + $0xe8] sm:$0xff]  ;;  %v1133_v28 = vld [vmem:[%s4585_s21 + $0x1f0] sm:$0xff] }
  0x50   : > { %v1131_v23 = vld [vmem:[%s4585_s21 + $0x1e0] sm:$0xff]  ;;  %v1116_v26 = vld [vmem:[%s4585_s21 + $0x168] sm:$0xff]  ;;  %v1101_v29 = vld [vmem:[%s4585_s21 + $0xf0] sm:$0xff] }
  0x51   : > { %1297 = vperm.xlu1 %3901, %v1103_v32   ;;  %1377 = vperm.xlu0 %3900, %v1119_v33   ;;  %v1084_v27 = vld [vmem:[%s4585_s21 + $0x68] sm:$0xff]  ;;  %v1117_v31 = vld [vmem:[%s4585_s21 + $0x170] sm:$0xff]  ;;  %v1064_v33 = vand.u32 127, %v1063_v30 }
  0x52   : > { %3713 = vmatmul.mubr.msk.bf16.gmra.mrb[12].mxu0 %vm6015_vm2, %v4364_v36  ;;  %3745 = vmatmul.mubr.msk.bf16.gmra.mrb[12].mxu1 %vm6015_vm2, %v4365_v37  ;;  %v1085_v32 = vld [vmem:[%s4585_s21 + $0x70] sm:$0xff]  ;;  %v1118_v37 = vld [vmem:[%s4585_s21 + $0x178] sm:$0xff] }
  0x53   : > { %3716 = vmatprep.mubr.msk.bf16.mxu0 %vm6015_vm2, %v4366_v38  ;;  %3748 = vmatprep.mubr.msk.bf16.mxu1 %vm6015_vm2, %v4367_v39  ;;  %v1065_v36 = vadd.s32 128, %v1064_v33  ;;  %v1086_v38 = vld [vmem:[%s4585_s21 + $0x78] sm:$0xff] }
  0x55   : > { %1382 = vperm.xlu1 %3901, %v1120_v34   ;;  %1222 = vperm.xlu0 %3900, %v1088_v35   ;;  %v1134_v34 = vld [vmem:[%s4585_s21 + $0x1f8] sm:$0xff]  ;;  %v4752_v39 = vcvt.s32.f32 %v1065_v36 }
  0x56   : > { %v1102_v35 = vld [vmem:[%s4585_s21 + $0xf8] sm:$0xff] }
  0x59   : > { %1227 = vperm.xlu1 %3901, %v1089_v40   ;;  %1302 = vperm.xlu0 %3900, %v1104_v41  }
  0x5a   : > { %3717 = vmatmul.mubr.msk.bf16.gmra.mrb[16].mxu0 %vm6015_vm2, %v4368_v44  ;;  %3749 = vmatmul.mubr.msk.bf16.gmra.mrb[16].mxu1 %vm6015_vm2, %v4369_v45 }
  0x5b   : > { %3720 = vmatprep.mubr.msk.bf16.mxu0 %vm6015_vm2, %v4370_v46  ;;  %3752 = vmatprep.mubr.msk.bf16.mxu1 %vm6015_vm2, %v4371_v47 }
  0x5d   : > { %1307 = vperm.xlu1 %3901, %v1105_v42   ;;  %1387 = vperm.xlu0 %3900, %v1121_v43   ;;  %v6016_v42 = vmov 0.0|0.0  }
  0x5e   : > { %3764 = vmatprep.subr.bf16.mxu1 %v6016_v42  ;;  %3812 = vmatprep.subr.bf16.mxu0 %v6016_v42 }
  0x61   : > { %1392 = vperm.xlu1 %3901, %v1122_v48   ;;  %1232 = vperm.xlu0 %3900, %v1090_v49  }
  0x62   : > { %3721 = vmatmul.mubr.msk.bf16.gmra.mrb[20].mxu0 %vm6015_vm2, %v4372_v52  ;;  %3753 = vmatmul.mubr.msk.bf16.gmra.mrb[20].mxu1 %vm6015_vm2, %v4373_v53  ;;  %v4801_v53 = vcvt.s32.f32 %v1064_v33 }
  0x63   : > { %3724 = vmatprep.mubr.msk.bf16.mxu0 %vm6015_vm2, %v4374_v54  ;;  %3756 = vmatprep.mubr.msk.bf16.mxu1 %vm6015_vm2, %v4375_v55 }
  0x65   : > { %1237 = vperm.xlu1 %3901, %v1091_v50   ;;  %1312 = vperm.xlu0 %3900, %v1106_v51  }
  0x69   : > { %1317 = vperm.xlu1 %3901, %v1107_v56   ;;  %1397 = vperm.xlu0 %3900, %v1123_v57   ;;  %v6027_v56 = vmov 0.0  }
  0x6a   : > { %3725 = vmatmul.mubr.msk.bf16.gmra.mrb[24].mxu0 %vm6015_vm2, %v4376_v60  ;;  %3757 = vmatmul.mubr.msk.bf16.gmra.mrb[24].mxu1 %vm6015_vm2, %v4377_v61 }
  0x6b   : > { %3728 = vmatprep.mubr.msk.bf16.mxu0 %vm6015_vm2, %v4378_v62  ;;  %3760 = vmatprep.mubr.msk.bf16.mxu1 %vm6015_vm2, %v4379_v63 }
  0x6d   : > { %1402 = vperm.xlu1 %3901, %v1124_v58   ;;  %1242 = vperm.xlu0 %3900, %v1092_v59  }
  0x71   : > { %1247 = vperm.xlu1 %3901, %v1093_v0   ;;  %1322 = vperm.xlu0 %3900, %v1108_v1  }
  0x72   : > { %3729 = vmatmul.mubr.msk.bf16.gmra.mrb[28].mxu0 %vm6015_vm2, %v4380_v4  ;;  %3761 = vmatmul.mubr.msk.bf16.gmra.mrb[28].mxu1 %vm6015_vm2, %v4381_v5 }
  0x75   : > { %1327 = vperm.xlu1 %3901, %v1109_v2   ;;  %1407 = vperm.xlu0 %3900, %v1125_v3  }
  0x79   : > { %1412 = vperm.xlu1 %3901, %v1126_v6   ;;  %1252 = vperm.xlu0 %3900, %v1094_v7  }
  0x7d   : > { %1257 = vperm.xlu1 %3901, %v1095_v8   ;;  %1332 = vperm.xlu0 %3900, %v1110_v9  }
  0x81   : > { %1337 = vperm.xlu1 %3901, %v1111_v10   ;;  %1417 = vperm.xlu0 %3900, %v1127_v11  }
  0x85   : > { %1422 = vperm.xlu1 %3901, %v1128_v12   ;;  %1262 = vperm.xlu0 %3900, %v1096_v13  }
  0x89   : > { %1267 = vperm.xlu1 %3901, %v1097_v14   ;;  %1342 = vperm.xlu0 %3900, %v1112_v15  }
  0x8d   : > { %1347 = vperm.xlu1 %3901, %v1113_v16   ;;  %1427 = vperm.xlu0 %3900, %v1129_v17  }
  0x91   : > { %1432 = vperm.xlu1 %3901, %v1130_v18   ;;  %1272 = vperm.xlu0 %3900, %v1098_v19  }
  0x95   : > { %1277 = vperm.xlu1 %3901, %v1099_v20   ;;  %1352 = vperm.xlu0 %3900, %v1114_v21  }
  0x99   : > { %1357 = vperm.xlu1 %3901, %v1115_v22   ;;  %1437 = vperm.xlu0 %3900, %v1131_v23  }
  0x9d   : > { %1442 = vperm.xlu1 %3901, %v1132_v24   ;;  %1282 = vperm.xlu0 %3900, %v1100_v25  }
  0xa1   : > { %1362 = vperm.xlu1 %3901, %v1116_v26   ;;  %1202 = vperm.xlu0 %3900, %v1084_v27  }
  0xa5   : > { %1447 = vperm.xlu1 %3901, %v1133_v28   ;;  %1287 = vperm.xlu0 %3900, %v1101_v29  }
  0xa9   : > { %1367 = vperm.xlu1 %3901, %v1117_v31   ;;  %1207 = vperm.xlu0 %3900, %v1085_v32  }
  0xad   : > { %1452 = vperm.xlu1 %3901, %v1134_v34   ;;  %1292 = vperm.xlu0 %3900, %v1102_v35  }
  0xb1   : > { %1372 = vperm.xlu1 %3901, %v1118_v37   ;;  %1212 = vperm.xlu0 %3900, %v1086_v38  }
  0xb4   : > { %v4754_v40 = vpop.permute.xlu1 %1147  ;;  %v1138_v41 = vpop.permute.xlu0 %1137 }
  0xb5   : > { %vm1460_vm3 = vcmp.eq.f32.partialorder %v4752_v39, %v4754_v40  ;;  %vm1456_vm4 = vcmp.eq.f32.partialorder %v4752_v39, %v1138_v41 }
  0xb6   : > { %v4812_v57 = vsel %vm1456_vm4, 1.0, %v6027_v56  ;;  %vm1455_vm4 = vcmp.eq.f32.partialorder %v4801_v53, %v1138_v41  ;;  %v4879_v24 = vsel %vm1460_vm3, 1.0, %v6027_v56 }
  0xb7   : > { %v3498_v11 = vsel %vm1455_vm4, 1.0, %v6027_v56 }
  0xb8   : > { %v4761_v43 = vpop.permute.xlu1 %1152  ;;  %v4763_v44 = vpop.permute.xlu0 %1142 }
  0xb9   : > { %vm1462_vm5 = vcmp.eq.f32.partialorder %v4752_v39, %v4761_v43  ;;  %vm1458_vm6 = vcmp.eq.f32.partialorder %v4752_v39, %v4763_v44 }
  0xba   : > { %v4863_v18 = vsel %vm1458_vm6, 1.0, %v6027_v56 }
  0xbc   : > { %v4769_v45 = vpop.permute.xlu1 %1162  ;;  %v4771_v46 = vpop.permute.xlu0 %1157 }
  0xbd   : > { %vm1466_vm7 = vcmp.eq.f32.partialorder %v4752_v39, %v4769_v45  ;;  %vm1464_vm8 = vcmp.eq.f32.partialorder %v4752_v39, %v4771_v46 }
  0xc0   : > { %v4777_v47 = vpop.permute.xlu1 %1172  ;;  %v4779_v48 = vpop.permute.xlu0 %1167 }
  0xc1   : > { %vm1470_vm9 = vcmp.eq.f32.partialorder %v4752_v39, %v4777_v47  ;;  %vm1468_vm10 = vcmp.eq.f32.partialorder %v4752_v39, %v4779_v48 }
  0xc4   : > { %v4785_v49 = vpop.permute.xlu1 %1182  ;;  %v4787_v50 = vpop.permute.xlu0 %1177 }
  0xc5   : > { %vm1472_vm12 = vcmp.eq.f32.partialorder %v4752_v39, %v4787_v50 }
  0xc8   : > { %v4793_v51 = vpop.permute.xlu1 %1192  ;;  %v4795_v52 = vpop.permute.xlu0 %1187 }
  0xcc   : > { %v1218_v54 = vpop.permute.xlu1 %1217  ;;  %v4803_v55 = vpop.permute.xlu0 %1197 }
  0xcd   : > { %vm1487_vm15 = vcmp.eq.f32.partialorder %v4801_v53, %v1218_v54  ;;  %vm1488_vm0 = vcmp.eq.f32.partialorder %v4752_v39, %v1218_v54  ;;  %vm1480_vm1 = vcmp.eq.f32.partialorder %v4752_v39, %v4803_v55 }
  0xce   : > { %v3530_v58 = vsel %vm1487_vm15, 1.0, %v6027_v56  ;;  %v4820_v61 = vsel %vm1488_vm0, 1.0, %v6027_v56  ;;  %vm1459_vm0 = vcmp.eq.f32.partialorder %v4801_v53, %v4754_v40 }
  0xcf   : > { %v3502_v23 = vsel %vm1459_vm0, 1.0, %v6027_v56 }
  0xd0   : > { %v1298_v59 = vpop.permute.xlu1 %1297  ;;  %v1378_v60 = vpop.permute.xlu0 %1377 }
  0xd1   : > { %vm1519_vm2 = vcmp.eq.f32.partialorder %v4801_v53, %v1298_v59  ;;  %vm1520_vm13 = vcmp.eq.f32.partialorder %v4752_v39, %v1298_v59  ;;  %vm1551_vm14 = vcmp.eq.f32.partialorder %v4801_v53, %v1378_v60  ;;  %vm1552_vm11 = vcmp.eq.f32.partialorder %v4752_v39, %v1378_v60 }
  0xd2   : > { %v4823_v62 = vsel %vm1520_vm13, 1.0, %v6027_v56  ;;  %v3594_v63 = vsel %vm1551_vm14, 1.0, %v6027_v56  ;;  %v4827_v0 = vsel %vm1552_vm11, 1.0, %v6027_v56  ;;  %v3562_v4 = vsel %vm1519_vm2, 1.0, %v6027_v56 }
  0xd3   : > { %v3902_v2 = vpack.i.bf16 %v3594_v63, %v3530_v58  ;;  %vm1457_vm2 = vcmp.eq.f32.partialorder %v4801_v53, %v4763_v44  ;;  %v4014_v14 = vpack.i.bf16 %v3562_v4, %v3498_v11  ;;  %v4928_v4 = vsel %vm1462_vm5, 1.0, %v6027_v56 }
  0xd4   : > { %v1383_v5 = vpop.permute.xlu1 %1382  ;;  %v1223_v6 = vpop.permute.xlu0 %1222  ;;  %v3500_v17 = vsel %vm1457_vm2, 1.0, %v6027_v56 }
  0xd5   : > { %vm1553_vm13 = vcmp.eq.f32.partialorder %v4801_v53, %v1383_v5  ;;  %vm1554_vm14 = vcmp.eq.f32.partialorder %v4752_v39, %v1383_v5  ;;  %vm1489_vm11 = vcmp.eq.f32.partialorder %v4801_v53, %v1223_v6  ;;  %vm1490_vm15 = vcmp.eq.f32.partialorder %v4752_v39, %v1223_v6  ;;  %3903 = vxpose.xlu0.b32.start [1/16] %v3902_v2, 128 }
  0xd6   : > { %v3596_v7 = vsel %vm1553_vm13, 1.0, %v6027_v56  ;;  %v4841_v8 = vsel %vm1554_vm14, 1.0, %v6027_v56  ;;  %v3532_v9 = vsel %vm1489_vm11, 1.0, %v6027_v56  ;;  %v4845_v10 = vsel %vm1490_vm15, 1.0, %v6027_v56 }
  0xd7   : > { %v3904_v12 = vpack.i.bf16 %v3596_v7, %v3532_v9 }
  0xd8   : > { %v1228_v15 = vpop.permute.xlu1 %1227  ;;  %v1303_v16 = vpop.permute.xlu0 %1302 }
  0xd9   : > { %vm1491_vm13 = vcmp.eq.f32.partialorder %v4801_v53, %v1228_v15  ;;  %vm1492_vm14 = vcmp.eq.f32.partialorder %v4752_v39, %v1228_v15  ;;  %vm1521_vm11 = vcmp.eq.f32.partialorder %v4801_v53, %v1303_v16  ;;  %vm1522_vm4 = vcmp.eq.f32.partialorder %v4752_v39, %v1303_v16  ;;  %3905 = vxpose.xlu0.b32.cont [2/16] %v3904_v12, 128 }
  0xda   : > { %v3564_v19 = vsel %vm1521_vm11, 1.0, %v6027_v56  ;;  %v4867_v20 = vsel %vm1522_vm4, 1.0, %v6027_v56  ;;  %4015 = vxpose.xlu1.b32.start [1/16] %v4014_v14, 128  ;;  %v3534_v25 = vsel %vm1491_vm13, 1.0, %v6027_v56  ;;  %v4883_v26 = vsel %vm1492_vm14, 1.0, %v6027_v56 }
  0xdb   : > { %v4016_v21 = vpack.i.bf16 %v3564_v19, %v3500_v17  ;;  %vm1461_vm4 = vcmp.eq.f32.partialorder %v4801_v53, %v4761_v43  ;;  %v4941_v12 = vsel %vm1464_vm8, 1.0, %v6027_v56 }
  0xdc   : > { %v1308_v27 = vpop.permute.xlu1 %1307  ;;  %v1388_v28 = vpop.permute.xlu0 %1387  ;;  %v3504_v2 = vsel %vm1461_vm4, 1.0, %v6027_v56 }
  0xdd   : > { %vm1523_vm6 = vcmp.eq.f32.partialorder %v4801_v53, %v1308_v27  ;;  %vm1524_vm15 = vcmp.eq.f32.partialorder %v4752_v39, %v1308_v27  ;;  %vm1555_vm2 = vcmp.eq.f32.partialorder %v4801_v53, %v1388_v28  ;;  %vm1556_vm0 = vcmp.eq.f32.partialorder %v4752_v39, %v1388_v28 }
  0xde   : > { %v3566_v29 = vsel %vm1523_vm6, 1.0, %v6027_v56  ;;  %v4891_v30 = vsel %vm1524_vm15, 1.0, %v6027_v56  ;;  %v3598_v31 = vsel %vm1555_vm2, 1.0, %v6027_v56  ;;  %v4895_v32 = vsel %vm1556_vm0, 1.0, %v6027_v56  ;;  %4017 = vxpose.xlu1.b32.cont [2/16] %v4016_v21, 128 }
  0xdf   : > { %v4018_v33 = vpack.i.bf16 %v3566_v29, %v3502_v23  ;;  %v3906_v35 = vpack.i.bf16 %v3598_v31, %v3534_v25  ;;  %vm1463_vm6 = vcmp.eq.f32.partialorder %v4801_v53, %v4771_v46 }
  0xe0   : > { %v1393_v37 = vpop.permute.xlu1 %1392  ;;  %v1233_v38 = vpop.permute.xlu0 %1232  ;;  %v3506_v11 = vsel %vm1463_vm6, 1.0, %v6027_v56  ;;  %vm1465_vm6 = vcmp.eq.f32.partialorder %v4801_v53, %v4769_v45 }
  0xe1   : > { %vm1557_vm3 = vcmp.eq.f32.partialorder %v4801_v53, %v1393_v37  ;;  %vm1558_vm13 = vcmp.eq.f32.partialorder %v4752_v39, %v1393_v37  ;;  %vm1493_vm14 = vcmp.eq.f32.partialorder %v4801_v53, %v1233_v38  ;;  %vm1494_vm11 = vcmp.eq.f32.partialorder %v4752_v39, %v1233_v38  ;;  %3907 = vxpose.xlu0.b32.cont [3/16] %v3906_v35, 128 }
  0xe2   : > { %v3600_v40 = vsel %vm1557_vm3, 1.0, %v6027_v56  ;;  %v4907_v41 = vsel %vm1558_vm13, 1.0, %v6027_v56  ;;  %v3536_v44 = vsel %vm1493_vm14, 1.0, %v6027_v56  ;;  %v4911_v54 = vsel %vm1494_vm11, 1.0, %v6027_v56  ;;  %4019 = vxpose.xlu1.b32.cont [3/16] %v4018_v33, 128 }
  0xe3   : > { %v3908_v58 = vpack.i.bf16 %v3600_v40, %v3536_v44  ;;  %v3508_v44 = vsel %vm1465_vm6, 1.0, %v6027_v56 }
  0xe4   : > { %v1238_v60 = vpop.permute.xlu1 %1237  ;;  %v1313_v63 = vpop.permute.xlu0 %1312 }
  0xe5   : > { %vm1495_vm15 = vcmp.eq.f32.partialorder %v4801_v53, %v1238_v60  ;;  %vm1496_vm2 = vcmp.eq.f32.partialorder %v4752_v39, %v1238_v60  ;;  %vm1525_vm0 = vcmp.eq.f32.partialorder %v4801_v53, %v1313_v63  ;;  %vm1526_vm3 = vcmp.eq.f32.partialorder %v4752_v39, %v1313_v63  ;;  %3909 = vxpose.xlu0.b32.cont [4/16] %v3908_v58, 128 }
  0xe6   : > { %v3568_v5 = vsel %vm1525_vm0, 1.0, %v6027_v56  ;;  %v4932_v6 = vsel %vm1526_vm3, 1.0, %v6027_v56  ;;  %v3538_v43 = vsel %vm1495_vm15, 1.0, %v6027_v56  ;;  %v4945_v14 = vsel %vm1496_vm2, 1.0, %v6027_v56 }
  0xe7   : > { %v4020_v7 = vpack.i.bf16 %v3568_v5, %v3504_v2  ;;  %vm1467_vm15 = vcmp.eq.f32.partialorder %v4801_v53, %v4779_v48  ;;  %v4986_v58 = vsel %vm1466_vm7, 1.0, %v6027_v56 }
  0xe8   : > { %v1318_v15 = vpop.permute.xlu1 %1317  ;;  %v1398_v16 = vpop.permute.xlu0 %1397 }
  0xe9   : > { %vm1527_vm5 = vcmp.eq.f32.partialorder %v4801_v53, %v1318_v15  ;;  %vm1528_vm13 = vcmp.eq.f32.partialorder %v4752_v39, %v1318_v15  ;;  %vm1559_vm14 = vcmp.eq.f32.partialorder %v4801_v53, %v1398_v16  ;;  %vm1560_vm11 = vcmp.eq.f32.partialorder %v4752_v39, %v1398_v16  ;;  %4021 = vxpose.xlu1.b32.cont [4/16] %v4020_v7, 128 }
  0xea   : > { %v3570_v46 = vsel %vm1527_vm5, 1.0, %v6027_v56  ;;  %v4953_v17 = vsel %vm1528_vm13, 1.0, %v6027_v56  ;;  %v3602_v19 = vsel %vm1559_vm14, 1.0, %v6027_v56  ;;  %v4957_v21 = vsel %vm1560_vm11, 1.0, %v6027_v56 }
  0xeb   : > { %v4022_v23 = vpack.i.bf16 %v3570_v46, %v3506_v11  ;;  %v3910_v27 = vpack.i.bf16 %v3602_v19, %v3538_v43  ;;  %v3510_v7 = vsel %vm1467_vm15, 1.0, %v6027_v56  ;;  %v4999_v11 = vsel %vm1468_vm10, 1.0, %v6027_v56 }
  0xec   : > { %v4963_v29 = vpop.permute.xlu1 %1402  ;;  %v4965_v31 = vpop.permute.xlu0 %1242  ;;  %vm1469_vm15 = vcmp.eq.f32.partialorder %v4801_v53, %v4777_v47 }
  0xed   : > { %vm1561_vm8 = vcmp.eq.f32.partialorder %v4801_v53, %v4963_v29  ;;  %vm1497_vm4 = vcmp.eq.f32.partialorder %v4801_v53, %v4965_v31  ;;  %3911 = vxpose.xlu0.b32.cont [5/16] %v3910_v27, 128  ;;  %4023 = vxpose.xlu1.b32.cont [5/16] %v4022_v23, 128 }
  0xee   : > { %v3604_v33 = vsel %vm1561_vm8, 1.0, %v6027_v56  ;;  %v3540_v35 = vsel %vm1497_vm4, 1.0, %v6027_v56 }
  0xef   : > { %v3912_v37 = vpack.i.bf16 %v3604_v33, %v3540_v35 }
  0xf0   : > { %v1248_v38 = vpop.permute.xlu1 %1247  ;;  %v1323_v40 = vpop.permute.xlu0 %1322 }
  0xf1   : > { %vm1499_vm2 = vcmp.eq.f32.partialorder %v4801_v53, %v1248_v38  ;;  %vm1500_vm0 = vcmp.eq.f32.partialorder %v4752_v39, %v1248_v38  ;;  %vm1529_vm3 = vcmp.eq.f32.partialorder %v4801_v53, %v1323_v40  ;;  %vm1530_vm5 = vcmp.eq.f32.partialorder %v4752_v39, %v1323_v40  ;;  %3913 = vxpose.xlu0.b32.cont [6/16] %v3912_v37, 128 }
  0xf2   : > { %v3572_v60 = vsel %vm1529_vm3, 1.0, %v6027_v56  ;;  %v4990_v63 = vsel %vm1530_vm5, 1.0, %v6027_v56  ;;  %v3542_v45 = vsel %vm1499_vm2, 1.0, %v6027_v56  ;;  %v5003_v43 = vsel %vm1500_vm0, 1.0, %v6027_v56 }
  0xf3   : > { %v4024_v2 = vpack.i.bf16 %v3572_v60, %v3508_v44  ;;  %vm1471_vm2 = vcmp.eq.f32.partialorder %v4801_v53, %v4787_v50 }
  0xf4   : > { %v1328_v15 = vpop.permute.xlu1 %1327  ;;  %v1408_v16 = vpop.permute.xlu0 %1407 }
  0xf5   : > { %vm1531_vm7 = vcmp.eq.f32.partialorder %v4801_v53, %v1328_v15  ;;  %vm1532_vm13 = vcmp.eq.f32.partialorder %v4752_v39, %v1328_v15  ;;  %vm1563_vm14 = vcmp.eq.f32.partialorder %v4801_v53, %v1408_v16  ;;  %vm1564_vm11 = vcmp.eq.f32.partialorder %v4752_v39, %v1408_v16  ;;  %4025 = vxpose.xlu1.b32.cont [6/16] %v4024_v2, 128 }
  0xf6   : > { %v3574_v48 = vsel %vm1531_vm7, 1.0, %v6027_v56  ;;  %v5011_v46 = vsel %vm1532_vm13, 1.0, %v6027_v56  ;;  %v3606_v19 = vsel %vm1563_vm14, 1.0, %v6027_v56  ;;  %v5015_v23 = vsel %vm1564_vm11, 1.0, %v6027_v56 }
  0xf7   : > { %v4026_v27 = vpack.i.bf16 %v3574_v48, %v3510_v7  ;;  %v3914_v35 = vpack.i.bf16 %v3606_v19, %v3542_v45  ;;  %v3512_v19 = vsel %vm1469_vm15, 1.0, %v6027_v56  ;;  %vm1475_vm15 = vcmp.eq.f32.partialorder %v4801_v53, %v4795_v52 }
  0xf8   : > { %v1413_v38 = vpop.permute.xlu1 %1412  ;;  %v1253_v40 = vpop.permute.xlu0 %1252 }
  0xf9   : > { %vm1565_vm10 = vcmp.eq.f32.partialorder %v4801_v53, %v1413_v38  ;;  %vm1566_vm8 = vcmp.eq.f32.partialorder %v4752_v39, %v1413_v38  ;;  %vm1501_vm4 = vcmp.eq.f32.partialorder %v4801_v53, %v1253_v40  ;;  %vm1502_vm6 = vcmp.eq.f32.partialorder %v4752_v39, %v1253_v40  ;;  %3915 = vxpose.xlu0.b32.cont [7/16] %v3914_v35, 128 }
  0xfa   : > { %v3608_v44 = vsel %vm1565_vm10, 1.0, %v6027_v56  ;;  %v5027_v60 = vsel %vm1566_vm8, 1.0, %v6027_v56  ;;  %v3544_v2 = vsel %vm1501_vm4, 1.0, %v6027_v56  ;;  %v5031_v7 = vsel %vm1502_vm6, 1.0, %v6027_v56  ;;  %4027 = vxpose.xlu1.b32.cont [7/16] %v4026_v27, 128 }
  0xfb   : > { %v3916_v45 = vpack.i.bf16 %v3608_v44, %v3544_v2  ;;  %v5048_v27 = vsel %vm1470_vm9, 1.0, %v6027_v56  ;;  %v3514_v2 = vsel %vm1471_vm2, 1.0, %v6027_v56  ;;  %vm1473_vm6 = vcmp.eq.f32.partialorder %v4801_v53, %v4785_v49 }
  0xfc   : > { %v1258_v16 = vpop.permute.xlu1 %1257  ;;  %v1333_v48 = vpop.permute.xlu0 %1332 }
  0xfd   : > { %vm1503_vm0 = vcmp.eq.f32.partialorder %v4801_v53, %v1258_v16  ;;  %vm1504_vm3 = vcmp.eq.f32.partialorder %v4752_v39, %v1258_v16  ;;  %vm1533_vm5 = vcmp.eq.f32.partialorder %v4801_v53, %v1333_v48  ;;  %vm1534_vm7 = vcmp.eq.f32.partialorder %v4752_v39, %v1333_v48  ;;  %3917 = vxpose.xlu0.b32.cont [8/16] %v3916_v45, 128 }
  0xfe   : > { %v3576_v35 = vsel %vm1533_vm5, 1.0, %v6027_v56  ;;  %v5052_v38 = vsel %vm1534_vm7, 1.0, %v6027_v56  ;;  %v5061_v45 = vsel %vm1472_vm12, 1.0, %v6027_v56  ;;  %v3546_v47 = vsel %vm1503_vm0, 1.0, %v6027_v56 }
  0xff   : > { %v4028_v40 = vpack.i.bf16 %v3576_v35, %v3512_v19  ;;  %v5065_v16 = vsel %vm1504_vm3, 1.0, %v6027_v56  ;;  %vm6041_vm7 = vcmp.eq.f32.partialorder %v4752_v39, %v4785_v49 }
 0x100   : > { %v1338_v48 = vpop.permute.xlu1 %1337  ;;  %v1418_v33 = vpop.permute.xlu0 %1417 }
 0x101   : > { %vm1535_vm9 = vcmp.eq.f32.partialorder %v4801_v53, %v1338_v48  ;;  %vm1536_vm13 = vcmp.eq.f32.partialorder %v4752_v39, %v1338_v48  ;;  %vm1567_vm14 = vcmp.eq.f32.partialorder %v4801_v53, %v1418_v33  ;;  %vm1568_vm11 = vcmp.eq.f32.partialorder %v4752_v39, %v1418_v33  ;;  %4029 = vxpose.xlu1.b32.cont [8/16] %v4028_v40, 128 }
 0x102   : > { %v3578_v50 = vsel %vm1535_vm9, 1.0, %v6027_v56  ;;  %v5073_v19 = vsel %vm1536_vm13, 1.0, %v6027_v56  ;;  %v3610_v35 = vsel %vm1567_vm14, 1.0, %v6027_v56  ;;  %v5077_v44 = vsel %vm1568_vm11, 1.0, %v6027_v56 }
 0x103   : > { %v4030_v15 = vpack.i.bf16 %v3578_v50, %v3514_v2  ;;  %v3918_v48 = vpack.i.bf16 %v3610_v35, %v3546_v47  ;;  %vm6044_vm9 = vcmp.eq.f32.partialorder %v4752_v39, %v4795_v52 }
 0x104   : > { %v1423_v33 = vpop.permute.xlu1 %1422  ;;  %v1263_v40 = vpop.permute.xlu0 %1262 }
 0x105   : > { %vm1569_vm12 = vcmp.eq.f32.partialorder %v4801_v53, %v1423_v33  ;;  %vm1570_vm10 = vcmp.eq.f32.partialorder %v4752_v39, %v1423_v33  ;;  %vm1505_vm8 = vcmp.eq.f32.partialorder %v4801_v53, %v1263_v40  ;;  %vm1506_vm4 = vcmp.eq.f32.partialorder %v4752_v39, %v1263_v40  ;;  %3919 = vxpose.xlu0.b32.cont [9/16] %v3918_v48, 128 }
 0x106   : > { %v3612_v2 = vsel %vm1569_vm12, 1.0, %v6027_v56  ;;  %v5089_v50 = vsel %vm1570_vm10, 1.0, %v6027_v56  ;;  %v3548_v47 = vsel %vm1505_vm8, 1.0, %v6027_v56  ;;  %v5093_v35 = vsel %vm1506_vm4, 1.0, %v6027_v56  ;;  %4031 = vxpose.xlu1.b32.cont [9/16] %v4030_v15, 128 }
 0x107   : > { %v3920_v33 = vpack.i.bf16 %v3612_v2, %v3548_v47  ;;  %v3516_v15 = vsel %vm1473_vm6, 1.0, %v6027_v56  ;;  %v5110_v2 = vsel %vm6041_vm7, 1.0, %v6027_v56  ;;  %vm1477_vm10 = vcmp.eq.f32.partialorder %v4801_v53, %v4793_v51 }
 0x108   : > { %v1268_v48 = vpop.permute.xlu1 %1267  ;;  %v1343_v40 = vpop.permute.xlu0 %1342  ;;  %6042 = vst [vmem:[#allocation9_spill] sm:$0xff] %v5110_v2  ;;  %v3520_v13 = vsel %vm1477_vm10, 1.0, %v6027_v56 }
 0x109   : > { %vm1507_vm2 = vcmp.eq.f32.partialorder %v4801_v53, %v1268_v48  ;;  %vm1508_vm0 = vcmp.eq.f32.partialorder %v4752_v39, %v1268_v48  ;;  %vm1537_vm3 = vcmp.eq.f32.partialorder %v4801_v53, %v1343_v40  ;;  %vm1538_vm5 = vcmp.eq.f32.partialorder %v4752_v39, %v1343_v40  ;;  %3921 = vxpose.xlu0.b32.cont [10/16] %v3920_v33, 128 }
 0x10a   : > { %v3580_v47 = vsel %vm1537_vm3, 1.0, %v6027_v56  ;;  %v5114_v5 = vsel %vm1538_vm5, 1.0, %v6027_v56  ;;  %v3518_v40 = vsel %vm1475_vm15, 1.0, %v6027_v56  ;;  %v5123_v33 = vsel %vm6044_vm9, 1.0, %v6027_v56 }
 0x10b   : > { %6043 = vst [vmem:[#allocation10_spill] sm:$0xff] %v5114_v5  ;;  %v4032_v37 = vpack.i.bf16 %v3580_v47, %v3516_v15  ;;  %6045 = vst [vmem:[#allocation11_spill] sm:$0xff] %v5123_v33  ;;  %v3550_v49 = vsel %vm1507_vm2, 1.0, %v6027_v56  ;;  %v5127_v25 = vsel %vm1508_vm0, 1.0, %v6027_v56  ;;  %vm1479_vm2 = vcmp.eq.f32.partialorder %v4801_v53, %v4803_v55 }
 0x10c   : > { %6046 = vst [vmem:[#allocation12_spill] sm:$0xff] %v5127_v25  ;;  %v1348_v9 = vpop.permute.xlu1 %1347  ;;  %v1428_v28 = vpop.permute.xlu0 %1427  ;;  %vm6051_vm9 = vcmp.eq.f32.partialorder %v4752_v39, %v4793_v51  ;;  %v6057_v5 = vmov 0.0|0.0  }
 0x10d   : > { %vm1539_vm13 = vcmp.eq.f32.partialorder %v4801_v53, %v1348_v9  ;;  %vm1540_vm14 = vcmp.eq.f32.partialorder %v4752_v39, %v1348_v9  ;;  %vm1571_vm11 = vcmp.eq.f32.partialorder %v4801_v53, %v1428_v28  ;;  %vm1572_vm12 = vcmp.eq.f32.partialorder %v4752_v39, %v1428_v28  ;;  %4033 = vxpose.xlu1.b32.cont [10/16] %v4032_v37, 128  ;;  %v5161_v22 = vpop.f32.mrb[0].mxu1 }
 0x10e   : > { %v3582_v52 = vsel %vm1539_vm13, 1.0, %v6027_v56  ;;  %v5135_v15 = vsel %vm1540_vm14, 1.0, %v6027_v56  ;;  %v3614_v47 = vsel %vm1571_vm11, 1.0, %v6027_v56  ;;  %v5139_v48 = vsel %vm1572_vm12, 1.0, %v6027_v56  ;;  %v935_v36 = vpop.f32.mrb[1].mxu1 }
 0x10f   : > { %6047 = vst [vmem:[#allocation13_spill] sm:$0xff] %v5135_v15  ;;  %6048 = vst [vmem:[#allocation14_spill] sm:$0xff] %v5139_v48  ;;  %v4034_v34 = vpack.i.bf16 %v3582_v52, %v3518_v40  ;;  %v3922_v9 = vpack.i.bf16 %v3614_v47, %v3550_v49  ;;  %v5151_v40 = vpop.f32.mrb[0].mxu0 }
 0x110   : > { %v1433_v28 = vpop.permute.xlu1 %1432  ;;  %v1273_v37 = vpop.permute.xlu0 %1272 }
 0x111   : > { %vm1573_vm8 = vcmp.eq.f32.partialorder %v4801_v53, %v1433_v28  ;;  %vm1574_vm4 = vcmp.eq.f32.partialorder %v4752_v39, %v1433_v28  ;;  %vm1509_vm6 = vcmp.eq.f32.partialorder %v4801_v53, %v1273_v37  ;;  %vm1510_vm15 = vcmp.eq.f32.partialorder %v4752_v39, %v1273_v37  ;;  %3923 = vxpose.xlu0.b32.cont [11/16] %v3922_v9, 128  ;;  %v807_v28 = vpop.f32.mrb[1].mxu0 }
 0x112   : > { %v3616_v49 = vsel %vm1573_vm8, 1.0, %v6027_v56  ;;  %v5155_v52 = vsel %vm1574_vm4, 1.0, %v6027_v56  ;;  %v3552_v47 = vsel %vm1509_vm6, 1.0, %v6027_v56  ;;  %v5159_v59 = vsel %vm1510_vm15, 1.0, %v6027_v56  ;;  %4035 = vxpose.xlu1.b32.cont [11/16] %v4034_v34, 128  ;;  %v5167_v1 = vpop.f32.mrb[2].mxu0 }
 0x113   : > { %6049 = vst [vmem:[#allocation15_spill] sm:$0xff] %v5155_v52  ;;  %6050 = vst [vmem:[#allocation16_spill] sm:$0xff] %v5159_v59  ;;  %v3924_v9 = vpack.i.bf16 %v3616_v49, %v3552_v47  ;;  %v3768_v42 = vpack.c.bf16 %v5167_v1, %v5151_v40  ;;  %v3735_v49 = vpop.f32.mrb[2].mxu1  ;;  %v810_v47 = vpop.f32.mrb[3].mxu0  ;;  %v5183_v37 = vsel %vm6051_vm9, 1.0, %v6027_v56  ;;  %v3522_v1 = vsel %vm1479_vm2, 1.0, %v6027_v56 }
 0x114   : > { %v1278_v3 = vpop.permute.xlu1 %1277  ;;  %v1353_v34 = vpop.permute.xlu0 %1352  ;;  %6052 = vst [vmem:[#allocation17_spill] sm:$0xff] %v5183_v37  ;;  %v3816_v59 = vpack.c.bf16 %v3735_v49, %v5161_v22  ;;  %v3765_v51 = vpack.c.bf16 %v810_v47, %v807_v28  ;;  %v5200_v52 = vsel %vm1480_vm1, 1.0, %v6027_v56 }
 0x115   : > { %vm1511_vm0 = vcmp.eq.f32.partialorder %v4801_v53, %v1278_v3  ;;  %vm1512_vm3 = vcmp.eq.f32.partialorder %v4752_v39, %v1278_v3  ;;  %vm1541_vm5 = vcmp.eq.f32.partialorder %v4801_v53, %v1353_v34  ;;  %vm1542_vm7 = vcmp.eq.f32.partialorder %v4752_v39, %v1353_v34  ;;  %3925 = vxpose.xlu0.b32.cont [12/16] %v3924_v9, 128  ;;  %v938_v34 = vpop.f32.mrb[3].mxu1  ;;  %v5214_v55 = vpop.f32.mrb[4].mxu0 }
 0x116   : > { %v3584_v40 = vsel %vm1541_vm5, 1.0, %v6027_v56  ;;  %v5191_v33 = vsel %vm1542_vm7, 1.0, %v6027_v56  ;;  %6054 = vst [vmem:[#allocation19_spill] sm:$0xff] %v5200_v52  ;;  %v3554_v2 = vsel %vm1511_vm0, 1.0, %v6027_v56  ;;  %v3813_v37 = vpack.c.bf16 %v938_v34, %v935_v36  ;;  %3766 = vmatpush1.bf16.msra.mxu1 %v3765_v51  ;;  %v5224_v49 = vpop.f32.mrb[4].mxu1  ;;  %v823_v47 = vpop.f32.mrb[5].mxu0 }
 0x117   : > { %6053 = vst [vmem:[#allocation18_spill] sm:$0xff] %v5191_v33  ;;  %v4036_v9 = vpack.i.bf16 %v3584_v40, %v3520_v13  ;;  %v5208_v13 = vsel %vm1512_vm3, 1.0, %v6027_v56  ;;  %v951_v33 = vpop.f32.mrb[5].mxu1  ;;  %3767 = vmatprep.subr.bf16.mxu1 %v6057_v5  ;;  %v5231_v25 = vpop.f32.mrb[6].mxu0  ;;  %v6058_v51 = vmov 0.0  }
 0x118   : > { %6055 = vst [vmem:[#allocation20_spill] sm:$0xff] %v5208_v13  ;;  %v1358_v40 = vpop.permute.xlu1 %1357  ;;  %v1438_v15 = vpop.permute.xlu0 %1437  ;;  %3814 = vmatpush1.bf16.msra.mxu0 %v3813_v37  ;;  %v3774_v37 = vpack.c.bf16 %v5231_v25, %v5214_v55 }
 0x119   : > { %vm1543_vm13 = vcmp.eq.f32.partialorder %v4801_v53, %v1358_v40  ;;  %vm1544_vm14 = vcmp.eq.f32.partialorder %v4752_v39, %v1358_v40  ;;  %vm1575_vm11 = vcmp.eq.f32.partialorder %v4801_v53, %v1438_v15  ;;  %vm1576_vm1 = vcmp.eq.f32.partialorder %v4752_v39, %v1438_v15  ;;  %4037 = vxpose.xlu1.b32.cont [12/16] %v4036_v9, 128 }
 0x11a   : > { %v3586_v22 = vsel %vm1543_vm13, 1.0, %v6027_v56  ;;  %v5218_v3 = vsel %vm1544_vm14, 1.0, %v6027_v56  ;;  %v3618_v28 = vsel %vm1575_vm11, 1.0, %v6027_v56  ;;  %v5222_v36 = vsel %vm1576_vm1, 1.0, %v6027_v56  ;;  %3815 = vmatprep.subr.bf16.mxu0 %v6057_v5  ;;  %3769 = vmatpush1.bf16.msra.mxu1 %v3768_v42 }
 0x11b   : > { %6056 = vst [vmem:[#allocation21_spill] sm:$0xff] %v5218_v3  ;;  %v4038_v34 = vpack.i.bf16 %v3586_v22, %v3522_v1  ;;  %v3926_v9 = vpack.i.bf16 %v3618_v28, %v3554_v2  ;;  %v3739_v2 = vpop.f32.mrb[6].mxu1  ;;  %v826_v1 = vpop.f32.mrb[7].mxu0  ;;  %3770 = vmatprep.subr.bf16.mxu1 %v6057_v5 }
 0x11c   : > { %v1443_v56 = vpop.permute.xlu1 %1442  ;;  %v1283_v48 = vpop.permute.xlu0 %1282  ;;  %3817 = vmatpush1.bf16.msra.mxu0 %v3816_v59  ;;  %v3771_v40 = vpack.c.bf16 %v826_v1, %v823_v47 }
 0x11d   : > { %vm1577_vm12 = vcmp.eq.f32.partialorder %v4801_v53, %v1443_v56  ;;  %vm1578_vm10 = vcmp.eq.f32.partialorder %v4752_v39, %v1443_v56  ;;  %vm1513_vm8 = vcmp.eq.f32.partialorder %v4801_v53, %v1283_v48  ;;  %vm1514_vm4 = vcmp.eq.f32.partialorder %v4752_v39, %v1283_v48  ;;  %3927 = vxpose.xlu0.b32.cont [13/16] %v3926_v9, 128  ;;  %v954_v56 = vpop.f32.mrb[7].mxu1  ;;  %v5257_v42 = vpop.f32.mrb[8].mxu0 }
 0x11e   : > { %v3620_v22 = vsel %vm1577_vm12, 1.0, %v6058_v51  ;;  %v5242_v28 = vsel %vm1578_vm10, 1.0, %v6058_v51  ;;  %v3556_v15 = vsel %vm1513_vm8, 1.0, %v6058_v51  ;;  %v5246_v25 = vsel %vm1514_vm4, 1.0, %v6058_v51  ;;  %4039 = vxpose.xlu1.b32.cont [13/16] %v4038_v34, 128  ;;  %3818 = vmatprep.subr.bf16.mxu0 %v6057_v5  ;;  %v5267_v34 = vpop.f32.mrb[8].mxu1 }
 0x11f   : > { %6059 = vst [vmem:[#allocation22_spill] sm:$0xff] %v5246_v25  ;;  %v3928_v55 = vpack.i.bf16 %v3620_v22, %v3556_v15  ;;  %v3822_v9 = vpack.c.bf16 %v3739_v2, %v5224_v49  ;;  %v3819_v13 = vpack.c.bf16 %v954_v56, %v951_v33  ;;  %3772 = vmatpush1.bf16.msra.mxu1 %v3771_v40  ;;  %v967_v2 = vpop.f32.mrb[9].mxu1 }
 0x120   : > { %v1363_v52 = vpop.permute.xlu1 %1362  ;;  %v1203_v3 = vpop.permute.xlu0 %1202  ;;  %3773 = vmatprep.subr.bf16.mxu1 %v6057_v5 }
 0x121   : > { %vm1545_vm6 = vcmp.eq.f32.partialorder %v4801_v53, %v1363_v52  ;;  %vm1546_vm15 = vcmp.eq.f32.partialorder %v4752_v39, %v1363_v52  ;;  %vm1481_vm2 = vcmp.eq.f32.partialorder %v4801_v53, %v1203_v3  ;;  %vm1482_vm0 = vcmp.eq.f32.partialorder %v4752_v39, %v1203_v3  ;;  %3929 = vxpose.xlu0.b32.cont [14/16] %v3928_v55, 128  ;;  %v839_v52 = vpop.f32.mrb[9].mxu0 }
 0x122   : > { %v3588_v59 = vsel %vm1545_vm6, 1.0, %v6058_v51  ;;  %v5261_v49 = vsel %vm1546_vm15, 1.0, %v6058_v51  ;;  %v3524_v33 = vsel %vm1481_vm2, 1.0, %v6058_v51  ;;  %v5265_v47 = vsel %vm1482_vm0, 1.0, %v6058_v51  ;;  %3820 = vmatpush1.bf16.msra.mxu0 %v3819_v13  ;;  %v3711_v1 = vpop.f32.mrb[10].mxu0  ;;  %v3743_v13 = vpop.f32.mrb[10].mxu1 }
 0x123   : > { %6060 = vst [vmem:[#allocation23_spill] sm:$0xff] %v5261_v49  ;;  %6061 = vst [vmem:[#allocation24_spill] sm:$0xff] %v5265_v47  ;;  %v4040_v15 = vpack.i.bf16 %v3588_v59, %v3524_v33  ;;  %3821 = vmatprep.subr.bf16.mxu0 %v6057_v5  ;;  %v3780_v55 = vpack.c.bf16 %v3711_v1, %v5257_v42  ;;  %v842_v40 = vpop.f32.mrb[11].mxu0  ;;  %3775 = vmatpush1.bf16.msra.mxu1 %v3774_v37  ;;  %v970_v1 = vpop.f32.mrb[11].mxu1 }
 0x124   : > { %v1448_v22 = vpop.permute.xlu1 %1447  ;;  %v1288_v56 = vpop.permute.xlu0 %1287  ;;  %v3825_v25 = vpack.c.bf16 %v970_v1, %v967_v2  ;;  %3776 = vmatprep.subr.bf16.mxu1 %v6057_v5  ;;  %vm1562_vm2 = vcmp.eq.f32.partialorder %v4752_v39, %v4963_v29  ;;  %vm1498_vm0 = vcmp.eq.f32.partialorder %v4752_v39, %v4965_v31 }
 0x125   : > { %vm1579_vm3 = vcmp.eq.f32.partialorder %v4801_v53, %v1448_v22  ;;  %vm1580_vm5 = vcmp.eq.f32.partialorder %v4752_v39, %v1448_v22  ;;  %vm1515_vm7 = vcmp.eq.f32.partialorder %v4801_v53, %v1288_v56  ;;  %vm1516_vm9 = vcmp.eq.f32.partialorder %v4752_v39, %v1288_v56  ;;  %4041 = vxpose.xlu1.b32.cont [14/16] %v4040_v15, 128  ;;  %v5295_v37 = vpop.f32.mrb[12].mxu0  ;;  %v3746_v2 = vpop.f32.mrb[12].mxu1 }
 0x126   : > { %v3622_v59 = vsel %vm1579_vm3, 1.0, %v6058_v51  ;;  %v5280_v33 = vsel %vm1580_vm5, 1.0, %v6058_v51  ;;  %v3558_v3 = vsel %vm1515_vm7, 1.0, %v6058_v51  ;;  %v5284_v42 = vsel %vm1516_vm9, 1.0, %v6058_v51  ;;  %3823 = vmatpush1.bf16.msra.mxu0 %v3822_v9 }
 0x127   : > { %6062 = vst [vmem:[#allocation25_spill] sm:$0xff] %v5280_v33  ;;  %6063 = vst [vmem:[#allocation26_spill] sm:$0xff] %v5284_v42  ;;  %v3930_v22 = vpack.i.bf16 %v3622_v59, %v3558_v3  ;;  %v3828_v15 = vpack.c.bf16 %v3743_v13, %v5267_v34  ;;  %v3777_v56 = vpack.c.bf16 %v842_v40, %v839_v52  ;;  %3824 = vmatprep.subr.bf16.mxu0 %v6057_v5  ;;  %v983_v40 = vpop.f32.mrb[13].mxu1  ;;  %vm6118_vm7 = vcmask 64512  }
 0x128   : > { %v1368_v47 = vpop.permute.xlu1 %1367  ;;  %v1208_v49 = vpop.permute.xlu0 %1207  ;;  %v3541_v31 = vsel %vm1498_vm0, 1.0, %v6058_v51  ;;  %vm6119_vm9 = vmmov %vm6118_vm7 }
 0x129   : > { %vm1547_vm13 = vcmp.eq.f32.partialorder %v4801_v53, %v1368_v47  ;;  %vm1548_vm14 = vcmp.eq.f32.partialorder %v4752_v39, %v1368_v47  ;;  %vm1483_vm11 = vcmp.eq.f32.partialorder %v4801_v53, %v1208_v49  ;;  %vm1484_vm1 = vcmp.eq.f32.partialorder %v4752_v39, %v1208_v49  ;;  %3931 = vxpose.xlu0.b32.cont [15/16] %v3930_v22, 128  ;;  %v855_v47 = vpop.f32.mrb[13].mxu0 }
 0x12a   : > { %v3590_v9 = vsel %vm1547_vm13, 1.0, %v6058_v51  ;;  %v5299_v34 = vsel %vm1548_vm14, 1.0, %v6058_v51  ;;  %v3526_v52 = vsel %vm1483_vm11, 1.0, %v6058_v51  ;;  %v5303_v3 = vsel %vm1484_vm1, 1.0, %v6058_v51  ;;  %3778 = vmatpush1.bf16.msra.mxu1 %v3777_v56  ;;  %3826 = vmatpush1.bf16.msra.mxu0 %v3825_v25  ;;  %v3715_v59 = vpop.f32.mrb[14].mxu0  ;;  %v3747_v25 = vpop.f32.mrb[14].mxu1  ;;  %vm6120_vm13 = vmmov %vm6118_vm7 }
 0x12b   : > { %6064 = vst [vmem:[#allocation27_spill] sm:$0xff] %v5299_v34  ;;  %6065 = vst [vmem:[#allocation28_spill] sm:$0xff] %v5303_v3  ;;  %v4042_v13 = vpack.i.bf16 %v3590_v9, %v3526_v52  ;;  %3779 = vmatprep.subr.bf16.mxu1 %v6057_v5  ;;  %3827 = vmatprep.subr.bf16.mxu0 %v6057_v5  ;;  %v3786_v48 = vpack.c.bf16 %v3715_v59, %v5295_v37  ;;  %v858_v56 = vpop.f32.mrb[15].mxu0  ;;  %v986_v59 = vpop.f32.mrb[15].mxu1 }
 0x12c   : > { %v1453_v1 = vpop.permute.xlu1 %1452  ;;  %v1293_v22 = vpop.permute.xlu0 %1292  ;;  %v3831_v33 = vpack.c.bf16 %v986_v59, %v983_v40  ;;  %vm6121_vm14 = vmmov %vm6118_vm7 }
 0x12d   : > { %vm1581_vm12 = vcmp.eq.f32.partialorder %v4801_v53, %v1453_v1  ;;  %vm1582_vm10 = vcmp.eq.f32.partialorder %v4752_v39, %v1453_v1  ;;  %vm1517_vm8 = vcmp.eq.f32.partialorder %v4801_v53, %v1293_v22  ;;  %vm1518_vm4 = vcmp.eq.f32.partialorder %v4752_v39, %v1293_v22  ;;  %4043 = vxpose.xlu1.b32.cont [15/16] %v4042_v13, 128  ;;  %vm6122_vm11 = vmmov %vm6118_vm7 }
 0x12e   : > { %v3624_v9 = vsel %vm1581_vm12, 1.0, %v6058_v51  ;;  %v5316_v52 = vsel %vm1582_vm10, 1.0, %v6058_v51  ;;  %v3560_v49 = vsel %vm1517_vm8, 1.0, %v6058_v51  ;;  %v5320_v37 = vsel %vm1518_vm4, 1.0, %v6058_v51  ;;  %3781 = vmatpush1.bf16.msra.mxu1 %v3780_v55  ;;  %3829 = vmatpush1.bf16.msra.mxu0 %v3828_v15  ;;  %v3718_v55 = vpop.f32.mrb[16].mxu0  ;;  %vm6123_vm1 = vmmov %vm6118_vm7 }
 0x12f   : > { %6066 = vst [vmem:[#allocation29_spill] sm:$0xff] %v5320_v37  ;;  %v3932_v1 = vpack.i.bf16 %v3624_v9, %v3560_v49  ;;  %v3834_v22 = vpack.c.bf16 %v3747_v25, %v3746_v2  ;;  %v3783_v13 = vpack.c.bf16 %v858_v56, %v855_v47  ;;  %3782 = vmatprep.subr.bf16.mxu1 %v6057_v5  ;;  %v3750_v47 = vpop.f32.mrb[16].mxu1  ;;  %v871_v49 = vpop.f32.mrb[17].mxu0  ;;  %vm6124_vm12 = vmmov %vm6123_vm1 }
 0x130   : > { %v5324_v34 = vpop.permute.xlu1 %1372  ;;  %v5326_v42 = vpop.permute.xlu0 %1212  ;;  %3830 = vmatprep.subr.bf16.mxu0 %v6057_v5  ;;  %vm6125_vm10 = vmmov %vm6123_vm1 }
 0x131   : > { %vm1549_vm6 = vcmp.eq.f32.partialorder %v4801_v53, %v5324_v34  ;;  %vm1485_vm15 = vcmp.eq.f32.partialorder %v4801_v53, %v5326_v42  ;;  %3933 = vxpose.xlu0.b32.end [16/16] %v3932_v1, 128  ;;  %v999_v25 = vpop.f32.mrb[17].mxu1  ;;  %v3719_v56 = vpop.f32.mrb[18].mxu0  ;;  %v6067_v1 = vpack.i.bf16 %v4827_v0, %v4820_v61  ;;  %vm1550_vm3 = vcmp.eq.f32.partialorder %v4752_v39, %v5324_v34  ;;  %vm6126_vm8 = vmmov %vm6123_vm1 }
 0x132   : > { %v3592_v15 = vsel %vm1549_vm6, 1.0, %v6058_v51  ;;  %v3528_v2 = vsel %vm1485_vm15, 1.0, %v6058_v51  ;;  %3784 = vmatpush1.bf16.msra.mxu1 %v3783_v13  ;;  %3832 = vmatpush1.bf16.msra.mxu0 %v3831_v33  ;;  %v3792_v9 = vpack.c.bf16 %v3719_v56, %v3718_v55  ;;  %v3751_v59 = vpop.f32.mrb[18].mxu1  ;;  %v874_v53 = vpop.f32.mrb[19].mxu0  ;;  %v6068_v33 = vpack.i.bf16 %v4841_v8, %v4845_v10  ;;  %v6115_v34 = vld [vmem:[#allocation27_spill] sm:$0xff]  ;;  %vm6127_vm4 = vmmov %vm6123_vm1 }
 0x133   : > { %v4044_v40 = vpack.i.bf16 %v3592_v15, %v3528_v2  ;;  %3785 = vmatprep.subr.bf16.mxu1 %v6057_v5  ;;  %3833 = vmatprep.subr.bf16.mxu0 %v6057_v5  ;;  %v3840_v3 = vpack.c.bf16 %v3751_v59, %v3750_v47  ;;  %v3789_v13 = vpack.c.bf16 %v874_v53, %v871_v49  ;;  %v1002_v37 = vpop.f32.mrb[19].mxu1  ;;  %vm6128_vm6 = vmmov %vm6123_vm1 }
 0x134   : > { %v3837_v15 = vpack.c.bf16 %v1002_v37, %v999_v25  ;;  %v6069_v55 = vpack.i.bf16 %v4823_v62, %v4812_v57  ;;  %v6070_v8 = vpack.i.bf16 %v4895_v32, %v4883_v26  ;;  %v6071_v57 = vpack.i.bf16 %v4867_v20, %v4863_v18  ;;  %vm6129_vm15 = vmmov %vm6123_vm1 }
 0x135   : > { %4045 = vxpose.xlu1.b32.end [16/16] %v4044_v40, 128  ;;  %4127 = vxpose.xlu0.b32.start [1/16] %v6067_v1, 128  ;;  %v3722_v61 = vpop.f32.mrb[20].mxu0  ;;  %v3754_v0 = vpop.f32.mrb[20].mxu1  ;;  %v6072_v18 = vpack.i.bf16 %v4907_v41, %v4911_v54  ;;  %v6073_v20 = vpack.i.bf16 %v4891_v30, %v4879_v24  ;;  %v6074_v24 = vpack.i.bf16 %v4957_v21, %v4945_v14  ;;  %vm6131_vm0 = vmmov %vm6123_vm1 }
 0x136   : > { %3787 = vmatpush1.bf16.msra.mxu1 %v3786_v48  ;;  %3835 = vmatpush1.bf16.msra.mxu0 %v3834_v22  ;;  %v887_v2 = vpop.f32.mrb[21].mxu0  ;;  %v1015_v48 = vpop.f32.mrb[21].mxu1  ;;  %v6075_v30 = vpack.i.bf16 %v4932_v6, %v4928_v4  ;;  %v6076_v14 = vpack.i.bf16 %v4953_v17, %v4941_v12  ;;  %v6078_v12 = vpack.i.bf16 %v4990_v63, %v4986_v58 }
 0x137   : > { %3788 = vmatprep.subr.bf16.mxu1 %v6057_v5  ;;  %3836 = vmatprep.subr.bf16.mxu0 %v6057_v5  ;;  %v3723_v37 = vpop.f32.mrb[22].mxu0  ;;  %v3755_v47 = vpop.f32.mrb[22].mxu1  ;;  %v6081_v58 = vpack.i.bf16 %v5077_v44, %v5065_v16  ;;  %v6082_v63 = vpack.i.bf16 %v5052_v38, %v5048_v27  ;;  %v6089_v44 = vld [vmem:[#allocation9_spill] sm:$0xff]  ;;  %v6091_v27 = vld [vmem:[#allocation15_spill] sm:$0xff]  ;;  %v6092_v38 = vld [vmem:[#allocation16_spill] sm:$0xff]  ;;  %vm1486_vm5 = vcmp.eq.f32.partialorder %v4752_v39, %v5326_v42 }
 0x138   : > { %v3798_v22 = vpack.c.bf16 %v3723_v37, %v3722_v61  ;;  %v890_v49 = vpop.f32.mrb[23].mxu0  ;;  %v3846_v62 = vpack.c.bf16 %v3755_v47, %v3754_v0  ;;  %v1018_v40 = vpop.f32.mrb[23].mxu1  ;;  %v6077_v37 = vpack.i.bf16 %v5015_v23, %v5003_v43  ;;  %v6080_v43 = vpack.i.bf16 %v5011_v46, %v4999_v11  ;;  %v6085_v23 = vld [vmem:[#allocation14_spill] sm:$0xff] }
 0x139   : > { %4129 = vxpose.xlu0.b32.cont [2/16] %v6068_v33, 128  ;;  %4239 = vxpose.xlu1.b32.start [1/16] %v6069_v55, 128  ;;  %v3795_v10 = vpack.c.bf16 %v890_v49, %v887_v2  ;;  %v3843_v25 = vpack.c.bf16 %v1018_v40, %v1015_v48  ;;  %v6083_v11 = vpack.i.bf16 %v5089_v50, %v5093_v35  ;;  %v6097_v35 = vld [vmem:[#allocation20_spill] sm:$0xff]  ;;  %v6100_v40 = vld [vmem:[#allocation17_spill] sm:$0xff] }
 0x13a   : > { %3790 = vmatpush1.bf16.msra.mxu1 %v3789_v13  ;;  %3838 = vmatpush1.bf16.msra.mxu0 %v3837_v15  ;;  %v6084_v46 = vpack.i.bf16 %v5073_v19, %v5061_v45  ;;  %v6098_v45 = vpack.i.bf16 %v5222_v36, %v6097_v35  ;;  %v6099_v19 = vld [vmem:[#allocation18_spill] sm:$0xff]  ;;  %v6107_v36 = vld [vmem:[#allocation25_spill] sm:$0xff] }
 0x13b   : > { %3791 = vmatprep.subr.bf16.mxu1 %v6057_v5  ;;  %3839 = vmatprep.subr.bf16.mxu0 %v6057_v5 }
 0x13d   : > { %4131 = vxpose.xlu0.b32.cont [3/16] %v6070_v8, 128  ;;  %4241 = vxpose.xlu1.b32.cont [2/16] %v6071_v57, 128  ;;  %v3726_v26 = vpop.f32.mrb[24].mxu0  ;;  %v3758_v32 = vpop.f32.mrb[24].mxu1  ;;  %v6079_v8 = vpack.i.bf16 %v5027_v60, %v5031_v7  ;;  %v6088_v7 = vld [vmem:[#allocation10_spill] sm:$0xff]  ;;  %v6093_v57 = vpack.i.bf16 %v6091_v27, %v6092_v38 }
 0x13e   : > { %3793 = vmatpush1.bf16.msra.mxu1 %v3792_v9  ;;  %3841 = vmatpush1.bf16.msra.mxu0 %v3840_v3  ;;  %v903_v3 = vpop.f32.mrb[25].mxu0  ;;  %v1031_v56 = vpop.f32.mrb[25].mxu1  ;;  %v3605_v9 = vsel %vm1562_vm2, 1.0, %v6058_v51  ;;  %v6090_v16 = vpack.i.bf16 %v6088_v7, %v6089_v44  ;;  %vm6130_vm2 = vmmov %vm6123_vm1 }
 0x13f   : > { %3794 = vmatprep.subr.bf16.mxu1 %v6057_v5  ;;  %3842 = vmatprep.subr.bf16.mxu0 %v6057_v5  ;;  %v3727_v29 = vpop.f32.mrb[26].mxu0  ;;  %v3759_v54 = vpop.f32.mrb[26].mxu1  ;;  %v4136_v33 = vpack.i.bf16 %v3605_v9, %v3541_v31  ;;  %v6110_v9 = vld [vmem:[#allocation23_spill] sm:$0xff]  ;;  %v6111_v31 = vld [vmem:[#allocation24_spill] sm:$0xff] }
 0x140   : > { %v3804_v41 = vpack.c.bf16 %v3727_v29, %v3726_v26  ;;  %v906_v59 = vpop.f32.mrb[27].mxu0  ;;  %v3852_v53 = vpack.c.bf16 %v3759_v54, %v3758_v32  ;;  %v1034_v13 = vpop.f32.mrb[27].mxu1  ;;  %v6104_v26 = vld [vmem:[#allocation21_spill] sm:$0xff]  ;;  %v6105_v32 = vld [vmem:[#allocation19_spill] sm:$0xff]  ;;  %v3529_v54 = vsel %vm1486_vm5, 1.0, %v6058_v51  ;;  %vm6133_vm5 = vmmov %vm6131_vm0 }
 0x141   : > { %4133 = vxpose.xlu0.b32.cont [4/16] %v6072_v18, 128  ;;  %4243 = vxpose.xlu1.b32.cont [3/16] %v6073_v20, 128  ;;  %v3801_v1 = vpack.c.bf16 %v906_v59, %v903_v3  ;;  %v3849_v15 = vpack.c.bf16 %v1034_v13, %v1031_v56  ;;  %v6102_v18 = vld [vmem:[#allocation22_spill] sm:$0xff]  ;;  %v6106_v3 = vpack.i.bf16 %v6104_v26, %v6105_v32  ;;  %v6113_v59 = vld [vmem:[#allocation29_spill] sm:$0xff] }
 0x142   : > { %3796 = vmatpush1.bf16.msra.mxu1 %v3795_v10  ;;  %3844 = vmatpush1.bf16.msra.mxu0 %v3843_v25  ;;  %v6095_v10 = vld [vmem:[#allocation11_spill] sm:$0xff]  ;;  %v6101_v25 = vpack.i.bf16 %v6099_v19, %v6100_v40  ;;  %v6103_v20 = vpack.i.bf16 %v5242_v28, %v6102_v18  ;;  %v6108_v56 = vld [vmem:[#allocation26_spill] sm:$0xff]  ;;  %v3593_v28 = vsel %vm1550_vm3, 1.0, %v6058_v51  ;;  %vm6132_vm3 = vmmov %vm6131_vm0 }
 0x143   : > { %3797 = vmatprep.subr.bf16.mxu1 %v6057_v5  ;;  %3845 = vmatprep.subr.bf16.mxu0 %v6057_v5  ;;  %v6109_v29 = vpack.i.bf16 %v6107_v36, %v6108_v56  ;;  %v4268_v39 = vpack.i.bf16 %v3593_v28, %v3529_v54 }
 0x145   : > { %4135 = vxpose.xlu0.b32.cont [5/16] %v6074_v24, 128  ;;  %4245 = vxpose.xlu1.b32.cont [4/16] %v6075_v30, 128  ;;  %v3730_v21 = vpop.f32.mrb[28].mxu0  ;;  %v3762_v4 = vpop.f32.mrb[28].mxu1  ;;  %v6114_v24 = vpack.i.bf16 %v5316_v52, %v6113_v59  ;;  %v6116_v30 = vld [vmem:[#allocation28_spill] sm:$0xff] }
 0x146   : > { %3799 = vmatpush1.bf16.msra.mxu1 %v3798_v22  ;;  %3847 = vmatpush1.bf16.msra.mxu0 %v3846_v62  ;;  %v919_v6 = vpop.f32.mrb[29].mxu0  ;;  %v1047_v55 = vpop.f32.mrb[29].mxu1  ;;  %v6094_v62 = vld [vmem:[#allocation13_spill] sm:$0xff] }
 0x147   : > { %3800 = vmatprep.subr.bf16.mxu1 %v6057_v5  ;;  %3848 = vmatprep.subr.bf16.mxu0 %v6057_v5  ;;  %v3731_v61 = vpop.f32.mrb[30].mxu0  ;;  %v3763_v2 = vpop.f32.mrb[30].mxu1  ;;  %v6096_v50 = vpack.i.bf16 %v6094_v62, %v6095_v10 }
 0x148   : > { %v3810_v0 = vpack.c.bf16 %v3731_v61, %v3730_v21  ;;  %v922_v48 = vpop.f32.mrb[31].mxu0  ;;  %v3858_v17 = vpack.c.bf16 %v3763_v2, %v3762_v4  ;;  %v1050_v47 = vpop.f32.mrb[31].mxu1 }
 0x149   : > { %4137 = vxpose.xlu0.b32.cont [6/16] %v4136_v33, 128  ;;  %4247 = vxpose.xlu1.b32.cont [5/16] %v6076_v14, 128  ;;  %v3807_v22 = vpack.c.bf16 %v922_v48, %v919_v6  ;;  %v3855_v49 = vpack.c.bf16 %v1050_v47, %v1047_v55 }
 0x14a   : > { %3802 = vmatpush1.bf16.msra.mxu1 %v3801_v1  ;;  %3850 = vmatpush1.bf16.msra.mxu0 %v3849_v15 }
 0x14b   : > { %3803 = vmatprep.subr.bf16.mxu1 %v6057_v5  ;;  %3851 = vmatprep.subr.bf16.mxu0 %v6057_v5 }
 0x14d   : > { %4139 = vxpose.xlu0.b32.cont [7/16] %v6077_v37, 128  ;;  %4249 = vxpose.xlu1.b32.cont [6/16] %v6078_v12, 128 }
 0x14e   : > { %3805 = vmatpush1.bf16.msra.mxu1 %v3804_v41  ;;  %3853 = vmatpush1.bf16.msra.mxu0 %v3852_v53  ;;  %v6112_v41 = vpack.i.bf16 %v6110_v9, %v6111_v31  ;;  %v6117_v53 = vpack.i.bf16 %v6115_v34, %v6116_v30 }
 0x14f   : > { %3806 = vmatprep.subr.bf16.mxu1 %v6057_v5  ;;  %3854 = vmatprep.subr.bf16.mxu0 %v6057_v5 }
 0x151   : > { %4141 = vxpose.xlu0.b32.cont [8/16] %v6079_v8, 128  ;;  %4251 = vxpose.xlu1.b32.cont [7/16] %v6080_v43, 128 }
 0x152   : > { %3808 = vmatpush1.bf16.msra.mxu1 %v3807_v22  ;;  %3856 = vmatpush1.bf16.msra.mxu0 %v3855_v49 }
 0x153   : > { %3809 = vmatprep.subr.bf16.mxu1 %v6057_v5  ;;  %3857 = vmatprep.subr.bf16.mxu0 %v6057_v5  ;;  %v6086_v5 = vld [vmem:[#allocation12_spill] sm:$0xff] }
 0x154   : > { %v6087_v60 = vpack.i.bf16 %v6085_v23, %v6086_v5 }
 0x155   : > { %4143 = vxpose.xlu0.b32.cont [9/16] %v6081_v58, 128  ;;  %4253 = vxpose.xlu1.b32.cont [8/16] %v6082_v63, 128 }
 0x156   : > { %3811 = vmatpush1.bf16.msra.mxu1 %v3810_v0  ;;  %3859 = vmatpush1.bf16.msra.mxu0 %v3858_v17 }
 0x159   : > { %4145 = vxpose.xlu0.b32.cont [10/16] %v6083_v11, 128  ;;  %4255 = vxpose.xlu1.b32.cont [9/16] %v6084_v46, 128 }
 0x15d   : > { %4147 = vxpose.xlu0.b32.cont [11/16] %v6087_v60, 128  ;;  %4257 = vxpose.xlu1.b32.cont [10/16] %v6090_v16, 128 }
 0x161   : > { %4149 = vxpose.xlu0.b32.cont [12/16] %v6093_v57, 128  ;;  %4259 = vxpose.xlu1.b32.cont [11/16] %v6096_v50, 128 }
 0x165   : > { %4151 = vxpose.xlu0.b32.cont [13/16] %v6098_v45, 128  ;;  %4261 = vxpose.xlu1.b32.cont [12/16] %v6101_v25, 128 }
 0x169   : > { %4153 = vxpose.xlu0.b32.cont [14/16] %v6103_v20, 128  ;;  %4263 = vxpose.xlu1.b32.cont [13/16] %v6106_v3, 128 }
 0x16d   : > { %4155 = vxpose.xlu0.b32.cont [15/16] %v6109_v29, 128  ;;  %4265 = vxpose.xlu1.b32.cont [14/16] %v6112_v41, 128 }
 0x171   : > { %4157 = vxpose.xlu0.b32.end [16/16] %v6114_v24, 128  ;;  %4267 = vxpose.xlu1.b32.cont [15/16] %v6117_v53, 128 }
 0x175   : > { %4269 = vxpose.xlu1.b32.end [16/16] %v4268_v39, 128  ;;  %v3934_v42 = vpop.trf.xlu0 }
 0x176   : > { %v3935_v1 = vunpack.i.l.bf16 %v3934_v42  ;;  %v3938_v13 = vunpack.i.h.bf16 %v3934_v42 }
 0x178   : > { %2191 = vmatprep.mubr.f32.mxu1 %v3935_v1  ;;  %2416 = vmatprep.mubr.f32.mxu0 %v3938_v13 }
 0x179   : > { %v4046_v15 = vpop.trf.xlu1  ;;  %v3939_v33 = vpop.trf.xlu0 }
 0x17a   : > { %v4050_v14 = vunpack.i.h.bf16 %v4046_v15  ;;  %v4047_v21 = vunpack.i.l.bf16 %v4046_v15  ;;  %v3940_v51 = vunpack.i.l.bf16 %v3939_v33  ;;  %v3943_v4 = vunpack.i.h.bf16 %v3939_v33 }
 0x17c   : > { %2192 = vmatmul.mubr.f32.vlgmr.msra.gmra.mrb[32].mxu1 %v4047_v21  ;;  %2417 = vmatmul.mubr.f32.vlgmr.msra.gmra.mrb[32].mxu0 %v4050_v14 }
 0x17d   : > { %v4051_v52 = vpop.trf.xlu1  ;;  %2196 = vmatprep.mubr.f32.mxu1 %v3940_v51  ;;  %2421 = vmatprep.mubr.f32.mxu0 %v3943_v4  ;;  %v3944_v6 = vpop.trf.xlu0 }
 0x17e   : > { %v4052_v55 = vunpack.i.l.bf16 %v4051_v52  ;;  %v4055_v61 = vunpack.i.h.bf16 %v4051_v52  ;;  %v3945_v0 = vunpack.i.l.bf16 %v3944_v6  ;;  %v3948_v2 = vunpack.i.h.bf16 %v3944_v6 }
 0x180   : > { %2197 = vmatmul.mubr.f32.gmra.mrb[34].mxu1 %v4052_v55  ;;  %2422 = vmatmul.mubr.f32.gmra.mrb[34].mxu0 %v4055_v61 }
 0x181   : > { %v4056_v48 = vpop.trf.xlu1  ;;  %v3949_v37 = vpop.trf.xlu0  ;;  %2201 = vmatprep.mubr.f32.mxu1 %v3945_v0  ;;  %2426 = vmatprep.mubr.f32.mxu0 %v3948_v2 }
 0x182   : > { %v4057_v12 = vunpack.i.l.bf16 %v4056_v48  ;;  %v4060_v17 = vunpack.i.h.bf16 %v4056_v48  ;;  %v3950_v22 = vunpack.i.l.bf16 %v3949_v37  ;;  %v3953_v47 = vunpack.i.h.bf16 %v3949_v37 }
 0x184   : > { %2202 = vmatmul.mubr.f32.gmra.mrb[36].mxu1 %v4057_v12  ;;  %2427 = vmatmul.mubr.f32.gmra.mrb[36].mxu0 %v4060_v17 }
 0x185   : > { %v4061_v49 = vpop.trf.xlu1  ;;  %v3954_v8 = vpop.trf.xlu0  ;;  %2206 = vmatprep.mubr.f32.mxu1 %v3950_v22  ;;  %2431 = vmatprep.mubr.f32.mxu0 %v3953_v47 }
 0x186   : > { %v4062_v43 = vunpack.i.l.bf16 %v4061_v49  ;;  %v4065_v58 = vunpack.i.h.bf16 %v4061_v49  ;;  %v3955_v63 = vunpack.i.l.bf16 %v3954_v8  ;;  %v3958_v11 = vunpack.i.h.bf16 %v3954_v8 }
 0x188   : > { %2207 = vmatmul.mubr.f32.gmra.mrb[38].mxu1 %v4062_v43  ;;  %2432 = vmatmul.mubr.f32.gmra.mrb[38].mxu0 %v4065_v58 }
 0x189   : > { %v4066_v46 = vpop.trf.xlu1  ;;  %v3959_v23 = vpop.trf.xlu0  ;;  %2211 = vmatprep.mubr.f32.mxu1 %v3955_v63  ;;  %2436 = vmatprep.mubr.f32.mxu0 %v3958_v11 }
 0x18a   : > { %v4067_v5 = vunpack.i.l.bf16 %v4066_v46  ;;  %v4070_v60 = vunpack.i.h.bf16 %v4066_v46  ;;  %v3960_v7 = vunpack.i.l.bf16 %v3959_v23  ;;  %v3963_v44 = vunpack.i.h.bf16 %v3959_v23 }
 0x18c   : > { %2212 = vmatmul.mubr.f32.gmra.mrb[40].mxu1 %v4067_v5  ;;  %2437 = vmatmul.mubr.f32.gmra.mrb[40].mxu0 %v4070_v60 }
 0x18d   : > { %v4071_v16 = vpop.trf.xlu1  ;;  %v3964_v27 = vpop.trf.xlu0  ;;  %2216 = vmatprep.mubr.f32.mxu1 %v3960_v7  ;;  %2441 = vmatprep.mubr.f32.mxu0 %v3963_v44 }
 0x18e   : > { %v4072_v38 = vunpack.i.l.bf16 %v4071_v16  ;;  %v4075_v57 = vunpack.i.h.bf16 %v4071_v16  ;;  %v3965_v62 = vunpack.i.l.bf16 %v3964_v27  ;;  %v3968_v10 = vunpack.i.h.bf16 %v3964_v27 }
 0x190   : > { %2217 = vmatmul.mubr.f32.gmra.mrb[42].mxu1 %v4072_v38  ;;  %2442 = vmatmul.mubr.f32.gmra.mrb[42].mxu0 %v4075_v57 }
 0x191   : > { %v4076_v50 = vpop.trf.xlu1  ;;  %v3969_v35 = vpop.trf.xlu0  ;;  %2221 = vmatprep.mubr.f32.mxu1 %v3965_v62  ;;  %2446 = vmatprep.mubr.f32.mxu0 %v3968_v10 }
 0x192   : > { %v4077_v45 = vunpack.i.l.bf16 %v4076_v50  ;;  %v4080_v19 = vunpack.i.h.bf16 %v4076_v50  ;;  %v3970_v40 = vunpack.i.l.bf16 %v3969_v35  ;;  %v3973_v25 = vunpack.i.h.bf16 %v3969_v35 }
 0x194   : > { %2222 = vmatmul.mubr.f32.gmra.mrb[44].mxu1 %v4077_v45  ;;  %2447 = vmatmul.mubr.f32.gmra.mrb[44].mxu0 %v4080_v19 }
 0x195   : > { %v4081_v18 = vpop.trf.xlu1  ;;  %v3974_v20 = vpop.trf.xlu0  ;;  %2226 = vmatprep.mubr.f32.mxu1 %v3970_v40  ;;  %2451 = vmatprep.mubr.f32.mxu0 %v3973_v25 }
 0x196   : > { %v4082_v26 = vunpack.i.l.bf16 %v4081_v18  ;;  %v4085_v32 = vunpack.i.h.bf16 %v4081_v18  ;;  %v3975_v3 = vunpack.i.l.bf16 %v3974_v20  ;;  %v3978_v36 = vunpack.i.h.bf16 %v3974_v20 }
 0x198   : > { %2227 = vmatmul.mubr.f32.gmra.mrb[46].mxu1 %v4082_v26  ;;  %2452 = vmatmul.mubr.f32.gmra.mrb[46].mxu0 %v4085_v32 }
 0x199   : > { %v4086_v56 = vpop.trf.xlu1  ;;  %v3979_v29 = vpop.trf.xlu0  ;;  %2231 = vmatprep.mubr.f32.mxu1 %v3975_v3  ;;  %2456 = vmatprep.mubr.f32.mxu0 %v3978_v36 }
 0x19a   : > { %v4087_v9 = vunpack.i.l.bf16 %v4086_v56  ;;  %v4090_v31 = vunpack.i.h.bf16 %v4086_v56  ;;  %v3980_v41 = vunpack.i.l.bf16 %v3979_v29  ;;  %v3983_v28 = vunpack.i.h.bf16 %v3979_v29 }
 0x19c   : > { %2232 = vmatmul.mubr.f32.gmra.mrb[48].mxu1 %v4087_v9  ;;  %2457 = vmatmul.mubr.f32.gmra.mrb[48].mxu0 %v4090_v31 }
 0x19d   : > { %v4091_v54 = vpop.trf.xlu1  ;;  %v3984_v59 = vpop.trf.xlu0  ;;  %2236 = vmatprep.mubr.f32.mxu1 %v3980_v41  ;;  %2461 = vmatprep.mubr.f32.mxu0 %v3983_v28 }
 0x19e   : > { %v4092_v24 = vunpack.i.l.bf16 %v4091_v54  ;;  %v4095_v34 = vunpack.i.h.bf16 %v4091_v54  ;;  %v3985_v30 = vunpack.i.l.bf16 %v3984_v59  ;;  %v3988_v53 = vunpack.i.h.bf16 %v3984_v59 }
 0x1a0   : > { %2237 = vmatmul.mubr.f32.gmra.mrb[50].mxu1 %v4092_v24  ;;  %2462 = vmatmul.mubr.f32.gmra.mrb[50].mxu0 %v4095_v34 }
 0x1a1   : > { %v4096_v39 = vpop.trf.xlu1  ;;  %v3989_v42 = vpop.trf.xlu0  ;;  %2241 = vmatprep.mubr.f32.mxu1 %v3985_v30  ;;  %2466 = vmatprep.mubr.f32.mxu0 %v3988_v53 }
 0x1a2   : > { %v4097_v1 = vunpack.i.l.bf16 %v4096_v39  ;;  %v4100_v13 = vunpack.i.h.bf16 %v4096_v39  ;;  %v3990_v15 = vunpack.i.l.bf16 %v3989_v42  ;;  %v3993_v33 = vunpack.i.h.bf16 %v3989_v42 }
 0x1a4   : > { %2242 = vmatmul.mubr.f32.gmra.mrb[52].mxu1 %v4097_v1  ;;  %2467 = vmatmul.mubr.f32.gmra.mrb[52].mxu0 %v4100_v13 }
 0x1a5   : > { %v4101_v14 = vpop.trf.xlu1  ;;  %v3994_v21 = vpop.trf.xlu0  ;;  %2246 = vmatprep.mubr.f32.mxu1 %v3990_v15  ;;  %2471 = vmatprep.mubr.f32.mxu0 %v3993_v33 }
 0x1a6   : > { %v4102_v51 = vunpack.i.l.bf16 %v4101_v14  ;;  %v4105_v4 = vunpack.i.h.bf16 %v4101_v14  ;;  %v3995_v52 = vunpack.i.l.bf16 %v3994_v21  ;;  %v3998_v6 = vunpack.i.h.bf16 %v3994_v21 }
 0x1a8   : > { %2247 = vmatmul.mubr.f32.gmra.mrb[54].mxu1 %v4102_v51  ;;  %2472 = vmatmul.mubr.f32.gmra.mrb[54].mxu0 %v4105_v4 }
 0x1a9   : > { %v4106_v55 = vpop.trf.xlu1  ;;  %v3999_v61 = vpop.trf.xlu0  ;;  %2251 = vmatprep.mubr.f32.mxu1 %v3995_v52  ;;  %2476 = vmatprep.mubr.f32.mxu0 %v3998_v6 }
 0x1aa   : > { %v4107_v0 = vunpack.i.l.bf16 %v4106_v55  ;;  %v4110_v2 = vunpack.i.h.bf16 %v4106_v55  ;;  %v4000_v48 = vunpack.i.l.bf16 %v3999_v61  ;;  %v4003_v37 = vunpack.i.h.bf16 %v3999_v61 }
 0x1ac   : > { %2252 = vmatmul.mubr.f32.gmra.mrb[56].mxu1 %v4107_v0  ;;  %2477 = vmatmul.mubr.f32.gmra.mrb[56].mxu0 %v4110_v2 }
 0x1ad   : > { %v4111_v12 = vpop.trf.xlu1  ;;  %v4004_v17 = vpop.trf.xlu0  ;;  %2256 = vmatprep.mubr.f32.mxu1 %v4000_v48  ;;  %2481 = vmatprep.mubr.f32.mxu0 %v4003_v37 }
 0x1ae   : > { %v4112_v22 = vunpack.i.l.bf16 %v4111_v12  ;;  %v4115_v47 = vunpack.i.h.bf16 %v4111_v12  ;;  %v4005_v49 = vunpack.i.l.bf16 %v4004_v17  ;;  %v4008_v8 = vunpack.i.h.bf16 %v4004_v17 }
 0x1b0   : > { %2257 = vmatmul.mubr.f32.gmra.mrb[58].mxu1 %v4112_v22  ;;  %2482 = vmatmul.mubr.f32.gmra.mrb[58].mxu0 %v4115_v47 }
 0x1b1   : > { %v4116_v43 = vpop.trf.xlu1  ;;  %v4009_v58 = vpop.trf.xlu0  ;;  %2261 = vmatprep.mubr.f32.mxu1 %v4005_v49  ;;  %2486 = vmatprep.mubr.f32.mxu0 %v4008_v8 }
 0x1b2   : > { %v4117_v63 = vunpack.i.l.bf16 %v4116_v43  ;;  %v4120_v11 = vunpack.i.h.bf16 %v4116_v43  ;;  %v4010_v46 = vunpack.i.l.bf16 %v4009_v58  ;;  %v4013_v23 = vunpack.i.h.bf16 %v4009_v58 }
 0x1b4   : > { %2262 = vmatmul.mubr.f32.gmra.mrb[60].mxu1 %v4117_v63  ;;  %2487 = vmatmul.mubr.f32.gmra.mrb[60].mxu0 %v4120_v11 }
 0x1b5   : > { %v4121_v5 = vpop.trf.xlu1  ;;  %v4158_v60 = vpop.trf.xlu0  ;;  %2266 = vmatprep.mubr.f32.mxu1 %v4010_v46  ;;  %2491 = vmatprep.mubr.f32.mxu0 %v4013_v23 }
 0x1b6   : > { %v4122_v7 = vunpack.i.l.bf16 %v4121_v5  ;;  %v4125_v44 = vunpack.i.h.bf16 %v4121_v5  ;;  %v4159_v16 = vunpack.i.l.bf16 %v4158_v60  ;;  %v4162_v27 = vunpack.i.h.bf16 %v4158_v60 }
 0x1b8   : > { %2267 = vmatmul.mubr.f32.gmra.mrb[62].mxu1 %v4122_v7  ;;  %2492 = vmatmul.mubr.f32.gmra.mrb[62].mxu0 %v4125_v44 }
 0x1b9   : > { %v4270_v38 = vpop.trf.xlu1  ;;  %v4163_v57 = vpop.trf.xlu0  ;;  %2271 = vmatprep.mubr.f32.mxu1 %v4159_v16  ;;  %2496 = vmatprep.mubr.f32.mxu0 %v4162_v27 }
 0x1ba   : > { %v4271_v62 = vunpack.i.l.bf16 %v4270_v38  ;;  %v4274_v10 = vunpack.i.h.bf16 %v4270_v38  ;;  %v4164_v50 = vunpack.i.l.bf16 %v4163_v57  ;;  %v4167_v35 = vunpack.i.h.bf16 %v4163_v57 }
 0x1bc   : > { %2272 = vmatmul.mubr.f32.gmra.mrb[64].mxu1 %v4271_v62  ;;  %2497 = vmatmul.mubr.f32.gmra.mrb[64].mxu0 %v4274_v10 }
 0x1bd   : > { %v4275_v45 = vpop.trf.xlu1  ;;  %v4168_v19 = vpop.trf.xlu0  ;;  %2276 = vmatprep.mubr.f32.mxu1 %v4164_v50  ;;  %2501 = vmatprep.mubr.f32.mxu0 %v4167_v35 }
 0x1be   : > { %v4276_v40 = vunpack.i.l.bf16 %v4275_v45  ;;  %v4279_v25 = vunpack.i.h.bf16 %v4275_v45  ;;  %v4169_v18 = vunpack.i.l.bf16 %v4168_v19  ;;  %v4172_v20 = vunpack.i.h.bf16 %v4168_v19 }
 0x1c0   : > { %2277 = vmatmul.mubr.f32.gmra.mrb[66].mxu1 %v4276_v40  ;;  %2502 = vmatmul.mubr.f32.gmra.mrb[66].mxu0 %v4279_v25 }
 0x1c1   : > { %v4280_v26 = vpop.trf.xlu1  ;;  %v4173_v32 = vpop.trf.xlu0  ;;  %2281 = vmatprep.mubr.f32.mxu1 %v4169_v18  ;;  %2506 = vmatprep.mubr.f32.mxu0 %v4172_v20 }
 0x1c2   : > { %v4281_v3 = vunpack.i.l.bf16 %v4280_v26  ;;  %v4284_v36 = vunpack.i.h.bf16 %v4280_v26  ;;  %v4174_v56 = vunpack.i.l.bf16 %v4173_v32  ;;  %v4177_v29 = vunpack.i.h.bf16 %v4173_v32 }
 0x1c4   : > { %2282 = vmatmul.mubr.f32.gmra.mrb[68].mxu1 %v4281_v3  ;;  %2507 = vmatmul.mubr.f32.gmra.mrb[68].mxu0 %v4284_v36 }
 0x1c5   : > { %v4285_v9 = vpop.trf.xlu1  ;;  %v4178_v31 = vpop.trf.xlu0  ;;  %2286 = vmatprep.mubr.f32.mxu1 %v4174_v56  ;;  %2511 = vmatprep.mubr.f32.mxu0 %v4177_v29 }
 0x1c6   : > { %v4286_v41 = vunpack.i.l.bf16 %v4285_v9  ;;  %v4289_v28 = vunpack.i.h.bf16 %v4285_v9  ;;  %v4179_v54 = vunpack.i.l.bf16 %v4178_v31  ;;  %v4182_v59 = vunpack.i.h.bf16 %v4178_v31 }
 0x1c8   : > { %2287 = vmatmul.mubr.f32.gmra.mrb[70].mxu1 %v4286_v41  ;;  %2512 = vmatmul.mubr.f32.gmra.mrb[70].mxu0 %v4289_v28 }
 0x1c9   : > { %v4290_v24 = vpop.trf.xlu1  ;;  %v4183_v34 = vpop.trf.xlu0  ;;  %2291 = vmatprep.mubr.f32.mxu1 %v4179_v54  ;;  %2516 = vmatprep.mubr.f32.mxu0 %v4182_v59 }
 0x1ca   : > { %v4291_v30 = vunpack.i.l.bf16 %v4290_v24  ;;  %v4294_v53 = vunpack.i.h.bf16 %v4290_v24  ;;  %v4184_v39 = vunpack.i.l.bf16 %v4183_v34  ;;  %v4187_v42 = vunpack.i.h.bf16 %v4183_v34 }
 0x1cc   : > { %2292 = vmatmul.mubr.f32.gmra.mrb[72].mxu1 %v4291_v30  ;;  %2517 = vmatmul.mubr.f32.gmra.mrb[72].mxu0 %v4294_v53 }
 0x1cd   : > { %v4295_v1 = vpop.trf.xlu1  ;;  %v4188_v13 = vpop.trf.xlu0  ;;  %2296 = vmatprep.mubr.f32.mxu1 %v4184_v39  ;;  %2521 = vmatprep.mubr.f32.mxu0 %v4187_v42 }
 0x1ce   : > { %v4296_v15 = vunpack.i.l.bf16 %v4295_v1  ;;  %v4299_v33 = vunpack.i.h.bf16 %v4295_v1  ;;  %v4189_v14 = vunpack.i.l.bf16 %v4188_v13  ;;  %v4192_v21 = vunpack.i.h.bf16 %v4188_v13  ;;  %v1839_v1 = vld [vmem:[#allocation2] sm:$0xff] }
 0x1d0   : > { %2297 = vmatmul.mubr.f32.gmra.mrb[74].mxu1 %v4296_v15  ;;  %2522 = vmatmul.mubr.f32.gmra.mrb[74].mxu0 %v4299_v33 }
 0x1d1   : > { %v4300_v51 = vpop.trf.xlu1  ;;  %v4193_v4 = vpop.trf.xlu0  ;;  %2301 = vmatprep.mubr.f32.mxu1 %v4189_v14  ;;  %2526 = vmatprep.mubr.f32.mxu0 %v4192_v21 }
 0x1d2   : > { %v4301_v52 = vunpack.i.l.bf16 %v4300_v51  ;;  %v4304_v6 = vunpack.i.h.bf16 %v4300_v51  ;;  %v4194_v55 = vunpack.i.l.bf16 %v4193_v4  ;;  %v4197_v61 = vunpack.i.h.bf16 %v4193_v4  ;;  %v1840_v4 = vld [vmem:[#allocation2 + $0x8] sm:$0xff] }
 0x1d4   : > { %2302 = vmatmul.mubr.f32.gmra.mrb[76].mxu1 %v4301_v52  ;;  %2527 = vmatmul.mubr.f32.gmra.mrb[76].mxu0 %v4304_v6 }
 0x1d5   : > { %v4305_v0 = vpop.trf.xlu1  ;;  %v4198_v2 = vpop.trf.xlu0  ;;  %2306 = vmatprep.mubr.f32.mxu1 %v4194_v55  ;;  %2531 = vmatprep.mubr.f32.mxu0 %v4197_v61 }
 0x1d6   : > { %v4306_v48 = vunpack.i.l.bf16 %v4305_v0  ;;  %v4309_v37 = vunpack.i.h.bf16 %v4305_v0  ;;  %v4199_v12 = vunpack.i.l.bf16 %v4198_v2  ;;  %v4202_v17 = vunpack.i.h.bf16 %v4198_v2 }
 0x1d8   : > { %2307 = vmatmul.mubr.f32.gmra.mrb[78].mxu1 %v4306_v48  ;;  %2532 = vmatmul.mubr.f32.gmra.mrb[78].mxu0 %v4309_v37  ;;  %v1841_v48 = vld [vmem:[#allocation2 + $0x10] sm:$0xff] }
 0x1d9   : > { %v4310_v22 = vpop.trf.xlu1  ;;  %v4203_v47 = vpop.trf.xlu0  ;;  %2311 = vmatprep.mubr.f32.mxu1 %v4199_v12  ;;  %2536 = vmatprep.mubr.f32.mxu0 %v4202_v17 }
 0x1da   : > { %v4311_v49 = vunpack.i.l.bf16 %v4310_v22  ;;  %v4314_v8 = vunpack.i.h.bf16 %v4310_v22  ;;  %v4204_v43 = vunpack.i.l.bf16 %v4203_v47  ;;  %v4207_v58 = vunpack.i.h.bf16 %v4203_v47 }
 0x1dc   : > { %2312 = vmatmul.mubr.f32.gmra.mrb[80].mxu1 %v4311_v49  ;;  %2537 = vmatmul.mubr.f32.gmra.mrb[80].mxu0 %v4314_v8  ;;  %v1842_v8 = vld [vmem:[#allocation2 + $0x18] sm:$0xff] }
 0x1dd   : > { %v4315_v63 = vpop.trf.xlu1  ;;  %v4208_v11 = vpop.trf.xlu0  ;;  %2316 = vmatprep.mubr.f32.mxu1 %v4204_v43  ;;  %2541 = vmatprep.mubr.f32.mxu0 %v4207_v58 }
 0x1de   : > { %v4316_v46 = vunpack.i.l.bf16 %v4315_v63  ;;  %v4319_v23 = vunpack.i.h.bf16 %v4315_v63  ;;  %v4209_v5 = vunpack.i.l.bf16 %v4208_v11  ;;  %v4212_v60 = vunpack.i.h.bf16 %v4208_v11 }
 0x1e0   : > { %2317 = vmatmul.mubr.f32.gmra.mrb[82].mxu1 %v4316_v46  ;;  %2542 = vmatmul.mubr.f32.gmra.mrb[82].mxu0 %v4319_v23 }
 0x1e1   : > { %v4320_v7 = vpop.trf.xlu1  ;;  %v4213_v44 = vpop.trf.xlu0  ;;  %2321 = vmatprep.mubr.f32.mxu1 %v4209_v5  ;;  %2546 = vmatprep.mubr.f32.mxu0 %v4212_v60  ;;  %v1843_v5 = vld [vmem:[#allocation2 + $0x20] sm:$0xff] }
 0x1e2   : > { %v4321_v16 = vunpack.i.l.bf16 %v4320_v7  ;;  %v4324_v27 = vunpack.i.h.bf16 %v4320_v7  ;;  %v4214_v38 = vunpack.i.l.bf16 %v4213_v44  ;;  %v4217_v57 = vunpack.i.h.bf16 %v4213_v44 }
 0x1e4   : > { %2322 = vmatmul.mubr.f32.gmra.mrb[84].mxu1 %v4321_v16  ;;  %2547 = vmatmul.mubr.f32.gmra.mrb[84].mxu0 %v4324_v27 }
 0x1e5   : > { %v4325_v62 = vpop.trf.xlu1  ;;  %v4218_v10 = vpop.trf.xlu0  ;;  %2326 = vmatprep.mubr.f32.mxu1 %v4214_v38  ;;  %2551 = vmatprep.mubr.f32.mxu0 %v4217_v57  ;;  %v1844_v57 = vld [vmem:[#allocation2 + $0x28] sm:$0xff] }
 0x1e6   : > { %v4326_v50 = vunpack.i.l.bf16 %v4325_v62  ;;  %v4329_v35 = vunpack.i.h.bf16 %v4325_v62  ;;  %v4219_v45 = vunpack.i.l.bf16 %v4218_v10  ;;  %v4222_v19 = vunpack.i.h.bf16 %v4218_v10 }
 0x1e8   : > { %2327 = vmatmul.mubr.f32.gmra.mrb[86].mxu1 %v4326_v50  ;;  %2552 = vmatmul.mubr.f32.gmra.mrb[86].mxu0 %v4329_v35 }
 0x1e9   : > { %v4330_v40 = vpop.trf.xlu1  ;;  %v4223_v25 = vpop.trf.xlu0  ;;  %2331 = vmatprep.mubr.f32.mxu1 %v4219_v45  ;;  %2556 = vmatprep.mubr.f32.mxu0 %v4222_v19 }
 0x1ea   : > { %v4331_v18 = vunpack.i.l.bf16 %v4330_v40  ;;  %v4334_v20 = vunpack.i.h.bf16 %v4330_v40  ;;  %v4224_v26 = vunpack.i.l.bf16 %v4223_v25  ;;  %v4227_v32 = vunpack.i.h.bf16 %v4223_v25  ;;  %v1845_v40 = vld [vmem:[#allocation2 + $0x30] sm:$0xff] }
 0x1ec   : > { %2332 = vmatmul.mubr.f32.gmra.mrb[88].mxu1 %v4331_v18  ;;  %2557 = vmatmul.mubr.f32.gmra.mrb[88].mxu0 %v4334_v20 }
 0x1ed   : > { %v4335_v3 = vpop.trf.xlu1  ;;  %v4228_v36 = vpop.trf.xlu0  ;;  %2336 = vmatprep.mubr.f32.mxu1 %v4224_v26  ;;  %2561 = vmatprep.mubr.f32.mxu0 %v4227_v32 }
 0x1ee   : > { %v4336_v56 = vunpack.i.l.bf16 %v4335_v3  ;;  %v4339_v29 = vunpack.i.h.bf16 %v4335_v3  ;;  %v4229_v9 = vunpack.i.l.bf16 %v4228_v36  ;;  %v4232_v31 = vunpack.i.h.bf16 %v4228_v36  ;;  %v1846_v36 = vld [vmem:[#allocation2 + $0x38] sm:$0xff] }
 0x1f0   : > { %2337 = vmatmul.mubr.f32.gmra.mrb[90].mxu1 %v4336_v56  ;;  %2562 = vmatmul.mubr.f32.gmra.mrb[90].mxu0 %v4339_v29 }
 0x1f1   : > { %v4340_v41 = vpop.trf.xlu1  ;;  %v4233_v28 = vpop.trf.xlu0  ;;  %2341 = vmatprep.mubr.f32.mxu1 %v4229_v9  ;;  %2566 = vmatprep.mubr.f32.mxu0 %v4232_v31 }
 0x1f2   : > { %v4237_v54 = vunpack.i.h.bf16 %v4233_v28  ;;  %v4234_v59 = vunpack.i.l.bf16 %v4233_v28  ;;  %v4341_v24 = vunpack.i.l.bf16 %v4340_v41  ;;  %v4344_v34 = vunpack.i.h.bf16 %v4340_v41 }
 0x1f4   : > { %2342 = vmatmul.mubr.f32.gmra.mrb[92].mxu1 %v4341_v24  ;;  %2567 = vmatmul.mubr.f32.gmra.mrb[92].mxu0 %v4344_v34 }
 0x1f5   : > { %v4345_v30 = vpop.trf.xlu1  ;;  %2346 = vmatprep.mubr.f32.mxu1 %v4234_v59  ;;  %2571 = vmatprep.mubr.f32.mxu0 %v4237_v54  ;;  %v1847_v54 = vld [vmem:[#allocation2 + $0x40] sm:$0xff] }
 0x1f6   : > { %v4349_v53 = vunpack.i.h.bf16 %v4345_v30  ;;  %v4346_v39 = vunpack.i.l.bf16 %v4345_v30 }
 0x1f8   : > { %2347 = vmatmul.mubr.f32.gmra.mrb[94].mxu1 %v4346_v39  ;;  %2572 = vmatmul.mubr.f32.gmra.mrb[94].mxu0 %v4349_v53 }
 0x24f   : > { %v2193_v42 = vpop.f32.mrb[32].mxu1  ;;  %v2418_v13 = vpop.f32.mrb[32].mxu0 }
 0x250   : > { %v2419_v15 = vadd.f32 %v2418_v13, %v2193_v42  ;;  %v2195_v33 = vpop.f32.mrb[33].mxu1  ;;  %v2420_v14 = vpop.f32.mrb[33].mxu0  ;;  %v1848_v42 = vld [vmem:[#allocation2 + $0x48] sm:$0xff] }
 0x252   : > { %v2577_v21 = vadd.f32 %v2419_v15, %v1839_v1 }
 0x253   : > { %v2198_v51 = vpop.f32.mrb[34].mxu1  ;;  %v2423_v52 = vpop.f32.mrb[34].mxu0 }
 0x254   : > { %2609 = vst.msk [vmem:[#allocation2] sm:$0xff] %vm6118_vm7, %v2577_v21  ;;  %v2424_v6 = vadd.f32 %v2423_v52, %v2198_v51  ;;  %v2200_v55 = vpop.f32.mrb[35].mxu1  ;;  %v2425_v61 = vpop.f32.mrb[35].mxu0  ;;  %v1849_v51 = vld [vmem:[#allocation2 + $0x50] sm:$0xff]  ;;  %vm6134_vm7 = vmmov %vm6131_vm0 }
 0x256   : > { %v2578_v0 = vadd.f32 %v2424_v6, %v1840_v4 }
 0x257   : > { %v2203_v2 = vpop.f32.mrb[36].mxu1  ;;  %v2428_v37 = vpop.f32.mrb[36].mxu0 }
 0x258   : > { %2610 = vst.msk [vmem:[#allocation2 + $0x8] sm:$0xff] %vm6119_vm9, %v2578_v0  ;;  %v2429_v12 = vadd.f32 %v2428_v37, %v2203_v2  ;;  %v2205_v17 = vpop.f32.mrb[37].mxu1  ;;  %v2430_v22 = vpop.f32.mrb[37].mxu0  ;;  %v1850_v2 = vld [vmem:[#allocation2 + $0x58] sm:$0xff]  ;;  %vm6135_vm9 = vmmov %vm6131_vm0 }
 0x25a   : > { %v2579_v47 = vadd.f32 %v2429_v12, %v1841_v48 }
 0x25b   : > { %v2208_v49 = vpop.f32.mrb[38].mxu1  ;;  %v2433_v43 = vpop.f32.mrb[38].mxu0 }
 0x25c   : > { %2611 = vst.msk [vmem:[#allocation2 + $0x10] sm:$0xff] %vm6120_vm13, %v2579_v47  ;;  %v2434_v58 = vadd.f32 %v2433_v43, %v2208_v49  ;;  %v2210_v63 = vpop.f32.mrb[39].mxu1  ;;  %v2435_v11 = vpop.f32.mrb[39].mxu0  ;;  %v1851_v49 = vld [vmem:[#allocation2 + $0x60] sm:$0xff]  ;;  %vm6136_vm13 = vmmov %vm6131_vm0 }
 0x25e   : > { %v2580_v46 = vadd.f32 %v2434_v58, %v1842_v8 }
 0x25f   : > { %v2213_v23 = vpop.f32.mrb[40].mxu1  ;;  %v2438_v60 = vpop.f32.mrb[40].mxu0 }
 0x260   : > { %2612 = vst.msk [vmem:[#allocation2 + $0x18] sm:$0xff] %vm6121_vm14, %v2580_v46  ;;  %v2439_v7 = vadd.f32 %v2438_v60, %v2213_v23  ;;  %v2215_v44 = vpop.f32.mrb[41].mxu1  ;;  %v2440_v16 = vpop.f32.mrb[41].mxu0  ;;  %v1852_v23 = vld [vmem:[#allocation2 + $0x68] sm:$0xff]  ;;  %vm6137_vm14 = vmmov %vm6131_vm0 }
 0x262   : > { %v2581_v27 = vadd.f32 %v2439_v7, %v1843_v5 }
 0x263   : > { %v2218_v38 = vpop.f32.mrb[42].mxu1  ;;  %v2443_v62 = vpop.f32.mrb[42].mxu0 }
 0x264   : > { %2613 = vst.msk [vmem:[#allocation2 + $0x20] sm:$0xff] %vm6122_vm11, %v2581_v27  ;;  %v2444_v10 = vadd.f32 %v2443_v62, %v2218_v38  ;;  %v2220_v50 = vpop.f32.mrb[43].mxu1  ;;  %v2445_v35 = vpop.f32.mrb[43].mxu0  ;;  %v1853_v38 = vld [vmem:[#allocation2 + $0x70] sm:$0xff]  ;;  %vm6138_vm11 = vmmov %vm6131_vm0 }
 0x266   : > { %v2582_v45 = vadd.f32 %v2444_v10, %v1844_v57 }
 0x267   : > { %v2223_v19 = vpop.f32.mrb[44].mxu1  ;;  %v2448_v25 = vpop.f32.mrb[44].mxu0 }
 0x268   : > { %2614 = vst.msk [vmem:[#allocation2 + $0x28] sm:$0xff] %vm6123_vm1, %v2582_v45  ;;  %v2449_v18 = vadd.f32 %v2448_v25, %v2223_v19  ;;  %v2225_v20 = vpop.f32.mrb[45].mxu1  ;;  %v2450_v26 = vpop.f32.mrb[45].mxu0  ;;  %v1854_v19 = vld [vmem:[#allocation2 + $0x78] sm:$0xff]  ;;  %vm6139_vm1 = vmmov %vm6131_vm0 }
 0x26a   : > { %v2583_v32 = vadd.f32 %v2449_v18, %v1845_v40 }
 0x26b   : > { %v2228_v3 = vpop.f32.mrb[46].mxu1  ;;  %v2453_v56 = vpop.f32.mrb[46].mxu0 }
 0x26c   : > { %2615 = vst.msk [vmem:[#allocation2 + $0x30] sm:$0xff] %vm6124_vm12, %v2583_v32  ;;  %v2454_v29 = vadd.f32 %v2453_v56, %v2228_v3  ;;  %v2230_v9 = vpop.f32.mrb[47].mxu1  ;;  %v2455_v31 = vpop.f32.mrb[47].mxu0  ;;  %v1855_v3 = vld [vmem:[#allocation2 + $0x80] sm:$0xff]  ;;  %vm6140_vm12 = vmmov %vm6131_vm0 }
 0x26e   : > { %v2584_v41 = vadd.f32 %v2454_v29, %v1846_v36 }
 0x26f   : > { %v2233_v28 = vpop.f32.mrb[48].mxu1  ;;  %v2458_v59 = vpop.f32.mrb[48].mxu0 }
 0x270   : > { %2616 = vst.msk [vmem:[#allocation2 + $0x38] sm:$0xff] %vm6125_vm10, %v2584_v41  ;;  %v2459_v24 = vadd.f32 %v2458_v59, %v2233_v28  ;;  %v2235_v34 = vpop.f32.mrb[49].mxu1  ;;  %v2460_v30 = vpop.f32.mrb[49].mxu0  ;;  %v1856_v28 = vld [vmem:[#allocation2 + $0x88] sm:$0xff]  ;;  %vm6141_vm10 = vmmov %vm6131_vm0 }
 0x272   : > { %v2585_v53 = vadd.f32 %v2459_v24, %v1847_v54 }
 0x273   : > { %v2238_v39 = vpop.f32.mrb[50].mxu1  ;;  %v2463_v1 = vpop.f32.mrb[50].mxu0 }
 0x274   : > { %2617 = vst.msk [vmem:[#allocation2 + $0x40] sm:$0xff] %vm6126_vm8, %v2585_v53  ;;  %v2464_v13 = vadd.f32 %v2463_v1, %v2238_v39  ;;  %v2240_v15 = vpop.f32.mrb[51].mxu1  ;;  %v2465_v33 = vpop.f32.mrb[51].mxu0  ;;  %v1857_v39 = vld [vmem:[#allocation2 + $0x90] sm:$0xff]  ;;  %vm6142_vm8 = vmmov %vm6131_vm0 }
 0x276   : > { %v2586_v14 = vadd.f32 %v2464_v13, %v1848_v42 }
 0x277   : > { %v2243_v21 = vpop.f32.mrb[52].mxu1  ;;  %v2468_v4 = vpop.f32.mrb[52].mxu0 }
 0x278   : > { %2618 = vst.msk [vmem:[#allocation2 + $0x48] sm:$0xff] %vm6127_vm4, %v2586_v14  ;;  %v2469_v52 = vadd.f32 %v2468_v4, %v2243_v21  ;;  %v2245_v6 = vpop.f32.mrb[53].mxu1  ;;  %v2470_v55 = vpop.f32.mrb[53].mxu0  ;;  %v1858_v21 = vld [vmem:[#allocation2 + $0x98] sm:$0xff]  ;;  %vm6143_vm4 = vmmov %vm6131_vm0 }
 0x27a   : > { %v2587_v61 = vadd.f32 %v2469_v52, %v1849_v51 }
 0x27b   : > { %v2248_v0 = vpop.f32.mrb[54].mxu1  ;;  %v2473_v48 = vpop.f32.mrb[54].mxu0 }
 0x27c   : > { %2619 = vst.msk [vmem:[#allocation2 + $0x50] sm:$0xff] %vm6128_vm6, %v2587_v61  ;;  %v2474_v37 = vadd.f32 %v2473_v48, %v2248_v0  ;;  %v2250_v12 = vpop.f32.mrb[55].mxu1  ;;  %v2475_v17 = vpop.f32.mrb[55].mxu0  ;;  %v1859_v0 = vld [vmem:[#allocation2 + $0xa0] sm:$0xff]  ;;  %vm6144_vm6 = vmmov %vm6131_vm0 }
 0x27e   : > { %v2588_v22 = vadd.f32 %v2474_v37, %v1850_v2 }
 0x27f   : > { %v2253_v47 = vpop.f32.mrb[56].mxu1  ;;  %v2478_v8 = vpop.f32.mrb[56].mxu0 }
 0x280   : > { %2620 = vst.msk [vmem:[#allocation2 + $0x58] sm:$0xff] %vm6129_vm15, %v2588_v22  ;;  %v2479_v43 = vadd.f32 %v2478_v8, %v2253_v47  ;;  %v2255_v58 = vpop.f32.mrb[57].mxu1  ;;  %v2480_v63 = vpop.f32.mrb[57].mxu0  ;;  %v1860_v47 = vld [vmem:[#allocation2 + $0xa8] sm:$0xff]  ;;  %vm6145_vm15 = vmmov %vm6131_vm0 }
 0x282   : > { %v2589_v11 = vadd.f32 %v2479_v43, %v1851_v49 }
 0x283   : > { %v2258_v46 = vpop.f32.mrb[58].mxu1  ;;  %v2483_v5 = vpop.f32.mrb[58].mxu0 }
 0x284   : > { %2621 = vst.msk [vmem:[#allocation2 + $0x60] sm:$0xff] %vm6130_vm2, %v2589_v11  ;;  %v2484_v60 = vadd.f32 %v2483_v5, %v2258_v46  ;;  %v2260_v7 = vpop.f32.mrb[59].mxu1  ;;  %v2485_v44 = vpop.f32.mrb[59].mxu0  ;;  %v1861_v46 = vld [vmem:[#allocation2 + $0xb0] sm:$0xff]  ;;  %vm6146_vm2 = vmmov %vm6131_vm0 }
 0x286   : > { %v2590_v16 = vadd.f32 %v2484_v60, %v1852_v23 }
 0x287   : > { %v2263_v27 = vpop.f32.mrb[60].mxu1  ;;  %v2488_v57 = vpop.f32.mrb[60].mxu0 }
 0x288   : > { %2622 = vst.msk [vmem:[#allocation2 + $0x68] sm:$0xff] %vm6131_vm0, %v2590_v16  ;;  %v2489_v62 = vadd.f32 %v2488_v57, %v2263_v27  ;;  %v2265_v10 = vpop.f32.mrb[61].mxu1  ;;  %v2490_v50 = vpop.f32.mrb[61].mxu0  ;;  %v1862_v27 = vld [vmem:[#allocation2 + $0xb8] sm:$0xff] }
 0x28a   : > { %v2591_v35 = vadd.f32 %v2489_v62, %v1853_v38 }
 0x28b   : > { %v2268_v45 = vpop.f32.mrb[62].mxu1  ;;  %v2493_v40 = vpop.f32.mrb[62].mxu0 }
 0x28c   : > { %2623 = vst.msk [vmem:[#allocation2 + $0x70] sm:$0xff] %vm6132_vm3, %v2591_v35  ;;  %v2494_v25 = vadd.f32 %v2493_v40, %v2268_v45  ;;  %v2270_v18 = vpop.f32.mrb[63].mxu1  ;;  %v2495_v20 = vpop.f32.mrb[63].mxu0  ;;  %v1863_v45 = vld [vmem:[#allocation2 + $0xc0] sm:$0xff]  ;;  %vm6147_vm3 = vmmov %vm6131_vm0 }
 0x28e   : > { %v2592_v26 = vadd.f32 %v2494_v25, %v1854_v19 }
 0x28f   : > { %v2273_v32 = vpop.f32.mrb[64].mxu1  ;;  %v2498_v36 = vpop.f32.mrb[64].mxu0 }
 0x290   : > { %2624 = vst.msk [vmem:[#allocation2 + $0x78] sm:$0xff] %vm6133_vm5, %v2592_v26  ;;  %v2499_v56 = vadd.f32 %v2498_v36, %v2273_v32  ;;  %v2275_v29 = vpop.f32.mrb[65].mxu1  ;;  %v2500_v9 = vpop.f32.mrb[65].mxu0  ;;  %v1864_v32 = vld [vmem:[#allocation2 + $0xc8] sm:$0xff]  ;;  %vm6148_vm5 = vmmov %vm6131_vm0 }
 0x292   : > { %v2593_v31 = vadd.f32 %v2499_v56, %v1855_v3 }
 0x293   : > { %v2278_v41 = vpop.f32.mrb[66].mxu1  ;;  %v2503_v54 = vpop.f32.mrb[66].mxu0 }
 0x294   : > { %2625 = vst.msk [vmem:[#allocation2 + $0x80] sm:$0xff] %vm6134_vm7, %v2593_v31  ;;  %v2504_v59 = vadd.f32 %v2503_v54, %v2278_v41  ;;  %v2280_v24 = vpop.f32.mrb[67].mxu1  ;;  %v2505_v34 = vpop.f32.mrb[67].mxu0  ;;  %v1865_v41 = vld [vmem:[#allocation2 + $0xd0] sm:$0xff] }
 0x296   : > { %v2594_v30 = vadd.f32 %v2504_v59, %v1856_v28 }
 0x297   : > { %v2283_v53 = vpop.f32.mrb[68].mxu1  ;;  %v2508_v42 = vpop.f32.mrb[68].mxu0 }
 0x298   : > { %2626 = vst.msk [vmem:[#allocation2 + $0x88] sm:$0xff] %vm6135_vm9, %v2594_v30  ;;  %v2509_v1 = vadd.f32 %v2508_v42, %v2283_v53  ;;  %v2285_v13 = vpop.f32.mrb[69].mxu1  ;;  %v2510_v15 = vpop.f32.mrb[69].mxu0  ;;  %v1866_v53 = vld [vmem:[#allocation2 + $0xd8] sm:$0xff] }
 0x29a   : > { %v2595_v33 = vadd.f32 %v2509_v1, %v1857_v39 }
 0x29b   : > { %v2288_v14 = vpop.f32.mrb[70].mxu1  ;;  %v2513_v51 = vpop.f32.mrb[70].mxu0 }
 0x29c   : > { %2627 = vst.msk [vmem:[#allocation2 + $0x90] sm:$0xff] %vm6136_vm13, %v2595_v33  ;;  %v2514_v4 = vadd.f32 %v2513_v51, %v2288_v14  ;;  %v2290_v52 = vpop.f32.mrb[71].mxu1  ;;  %v2515_v6 = vpop.f32.mrb[71].mxu0  ;;  %v1867_v14 = vld [vmem:[#allocation2 + $0xe0] sm:$0xff] }
 0x29e   : > { %v2596_v55 = vadd.f32 %v2514_v4, %v1858_v21 }
 0x29f   : > { %v2293_v61 = vpop.f32.mrb[72].mxu1  ;;  %v2518_v2 = vpop.f32.mrb[72].mxu0 }
 0x2a0   : > { %2628 = vst.msk [vmem:[#allocation2 + $0x98] sm:$0xff] %vm6137_vm14, %v2596_v55  ;;  %v2519_v48 = vadd.f32 %v2518_v2, %v2293_v61  ;;  %v2295_v37 = vpop.f32.mrb[73].mxu1  ;;  %v2520_v12 = vpop.f32.mrb[73].mxu0  ;;  %v1868_v61 = vld [vmem:[#allocation2 + $0xe8] sm:$0xff] }
 0x2a2   : > { %v2597_v17 = vadd.f32 %v2519_v48, %v1859_v0 }
 0x2a3   : > { %v2298_v22 = vpop.f32.mrb[74].mxu1  ;;  %v2523_v49 = vpop.f32.mrb[74].mxu0 }
 0x2a4   : > { %2629 = vst.msk [vmem:[#allocation2 + $0xa0] sm:$0xff] %vm6138_vm11, %v2597_v17  ;;  %v2524_v8 = vadd.f32 %v2523_v49, %v2298_v22  ;;  %v2300_v43 = vpop.f32.mrb[75].mxu1  ;;  %v2525_v58 = vpop.f32.mrb[75].mxu0  ;;  %v1869_v22 = vld [vmem:[#allocation2 + $0xf0] sm:$0xff] }
 0x2a6   : > { %v2598_v63 = vadd.f32 %v2524_v8, %v1860_v47 }
 0x2a7   : > { %v2303_v11 = vpop.f32.mrb[76].mxu1  ;;  %v2528_v23 = vpop.f32.mrb[76].mxu0 }
 0x2a8   : > { %2630 = vst.msk [vmem:[#allocation2 + $0xa8] sm:$0xff] %vm6139_vm1, %v2598_v63  ;;  %v2529_v5 = vadd.f32 %v2528_v23, %v2303_v11  ;;  %v2305_v60 = vpop.f32.mrb[77].mxu1  ;;  %v2530_v7 = vpop.f32.mrb[77].mxu0  ;;  %v1870_v11 = vld [vmem:[#allocation2 + $0xf8] sm:$0xff] }
 0x2aa   : > { %v2599_v44 = vadd.f32 %v2529_v5, %v1861_v46 }
 0x2ab   : > { %v2308_v16 = vpop.f32.mrb[78].mxu1  ;;  %v2533_v38 = vpop.f32.mrb[78].mxu0 }
 0x2ac   : > { %2631 = vst.msk [vmem:[#allocation2 + $0xb0] sm:$0xff] %vm6140_vm12, %v2599_v44  ;;  %v2534_v57 = vadd.f32 %v2533_v38, %v2308_v16  ;;  %v2310_v62 = vpop.f32.mrb[79].mxu1  ;;  %v2535_v10 = vpop.f32.mrb[79].mxu0 }
 0x2ae   : > { %v2600_v50 = vadd.f32 %v2534_v57, %v1862_v27 }
 0x2af   : > { %v2313_v35 = vpop.f32.mrb[80].mxu1  ;;  %v2538_v19 = vpop.f32.mrb[80].mxu0 }
 0x2b0   : > { %2632 = vst.msk [vmem:[#allocation2 + $0xb8] sm:$0xff] %vm6141_vm10, %v2600_v50  ;;  %v2539_v40 = vadd.f32 %v2538_v19, %v2313_v35  ;;  %v2315_v25 = vpop.f32.mrb[81].mxu1  ;;  %v2540_v18 = vpop.f32.mrb[81].mxu0 }
 0x2b2   : > { %v2601_v20 = vadd.f32 %v2539_v40, %v1863_v45 }
 0x2b3   : > { %v2318_v26 = vpop.f32.mrb[82].mxu1  ;;  %v2543_v3 = vpop.f32.mrb[82].mxu0 }
 0x2b4   : > { %2633 = vst.msk [vmem:[#allocation2 + $0xc0] sm:$0xff] %vm6142_vm8, %v2601_v20  ;;  %v2544_v36 = vadd.f32 %v2543_v3, %v2318_v26  ;;  %v2320_v56 = vpop.f32.mrb[83].mxu1  ;;  %v2545_v29 = vpop.f32.mrb[83].mxu0 }
 0x2b6   : > { %v2602_v9 = vadd.f32 %v2544_v36, %v1864_v32 }
 0x2b7   : > { %v2323_v31 = vpop.f32.mrb[84].mxu1  ;;  %v2548_v28 = vpop.f32.mrb[84].mxu0 }
 0x2b8   : > { %2634 = vst.msk [vmem:[#allocation2 + $0xc8] sm:$0xff] %vm6143_vm4, %v2602_v9  ;;  %v2549_v54 = vadd.f32 %v2548_v28, %v2323_v31  ;;  %v2325_v59 = vpop.f32.mrb[85].mxu1  ;;  %v2550_v24 = vpop.f32.mrb[85].mxu0 }
 0x2ba   : > { %v2603_v34 = vadd.f32 %v2549_v54, %v1865_v41 }
 0x2bb   : > { %v2328_v30 = vpop.f32.mrb[86].mxu1  ;;  %v2553_v39 = vpop.f32.mrb[86].mxu0 }
 0x2bc   : > { %2635 = vst.msk [vmem:[#allocation2 + $0xd0] sm:$0xff] %vm6144_vm6, %v2603_v34  ;;  %v2554_v42 = vadd.f32 %v2553_v39, %v2328_v30  ;;  %v2330_v1 = vpop.f32.mrb[87].mxu1  ;;  %v2555_v13 = vpop.f32.mrb[87].mxu0 }
 0x2be   : > { %v2604_v15 = vadd.f32 %v2554_v42, %v1866_v53 }
 0x2bf   : > { %v2333_v33 = vpop.f32.mrb[88].mxu1  ;;  %v2558_v21 = vpop.f32.mrb[88].mxu0 }
 0x2c0   : > { %2636 = vst.msk [vmem:[#allocation2 + $0xd8] sm:$0xff] %vm6145_vm15, %v2604_v15  ;;  %v2559_v51 = vadd.f32 %v2558_v21, %v2333_v33  ;;  %v2335_v4 = vpop.f32.mrb[89].mxu1  ;;  %v2560_v52 = vpop.f32.mrb[89].mxu0 }
 0x2c2   : > { %v2605_v6 = vadd.f32 %v2559_v51, %v1867_v14 }
 0x2c3   : > { %v2338_v55 = vpop.f32.mrb[90].mxu1  ;;  %v2563_v0 = vpop.f32.mrb[90].mxu0 }
 0x2c4   : > { %2637 = vst.msk [vmem:[#allocation2 + $0xe0] sm:$0xff] %vm6146_vm2, %v2605_v6  ;;  %v2564_v2 = vadd.f32 %v2563_v0, %v2338_v55  ;;  %v2340_v48 = vpop.f32.mrb[91].mxu1  ;;  %v2565_v37 = vpop.f32.mrb[91].mxu0 }
 0x2c6   : > { %v2606_v12 = vadd.f32 %v2564_v2, %v1868_v61 }
 0x2c7   : > { %v2343_v17 = vpop.f32.mrb[92].mxu1  ;;  %v2568_v47 = vpop.f32.mrb[92].mxu0 }
 0x2c8   : > { %2638 = vst.msk [vmem:[#allocation2 + $0xe8] sm:$0xff] %vm6131_vm0, %v2606_v12  ;;  %v2569_v49 = vadd.f32 %v2568_v47, %v2343_v17  ;;  %v2345_v8 = vpop.f32.mrb[93].mxu1  ;;  %v2570_v43 = vpop.f32.mrb[93].mxu0 }
 0x2ca   : > { %v2607_v58 = vadd.f32 %v2569_v49, %v1869_v22 }
 0x2cb   : > { %v2348_v63 = vpop.f32.mrb[94].mxu1  ;;  %v2573_v46 = vpop.f32.mrb[94].mxu0 }
 0x2cc   : > { %2639 = vst.msk [vmem:[#allocation2 + $0xf0] sm:$0xff] %vm6147_vm3, %v2607_v58  ;;  %v2574_v23 = vadd.f32 %v2573_v46, %v2348_v63  ;;  %v2350_v5 = vpop.f32.mrb[95].mxu1  ;;  %v2575_v60 = vpop.f32.mrb[95].mxu0 }
 0x2ce   : > { %v2608_v7 = vadd.f32 %v2574_v23, %v1870_v11 }
 0x2d0   : > { %2640 = vst.msk [vmem:[#allocation2 + $0xf8] sm:$0xff] %vm6148_vm5, %v2608_v7 }
 0x2d1 PF: > { %p3626_p9 = scmp.ne.s32.totalorder %s4492_s28, 2 }
 0x2d2   : > { %v2679_v44 = vld [vmem:[%s6012_s5 + $0x10] sm:$0xff] (!%p3626_p9)  ;;  %v2677_v16 = vld [vmem:[%s6012_s5] sm:$0xff] (!%p3626_p9)  ;;  %v4506_v27 = vmov (!%p3626_p9), 0   ;;  %v2680_v38 = vld [vmem:[%s6012_s5 + $0x18] sm:$0xff] (!%p3626_p9)  ;;  %vm3093_vm7 = vcmask (!%p3626_p9), 64512  }
 0x2d3   : > { %2644 = sbr.rel (%p3626_p9) target bundleno = 979 (0x3d3), region = 48  ;;  %4383 = vset.pattern.permute.xlu1 (!%p3626_p9), %v4506_v27  ;;  %4382 = vset.pattern.permute.xlu0 (!%p3626_p9), %v4506_v27  ;;  %v2678_v57 = vld [vmem:[%s6012_s5 + $0x8] sm:$0xff] (!%p3626_p9)  ;;  %v2681_v10 = vld [vmem:[%s6012_s5 + $0x20] sm:$0xff] (!%p3626_p9)  ;;  %v2684_v50 = vld [vmem:[%s6012_s5 + $0x38] sm:$0xff] (!%p3626_p9) }
 0x2d4   : > { %2721 = vperm.xlu1 (!%p3626_p9), %4383, %v2679_v44   ;;  %2711 = vperm.xlu0 (!%p3626_p9), %4382, %v2677_v16   ;;  %v2682_v62 = vld [vmem:[%s6012_s5 + $0x28] sm:$0xff] (!%p3626_p9)  ;;  %v2683_v35 = vld [vmem:[%s6012_s5 + $0x30] sm:$0xff] (!%p3626_p9)  ;;  %v2685_v19 = vld [vmem:[%s6012_s5 + $0x40] sm:$0xff] (!%p3626_p9) }
 0x2d5   : > { %v2686_v45 = vld [vmem:[%s6012_s5 + $0x48] sm:$0xff] (!%p3626_p9)  ;;  %v2688_v40 = vld [vmem:[%s6012_s5 + $0x58] sm:$0xff] (!%p3626_p9)  ;;  %v2687_v25 = vld [vmem:[%s6012_s5 + $0x50] sm:$0xff] (!%p3626_p9) }
 0x2d6   : > { %v2690_v18 = vld [vmem:[%s6012_s5 + $0x68] sm:$0xff] (!%p3626_p9)  ;;  %v2689_v20 = vld [vmem:[%s6012_s5 + $0x60] sm:$0xff] (!%p3626_p9)  ;;  %v2692_v26 = vld [vmem:[%s6012_s5 + $0x78] sm:$0xff] (!%p3626_p9) }
 0x2d7   : > { %v2691_v32 = vld [vmem:[%s6012_s5 + $0x70] sm:$0xff] (!%p3626_p9)  ;;  %v2694_v3 = vld [vmem:[%s6012_s5 + $0x88] sm:$0xff] (!%p3626_p9)  ;;  %v2693_v36 = vld [vmem:[%s6012_s5 + $0x80] sm:$0xff] (!%p3626_p9) }
 0x2d8   : > { %2726 = vperm.xlu1 (!%p3626_p9), %4383, %v2680_v38   ;;  %2716 = vperm.xlu0 (!%p3626_p9), %4382, %v2678_v57   ;;  %v2696_v56 = vld [vmem:[%s6012_s5 + $0x98] sm:$0xff] (!%p3626_p9)  ;;  %v2695_v29 = vld [vmem:[%s6012_s5 + $0x90] sm:$0xff] (!%p3626_p9)  ;;  %v2698_v9 = vld [vmem:[%s6012_s5 + $0xa8] sm:$0xff] (!%p3626_p9) }
 0x2d9   : > { %v2697_v31 = vld [vmem:[%s6012_s5 + $0xa0] sm:$0xff] (!%p3626_p9)  ;;  %v2700_v41 = vld [vmem:[%s6012_s5 + $0xb8] sm:$0xff] (!%p3626_p9)  ;;  %v2699_v28 = vld [vmem:[%s6012_s5 + $0xb0] sm:$0xff] (!%p3626_p9) }
 0x2da   : > { %v2702_v54 = vld [vmem:[%s6012_s5 + $0xc8] sm:$0xff]  ;;  %v2701_v59 = vld [vmem:[%s6012_s5 + $0xc0] sm:$0xff]  ;;  %v2704_v24 = vld [vmem:[%s6012_s5 + $0xd8] sm:$0xff] }
 0x2db   : > { %v2703_v34 = vld [vmem:[%s6012_s5 + $0xd0] sm:$0xff]  ;;  %v2706_v30 = vld [vmem:[%s6012_s5 + $0xe8] sm:$0xff]  ;;  %v2705_v53 = vld [vmem:[%s6012_s5 + $0xe0] sm:$0xff] }
 0x2dc   : > { %2736 = vperm.xlu1 %4383, %v2682_v62   ;;  %2731 = vperm.xlu0 %4382, %v2681_v10   ;;  %v2708_v39 = vld [vmem:[%s6012_s5 + $0xf8] sm:$0xff]  ;;  %v2707_v42 = vld [vmem:[%s6012_s5 + $0xf0] sm:$0xff]  ;;  %v2645_v13 = vld [vmem:[#allocation2] sm:$0xff] }
 0x2dd   : > { %v2647_v1 = vld [vmem:[#allocation2 + $0x10] sm:$0xff]  ;;  %v2648_v51 = vld [vmem:[#allocation2 + $0x18] sm:$0xff]  ;;  %v2646_v4 = vld [vmem:[#allocation2 + $0x8] sm:$0xff] }
 0x2de   : > { %v2650_v12 = vld [vmem:[#allocation2 + $0x28] sm:$0xff]  ;;  %v2649_v17 = vld [vmem:[#allocation2 + $0x20] sm:$0xff]  ;;  %v2652_v46 = vld [vmem:[#allocation2 + $0x38] sm:$0xff] }
 0x2df   : > { %v2651_v23 = vld [vmem:[#allocation2 + $0x30] sm:$0xff]  ;;  %v2654_v62 = vld [vmem:[#allocation2 + $0x48] sm:$0xff]  ;;  %v2653_v10 = vld [vmem:[#allocation2 + $0x40] sm:$0xff] }
 0x2e0   : > { %2746 = vperm.xlu1 %4383, %v2684_v50   ;;  %2741 = vperm.xlu0 %4382, %v2683_v35  }
 0x2e4   : > { %2756 = vperm.xlu1 %4383, %v2686_v45   ;;  %2751 = vperm.xlu0 %4382, %v2685_v19  }
 0x2e8   : > { %2766 = vperm.xlu1 %4383, %v2688_v40   ;;  %2761 = vperm.xlu0 %4382, %v2687_v25  }
 0x2ec   : > { %2776 = vperm.xlu1 %4383, %v2690_v18   ;;  %2771 = vperm.xlu0 %4382, %v2689_v20  }
 0x2f0   : > { %2786 = vperm.xlu1 %4383, %v2692_v26   ;;  %2781 = vperm.xlu0 %4382, %v2691_v32  }
 0x2f4   : > { %2796 = vperm.xlu1 %4383, %v2694_v3   ;;  %2791 = vperm.xlu0 %4382, %v2693_v36  }
 0x2f8   : > { %2806 = vperm.xlu1 %4383, %v2696_v56   ;;  %2801 = vperm.xlu0 %4382, %v2695_v29  }
 0x2fc   : > { %2816 = vperm.xlu1 %4383, %v2698_v9   ;;  %2811 = vperm.xlu0 %4382, %v2697_v31  }
 0x300   : > { %2826 = vperm.xlu1 %4383, %v2700_v41   ;;  %2821 = vperm.xlu0 %4382, %v2699_v28   ;;  %v2656_v41 = vld [vmem:[#allocation2 + $0x58] sm:$0xff] }
 0x304   : > { %2836 = vperm.xlu1 %4383, %v2702_v54   ;;  %2831 = vperm.xlu0 %4382, %v2701_v59  }
 0x308   : > { %2846 = vperm.xlu1 %4383, %v2704_v24   ;;  %2841 = vperm.xlu0 %4382, %v2703_v34   ;;  %v2655_v34 = vld [vmem:[#allocation2 + $0x50] sm:$0xff] }
 0x30c   : > { %2856 = vperm.xlu1 %4383, %v2706_v30   ;;  %2851 = vperm.xlu0 %4382, %v2705_v53  }
 0x310   : > { %2866 = vperm.xlu1 %4383, %v2708_v39   ;;  %2861 = vperm.xlu0 %4382, %v2707_v42  }
 0x353   : > { %v2722_v15 = vpop.permute.xlu1 %2721  ;;  %v2712_v33 = vpop.permute.xlu0 %2711 }
 0x354   : > { %v2871_v14 = vmul.f32 %v2722_v15, %v2647_v1  ;;  %v5585_v21 = vmul.f32 %v2712_v33, %v2645_v13 }
 0x356   : > { %v2935_v52 = vmin.f32 %v2871_v14, 0.0  ;;  %v2933_v6 = vmin.f32 %v5585_v21, 0.0  ;;  %vm2903_vm9 = vcmp.gt.f32.partialorder %v2871_v14, 0.0  ;;  %vm2901_vm13 = vcmp.gt.f32.partialorder %v5585_v21, 0.0 }
 0x357   : > { %v2727_v55 = vpop.permute.xlu1 %2726  ;;  %v2717_v61 = vpop.permute.xlu0 %2716 }
 0x358   : > { %v2969_v0 = vmul.f32 1.442695, %v2935_v52  ;;  %v2965_v2 = vmul.f32 1.442695, %v2933_v6  ;;  %v5588_v48 = vmul.f32 %v2727_v55, %v2648_v51  ;;  %v5590_v37 = vmul.f32 %v2717_v61, %v2646_v4 }
 0x35a   : > { %4384 = vpow2.f32 %v2969_v0  ;;  %v2936_v22 = vmin.f32 %v5588_v48, 0.0  ;;  %v2934_v47 = vmin.f32 %v5590_v37, 0.0  ;;  %vm2904_vm14 = vcmp.gt.f32.partialorder %v5588_v48, 0.0 }
 0x35b   : > { %4386 = vpow2.f32 %v2965_v2  ;;  %v2737_v49 = vpop.permute.xlu1 %2736  ;;  %v2732_v8 = vpop.permute.xlu0 %2731  ;;  %vm2902_vm11 = vcmp.gt.f32.partialorder %v5590_v37, 0.0 }
 0x35c   : > { %v2971_v43 = vmul.f32 1.442695, %v2936_v22  ;;  %v5594_v58 = vmul.f32 %v2737_v49, %v2650_v12  ;;  %v5596_v63 = vmul.f32 %v2732_v8, %v2649_v17  ;;  %v2967_v11 = vmul.f32 1.442695, %v2934_v47 }
 0x35e   : > { %4388 = vpow2.f32 %v2971_v43  ;;  %v2938_v5 = vmin.f32 %v5594_v58, 0.0  ;;  %v2937_v60 = vmin.f32 %v5596_v63, 0.0  ;;  %vm2906_vm1 = vcmp.gt.f32.partialorder %v5594_v58, 0.0 }
 0x35f   : > { %4390 = vpow2.f32 %v2967_v11  ;;  %v2747_v7 = vpop.permute.xlu1 %2746  ;;  %v2742_v44 = vpop.permute.xlu0 %2741  ;;  %vm2905_vm12 = vcmp.gt.f32.partialorder %v5596_v63, 0.0 }
 0x360   : > { %v2975_v16 = vmul.f32 1.442695, %v2938_v5  ;;  %v5600_v27 = vmul.f32 %v2747_v7, %v2652_v46  ;;  %v5602_v38 = vmul.f32 %v2742_v44, %v2651_v23  ;;  %v2973_v57 = vmul.f32 1.442695, %v2937_v60 }
 0x362   : > { %4392 = vpow2.f32 %v2975_v16  ;;  %v2940_v50 = vmin.f32 %v5600_v27, 0.0  ;;  %v2939_v35 = vmin.f32 %v5602_v38, 0.0  ;;  %vm2908_vm10 = vcmp.gt.f32.partialorder %v5600_v27, 0.0 }
 0x363   : > { %4394 = vpow2.f32 %v2973_v57  ;;  %v2757_v45 = vpop.permute.xlu1 %2756  ;;  %v2752_v19 = vpop.permute.xlu0 %2751  ;;  %vm2907_vm8 = vcmp.gt.f32.partialorder %v5602_v38, 0.0 }
 0x364   : > { %v4385_v40 = vpop.eup %4384  ;;  %v2979_v25 = vmul.f32 1.442695, %v2940_v50  ;;  %v5606_v18 = vmul.f32 %v2757_v45, %v2654_v62  ;;  %v5608_v20 = vmul.f32 %v2752_v19, %v2653_v10  ;;  %v2977_v3 = vmul.f32 1.442695, %v2939_v35 }
 0x365   : > { %v4387_v26 = vpop.eup %4386  ;;  %v3629_v32 = vadd.f32 -1.0, %v4385_v40  ;;  %v2658_v40 = vld [vmem:[#allocation2 + $0x68] sm:$0xff] }
 0x366   : > { %v3627_v36 = vadd.f32 -1.0, %v4387_v26  ;;  %4396 = vpow2.f32 %v2979_v25  ;;  %v2942_v56 = vmin.f32 %v5606_v18, 0.0  ;;  %v2941_v9 = vmin.f32 %v5608_v20, 0.0 }
 0x367   : > { %v3063_v29 = vsel %vm2903_vm9, %v2871_v14, %v3629_v32  ;;  %4398 = vpow2.f32 %v2977_v3  ;;  %v2767_v31 = vpop.permute.xlu1 %2766  ;;  %v2762_v28 = vpop.permute.xlu0 %2761  ;;  %vm2910_vm4 = vcmp.gt.f32.partialorder %v5606_v18, 0.0  ;;  %vm2909_vm6 = vcmp.gt.f32.partialorder %v5608_v20, 0.0 }
 0x368   : > { %v4389_v54 = vpop.eup %4388  ;;  %3096 = vst.msk [vmem:[%s6013_s6 + $0x10] sm:$0xff] %vm3093_vm7, %v3063_v29  ;;  %v3061_v59 = vsel %vm2901_vm13, %v5585_v21, %v3627_v36  ;;  %v2983_v24 = vmul.f32 1.442695, %v2942_v56  ;;  %v3197_v53 = vmul.f32 %v3063_v29, %v3063_v29  ;;  %v2981_v42 = vmul.f32 1.442695, %v2941_v9 }
 0x369   : > { %v4391_v30 = vpop.eup %4390  ;;  %3094 = vst.msk [vmem:[%s6013_s6] sm:$0xff] %vm3093_vm7, %v3061_v59  ;;  %v3630_v39 = vadd.f32 -1.0, %v4389_v54  ;;  %v3195_v1 = vmul.f32 %v3061_v59, %v3061_v59  ;;  %v5626_v15 = vmul.f32 %v2767_v31, %v2656_v41  ;;  %v5632_v14 = vmul.f32 %v2762_v28, %v2655_v34 }
 0x36a   : > { %v3628_v13 = vadd.f32 -1.0, %v4391_v30  ;;  %4400 = vpow2.f32 %v2983_v24  ;;  %v3129_v4 = vsel %vm3093_vm7, %v3063_v29, 0.0  ;;  %v3126_v52 = vsel %vm3093_vm7, %v3061_v59, 0.0 }
 0x36b   : > { %v3064_v33 = vsel %vm2904_vm14, %v5588_v48, %v3630_v39  ;;  %4402 = vpow2.f32 %v2981_v42  ;;  %v2777_v21 = vpop.permute.xlu1 %2776  ;;  %v2944_v12 = vmin.f32 %v5626_v15, 0.0  ;;  %v2772_v17 = vpop.permute.xlu0 %2771  ;;  %v3230_v22 = vsel %vm3093_vm7, %v3197_v53, 0.0  ;;  %v2657_v53 = vld [vmem:[#allocation2 + $0x60] sm:$0xff] }
 0x36c   : > { %v4393_v51 = vpop.eup %4392  ;;  %3097 = vst.msk [vmem:[%s6013_s6 + $0x18] sm:$0xff] %vm3093_vm7, %v3064_v33  ;;  %v3198_v6 = vmul.f32 %v3064_v33, %v3064_v33  ;;  %v3062_v55 = vsel %vm2902_vm11, %v5590_v37, %v3628_v13  ;;  %v3227_v47 = vsel %vm3093_vm7, %v3195_v1, 0.0  ;;  %v2943_v46 = vmin.f32 %v5632_v14, 0.0 }
 0x36d   : > { %v4395_v61 = vpop.eup %4394  ;;  %3095 = vst.msk [vmem:[%s6013_s6 + $0x8] sm:$0xff] %vm3093_vm7, %v3062_v55  ;;  %v3127_v0 = vsel %vm3093_vm7, %v3062_v55, 0.0  ;;  %v3196_v2 = vmul.f32 %v3062_v55, %v3062_v55  ;;  %v3632_v48 = vadd.f32 -1.0, %v4393_v51  ;;  %v2987_v11 = vmul.f32 1.442695, %v2944_v12 }
 0x36e   : > { %v3128_v37 = vadd.f32 %v3127_v0, %v3126_v52  ;;  %v3631_v49 = vadd.f32 -1.0, %v4395_v61  ;;  %v3131_v60 = vsel %vm3093_vm7, %v3064_v33, 0.0  ;;  %v3232_v7 = vsel %vm3093_vm7, %v3198_v6, 0.0 }
 0x36f   : > { %v3228_v8 = vsel %vm3093_vm7, %v3196_v2, 0.0  ;;  %v3066_v43 = vsel %vm2906_vm1, %v5594_v58, %v3632_v48  ;;  %v5657_v23 = vpop.permute.xlu1 %2786  ;;  %4404 = vpow2.f32 %v2987_v11  ;;  %v2985_v10 = vmul.f32 1.442695, %v2943_v46  ;;  %v2782_v32 = vpop.permute.xlu0 %2781  ;;  %v2659_v2 = vld [vmem:[#allocation2 + $0x70] sm:$0xff] }
 0x370   : > { %v4397_v5 = vpop.eup %4396  ;;  %v3130_v44 = vadd.f32 %v3129_v4, %v3128_v37  ;;  %v3229_v16 = vadd.f32 %v3228_v8, %v3227_v47  ;;  %3099 = vst.msk [vmem:[%s6013_s6 + $0x28] sm:$0xff] %vm3093_vm7, %v3066_v43  ;;  %v3065_v58 = vsel %vm2905_vm12, %v5596_v63, %v3631_v49  ;;  %v3200_v35 = vmul.f32 %v3066_v43, %v3066_v43 }
 0x371   : > { %v4399_v57 = vpop.eup %4398  ;;  %v3634_v62 = vadd.f32 -1.0, %v4397_v5  ;;  %3098 = vst.msk [vmem:[%s6013_s6 + $0x20] sm:$0xff] %vm3093_vm7, %v3065_v58  ;;  %v3133_v19 = vsel %vm3093_vm7, %v3065_v58, 0.0  ;;  %v3199_v25 = vmul.f32 %v3065_v58, %v3065_v58  ;;  %4406 = vpow2.f32 %v2985_v10  ;;  %v2661_v58 = vld [vmem:[#allocation2 + $0x80] sm:$0xff] }
 0x372   : > { %v3231_v50 = vadd.f32 %v3230_v22, %v3229_v16  ;;  %v3132_v45 = vadd.f32 %v3131_v60, %v3130_v44  ;;  %v3633_v63 = vadd.f32 -1.0, %v4399_v57  ;;  %v3135_v36 = vsel %vm3093_vm7, %v3066_v43, 0.0 }
 0x373   : > { %v3068_v26 = vsel %vm2908_vm10, %v5600_v27, %v3634_v62  ;;  %v3234_v31 = vsel %vm3093_vm7, %v3199_v25, 0.0  ;;  %v5686_v28 = vmul.f32 %v2777_v21, %v2658_v40  ;;  %v5688_v54 = vpop.permute.xlu1 %2796  ;;  %v3236_v59 = vsel %vm3093_vm7, %v3200_v35, 0.0  ;;  %v2792_v55 = vpop.permute.xlu0 %2791 }
 0x374   : > { %v4401_v3 = vpop.eup %4400  ;;  %v3134_v56 = vadd.f32 %v3133_v19, %v3132_v45  ;;  %v3233_v29 = vadd.f32 %v3232_v7, %v3231_v50  ;;  %3101 = vst.msk [vmem:[%s6013_s6 + $0x38] sm:$0xff] %vm3093_vm7, %v3068_v26  ;;  %v3067_v27 = vsel %vm2907_vm8, %v5602_v38, %v3633_v63  ;;  %v3202_v34 = vmul.f32 %v3068_v26, %v3068_v26  ;;  %v2664_v45 = vld [vmem:[#allocation2 + $0x98] sm:$0xff]  ;;  %v2663_v19 = vld [vmem:[#allocation2 + $0x90] sm:$0xff] }
 0x375   : > { %v4403_v9 = vpop.eup %4402  ;;  %v3636_v41 = vadd.f32 -1.0, %v4401_v3  ;;  %3100 = vst.msk [vmem:[%s6013_s6 + $0x30] sm:$0xff] %vm3093_vm7, %v3067_v27  ;;  %v3137_v39 = vsel %vm3093_vm7, %v3067_v27, 0.0  ;;  %v3201_v42 = vmul.f32 %v3067_v27, %v3067_v27  ;;  %v3139_v13 = vsel %vm3093_vm7, %v3068_v26, 0.0 }
 0x376   : > { %v3235_v24 = vadd.f32 %v3234_v31, %v3233_v29  ;;  %v3136_v30 = vadd.f32 %v3135_v36, %v3134_v56  ;;  %v3635_v1 = vadd.f32 -1.0, %v4403_v9  ;;  %v2946_v52 = vmin.f32 %v5686_v28, 0.0 }
 0x377   : > { %v3070_v38 = vsel %vm2910_vm4, %v5606_v18, %v3636_v41  ;;  %v3238_v51 = vsel %vm3093_vm7, %v3201_v42, 0.0  ;;  %v5706_v6 = vmul.f32 %v2772_v17, %v2657_v53  ;;  %v2660_v18 = vld [vmem:[#allocation2 + $0x78] sm:$0xff]  ;;  %vm2912_vm15 = vcmp.gt.f32.partialorder %v5626_v15, 0.0  ;;  %v2807_v47 = vpop.permute.xlu1 %2806  ;;  %v2802_v62 = vpop.permute.xlu0 %2801  ;;  %v2666_v41 = vld [vmem:[#allocation2 + $0xa8] sm:$0xff] }
 0x378   : > { %v3138_v33 = vadd.f32 %v3137_v39, %v3136_v30  ;;  %v3237_v21 = vadd.f32 %v3236_v59, %v3235_v24  ;;  %3103 = vst.msk [vmem:[%s6013_s6 + $0x48] sm:$0xff] %vm3093_vm7, %v3070_v38  ;;  %v3069_v4 = vsel %vm2909_vm6, %v5608_v20, %v3635_v1  ;;  %v3240_v12 = vsel %vm3093_vm7, %v3202_v34, 0.0  ;;  %v2665_v30 = vld [vmem:[#allocation2 + $0xa0] sm:$0xff] }
 0x379   : > { %3102 = vst.msk [vmem:[%s6013_s6 + $0x40] sm:$0xff] %vm3093_vm7, %v3069_v4  ;;  %v4405_v48 = vpop.eup %4404  ;;  %v3203_v20 = vmul.f32 %v3069_v4, %v3069_v4  ;;  %v2991_v22 = vmul.f32 1.442695, %v2946_v52  ;;  %v2945_v17 = vmin.f32 %v5706_v6, 0.0  ;;  %v3141_v37 = vsel %vm3093_vm7, %v3069_v4, 0.0  ;;  %v2668_v52 = vld [vmem:[#allocation2 + $0xb8] sm:$0xff] }
 0x37a   : > { %v3239_v61 = vadd.f32 %v3238_v51, %v3237_v21  ;;  %v3140_v0 = vadd.f32 %v3139_v13, %v3138_v33  ;;  %v3638_v8 = vadd.f32 -1.0, %v4405_v48  ;;  %v5717_v43 = vmul.f32 %v5657_v23, %v2660_v18  ;;  %v2662_v23 = vld [vmem:[#allocation2 + $0x88] sm:$0xff] }
 0x37b   : > { %v4407_v11 = vpop.eup %4406  ;;  %4408 = vpow2.f32 %v2991_v22  ;;  %v2989_v5 = vmul.f32 1.442695, %v2945_v17  ;;  %v5719_v60 = vmul.f32 %v2782_v32, %v2659_v2  ;;  %v3204_v16 = vmul.f32 %v3070_v38, %v3070_v38  ;;  %v2817_v26 = vpop.permute.xlu1 %2816 }
 0x37c   : > { %v3241_v49 = vadd.f32 %v3240_v12, %v3239_v61  ;;  %v3142_v46 = vadd.f32 %v3141_v37, %v3140_v0  ;;  %v3072_v7 = vsel %vm2912_vm15, %v5626_v15, %v3638_v8  ;;  %v3637_v44 = vadd.f32 -1.0, %v4407_v11  ;;  %v2812_v34 = vpop.permute.xlu0 %2811 }
 0x37d   : > { %v3242_v57 = vsel %vm3093_vm7, %v3203_v20, 0.0  ;;  %3105 = vst.msk [vmem:[%s6013_s6 + $0x58] sm:$0xff] %vm3093_vm7, %v3072_v7  ;;  %vm2911_vm2 = vcmp.gt.f32.partialorder %v5632_v14, 0.0  ;;  %4410 = vpow2.f32 %v2989_v5  ;;  %v3143_v10 = vsel %vm3093_vm7, %v3070_v38, 0.0 }
 0x37e   : > { %v3243_v50 = vadd.f32 %v3242_v57, %v3241_v49  ;;  %v3071_v15 = vsel %vm2911_vm2, %v5632_v14, %v3637_v44  ;;  %v2948_v35 = vmin.f32 %v5717_v43, 0.0  ;;  %v3144_v40 = vadd.f32 %v3143_v10, %v3142_v46  ;;  %v2667_v46 = vld [vmem:[#allocation2 + $0xb0] sm:$0xff] }
 0x37f   : > { %3104 = vst.msk [vmem:[%s6013_s6 + $0x50] sm:$0xff] %vm3093_vm7, %v3071_v15  ;;  %vm2914_vm0 = vcmp.gt.f32.partialorder %v5686_v28, 0.0  ;;  %v2947_v25 = vmin.f32 %v5719_v60, 0.0  ;;  %v3205_v63 = vmul.f32 %v3071_v15, %v3071_v15  ;;  %v5740_v3 = vmul.f32 %v5688_v54, %v2662_v23  ;;  %v2827_v4 = vpop.permute.xlu1 %2826 }
 0x380   : > { %v2995_v32 = vmul.f32 1.442695, %v2948_v35  ;;  %v5742_v14 = vmul.f32 %v2792_v55, %v2661_v58  ;;  %v3244_v36 = vsel %vm3093_vm7, %v3204_v16, 0.0  ;;  %v5745_v29 = vmul.f32 %v2807_v47, %v2664_v45  ;;  %v2822_v11 = vpop.permute.xlu0 %2821 }
 0x381   : > { %v2993_v56 = vmul.f32 1.442695, %v2947_v25  ;;  %v5747_v9 = vmul.f32 %v2802_v62, %v2663_v19  ;;  %v3145_v31 = vsel %vm3093_vm7, %v3071_v15, 0.0  ;;  %v3245_v27 = vadd.f32 %v3244_v36, %v3243_v50  ;;  %v2670_v50 = vld [vmem:[#allocation2 + $0xc8] sm:$0xff] }
 0x382   : > { %vm2913_vm3 = vcmp.gt.f32.partialorder %v5706_v6, 0.0  ;;  %4412 = vpow2.f32 %v2995_v32  ;;  %v3146_v59 = vadd.f32 %v3145_v31, %v3144_v40  ;;  %v2950_v54 = vmin.f32 %v5740_v3, 0.0 }
 0x383   : > { %4414 = vpow2.f32 %v2993_v56  ;;  %v2949_v24 = vmin.f32 %v5742_v14, 0.0  ;;  %v3147_v53 = vsel %vm3093_vm7, %v3072_v7, 0.0  ;;  %v3206_v39 = vmul.f32 %v3072_v7, %v3072_v7  ;;  %v2837_v10 = vpop.permute.xlu1 %2836 }
 0x384   : > { %v3246_v42 = vsel %vm3093_vm7, %v3205_v63, 0.0  ;;  %v2952_v38 = vmin.f32 %v5745_v29, 0.0  ;;  %v2999_v13 = vmul.f32 1.442695, %v2950_v54  ;;  %v2951_v21 = vmin.f32 %v5747_v9, 0.0 }
 0x385   : > { %v4409_v1 = vpop.eup %4408  ;;  %v2997_v33 = vmul.f32 1.442695, %v2949_v24  ;;  %v5757_v51 = vmul.f32 %v2817_v26, %v2666_v41  ;;  %v3247_v18 = vadd.f32 %v3246_v42, %v3245_v27  ;;  %vm2916_vm5 = vcmp.gt.f32.partialorder %v5717_v43, 0.0 }
 0x386   : > { %v3640_v55 = vadd.f32 -1.0, %v4409_v1  ;;  %v3003_v61 = vmul.f32 1.442695, %v2952_v38  ;;  %v5760_v0 = vmul.f32 %v2812_v34, %v2665_v30  ;;  %v3148_v48 = vadd.f32 %v3147_v53, %v3146_v59 }
 0x387   : > { %v4411_v2 = vpop.eup %4410  ;;  %vm2915_vm9 = vcmp.gt.f32.partialorder %v5719_v60, 0.0  ;;  %4416 = vpow2.f32 %v2999_v13  ;;  %v3001_v12 = vmul.f32 1.442695, %v2951_v21  ;;  %v2954_v20 = vmin.f32 %v5757_v51, 0.0 }
 0x388   : > { %v3074_v22 = vsel %vm2914_vm0, %v5686_v28, %v3640_v55  ;;  %v3639_v17 = vadd.f32 -1.0, %v4411_v2  ;;  %4418 = vpow2.f32 %v2997_v33  ;;  %v5767_v47 = vmul.f32 %v2827_v4, %v2668_v52  ;;  %v2832_v55 = vpop.permute.xlu0 %2831 }
 0x389   : > { %v3248_v37 = vsel %vm3093_vm7, %v3206_v39, 0.0  ;;  %3107 = vst.msk [vmem:[%s6013_s6 + $0x68] sm:$0xff] %vm3093_vm7, %v3074_v22  ;;  %v3208_v49 = vmul.f32 %v3074_v22, %v3074_v22  ;;  %4420 = vpow2.f32 %v3003_v61  ;;  %v3007_v8 = vmul.f32 1.442695, %v2954_v20  ;;  %v2669_v61 = vld [vmem:[#allocation2 + $0xc0] sm:$0xff] }
 0x38a   : > { %v3073_v28 = vsel %vm2913_vm3, %v5706_v6, %v3639_v17  ;;  %v3249_v5 = vadd.f32 %v3248_v37, %v3247_v18  ;;  %4422 = vpow2.f32 %v3001_v12  ;;  %v2953_v7 = vmin.f32 %v5760_v0, 0.0 }
 0x38b   : > { %3106 = vst.msk [vmem:[%s6013_s6 + $0x60] sm:$0xff] %vm3093_vm7, %v3073_v28  ;;  %v3149_v44 = vsel %vm3093_vm7, %v3073_v28, 0.0  ;;  %v3207_v16 = vmul.f32 %v3073_v28, %v3073_v28  ;;  %vm2918_vm13 = vcmp.gt.f32.partialorder %v5740_v3, 0.0  ;;  %4424 = vpow2.f32 %v3007_v8  ;;  %v2847_v8 = vpop.permute.xlu1 %2846 }
 0x38c   : > { %v4413_v57 = vpop.eup %4412  ;;  %v3150_v23 = vadd.f32 %v3149_v44, %v3148_v48  ;;  %vm2917_vm14 = vcmp.gt.f32.partialorder %v5742_v14, 0.0  ;;  %v3005_v6 = vmul.f32 1.442695, %v2953_v7  ;;  %v2956_v58 = vmin.f32 %v5767_v47, 0.0 }
 0x38d   : > { %v5786_v62 = vmul.f32 %v2822_v11, %v2667_v46  ;;  %v4415_v15 = vpop.eup %4414  ;;  %v3151_v35 = vsel %vm3093_vm7, %v3074_v22, 0.0  ;;  %v3252_v45 = vsel %vm3093_vm7, %v3208_v49, 0.0  ;;  %v3250_v19 = vsel %vm3093_vm7, %v3207_v16, 0.0 }
 0x38e   : > { %v3642_v40 = vadd.f32 -1.0, %v4413_v57  ;;  %vm2920_vm11 = vcmp.gt.f32.partialorder %v5745_v29, 0.0  ;;  %v3251_v25 = vadd.f32 %v3250_v19, %v3249_v5  ;;  %v3641_v26 = vadd.f32 -1.0, %v4415_v15 }
 0x38f   : > { %v3152_v63 = vadd.f32 %v3151_v35, %v3150_v23  ;;  %4426 = vpow2.f32 %v3005_v6  ;;  %v3011_v36 = vmul.f32 1.442695, %v2956_v58  ;;  %v2955_v56 = vmin.f32 %v5786_v62, 0.0 }
 0x390   : > { %v3076_v32 = vsel %vm2916_vm5, %v5717_v43, %v3642_v40  ;;  %v5796_v31 = vmul.f32 %v2837_v10, %v2670_v50  ;;  %v3075_v41 = vsel %vm2915_vm9, %v5719_v60, %v3641_v26  ;;  %v3253_v59 = vadd.f32 %v3252_v45, %v3251_v25 }
 0x391   : > { %3109 = vst.msk [vmem:[%s6013_s6 + $0x78] sm:$0xff] %vm3093_vm7, %v3076_v32  ;;  %v3210_v27 = vmul.f32 %v3076_v32, %v3076_v32  ;;  %vm2919_vm1 = vcmp.gt.f32.partialorder %v5747_v9, 0.0  ;;  %v4417_v54 = vpop.eup %4416  ;;  %3108 = vst.msk [vmem:[%s6013_s6 + $0x70] sm:$0xff] %vm3093_vm7, %v3075_v41  ;;  %v3153_v43 = vsel %vm3093_vm7, %v3075_v41, 0.0  ;;  %v3209_v24 = vmul.f32 %v3075_v41, %v3075_v41  ;;  %v2672_v41 = vld [vmem:[#allocation2 + $0xd8] sm:$0xff] }
 0x392   : > { %4428 = vpow2.f32 %v3011_v36  ;;  %v3009_v34 = vmul.f32 1.442695, %v2955_v56  ;;  %v4419_v30 = vpop.eup %4418  ;;  %v3155_v53 = vsel %vm3093_vm7, %v3076_v32, 0.0  ;;  %v3154_v39 = vadd.f32 %v3153_v43, %v3152_v63  ;;  %v2857_v63 = vpop.permute.xlu1 %2856 }
 0x393   : > { %v3644_v42 = vadd.f32 -1.0, %v4417_v54  ;;  %vm2922_vm12 = vcmp.gt.f32.partialorder %v5757_v51, 0.0  ;;  %v4421_v60 = vpop.eup %4420  ;;  %v3254_v38 = vsel %vm3093_vm7, %v3209_v24, 0.0  ;;  %v3643_v1 = vadd.f32 -1.0, %v4419_v30 }
 0x394   : > { %4430 = vpow2.f32 %v3009_v34  ;;  %v2958_v13 = vmin.f32 %v5796_v31, 0.0  ;;  %v4423_v33 = vpop.eup %4422  ;;  %v3255_v21 = vadd.f32 %v3254_v38, %v3253_v59  ;;  %v3156_v52 = vadd.f32 %v3155_v53, %v3154_v39 }
 0x395   : > { %v3078_v4 = vsel %vm2918_vm13, %v5740_v3, %v3644_v42  ;;  %v3646_v18 = vadd.f32 -1.0, %v4421_v60  ;;  %v4425_v2 = vpop.eup %4424  ;;  %v3256_v48 = vsel %vm3093_vm7, %v3210_v27, 0.0  ;;  %v3077_v20 = vsel %vm2917_vm14, %v5742_v14, %v3643_v1  ;;  %v2671_v42 = vld [vmem:[#allocation2 + $0xd0] sm:$0xff] }
 0x396   : > { %3111 = vst.msk [vmem:[%s6013_s6 + $0x88] sm:$0xff] %vm3093_vm7, %v3078_v4  ;;  %v3212_v12 = vmul.f32 %v3078_v4, %v3078_v4  ;;  %v3645_v22 = vadd.f32 -1.0, %v4423_v33  ;;  %3110 = vst.msk [vmem:[%s6013_s6 + $0x80] sm:$0xff] %vm3093_vm7, %v3077_v20  ;;  %v3157_v3 = vsel %vm3093_vm7, %v3077_v20, 0.0  ;;  %v3211_v17 = vmul.f32 %v3077_v20, %v3077_v20 }
 0x397   : > { %v3257_v37 = vadd.f32 %v3256_v48, %v3255_v21  ;;  %v3080_v49 = vsel %vm2920_vm11, %v5745_v29, %v3646_v18  ;;  %v3159_v11 = vsel %vm3093_vm7, %v3078_v4, 0.0  ;;  %v3158_v14 = vadd.f32 %v3157_v3, %v3156_v52  ;;  %v2676_v4 = vld [vmem:[#allocation2 + $0xf8] sm:$0xff] }
 0x398   : > { %v3260_v46 = vsel %vm3093_vm7, %v3212_v12, 0.0  ;;  %3113 = vst.msk [vmem:[%s6013_s6 + $0x98] sm:$0xff] %vm3093_vm7, %v3080_v49  ;;  %v5840_v28 = vmul.f32 %v2832_v55, %v2669_v61  ;;  %v3258_v7 = vsel %vm3093_vm7, %v3211_v17, 0.0  ;;  %v3079_v29 = vsel %vm2919_vm1, %v5747_v9, %v3645_v22  ;;  %v2842_v9 = vpop.permute.xlu0 %2841 }
 0x399   : > { %v4427_v5 = vpop.eup %4426  ;;  %v3648_v44 = vadd.f32 -1.0, %v4425_v2  ;;  %v3015_v16 = vmul.f32 1.442695, %v2958_v13  ;;  %v3259_v57 = vadd.f32 %v3258_v7, %v3257_v37  ;;  %v3214_v23 = vmul.f32 %v3080_v49, %v3080_v49  ;;  %3112 = vst.msk [vmem:[%s6013_s6 + $0x90] sm:$0xff] %vm3093_vm7, %v3079_v29  ;;  %v2673_v13 = vld [vmem:[#allocation2 + $0xe0] sm:$0xff] }
 0x39a   : > { %v3160_v6 = vadd.f32 %v3159_v11, %v3158_v14  ;;  %v3161_v58 = vsel %vm3093_vm7, %v3079_v29, 0.0  ;;  %v3213_v10 = vmul.f32 %v3079_v29, %v3079_v29  ;;  %v3647_v15 = vadd.f32 -1.0, %v4427_v5 }
 0x39b   : > { %v3082_v50 = vsel %vm2922_vm12, %v5757_v51, %v3648_v44  ;;  %4432 = vpow2.f32 %v3015_v16  ;;  %v3261_v19 = vadd.f32 %v3260_v46, %v3259_v57  ;;  %vm2921_vm10 = vcmp.gt.f32.partialorder %v5760_v0, 0.0  ;;  %v2675_v46 = vld [vmem:[#allocation2 + $0xf0] sm:$0xff] }
 0x39c   : > { %v4429_v35 = vpop.eup %4428  ;;  %v3162_v45 = vadd.f32 %v3161_v58, %v3160_v6  ;;  %3115 = vst.msk [vmem:[%s6013_s6 + $0xa8] sm:$0xff] %vm3093_vm7, %v3082_v50  ;;  %v3163_v40 = vsel %vm3093_vm7, %v3080_v49, 0.0  ;;  %v3262_v25 = vsel %vm3093_vm7, %v3213_v10, 0.0  ;;  %v3081_v26 = vsel %vm2921_vm10, %v5760_v0, %v3647_v15  ;;  %v2852_v60 = vpop.permute.xlu0 %2851 }
 0x39d   : > { %v3650_v51 = vadd.f32 -1.0, %v4429_v35  ;;  %v3264_v36 = vsel %vm3093_vm7, %v3214_v23, 0.0  ;;  %v3263_v56 = vadd.f32 %v3262_v25, %v3261_v19  ;;  %3114 = vst.msk [vmem:[%s6013_s6 + $0xa0] sm:$0xff] %vm3093_vm7, %v3081_v26  ;;  %vm2924_vm8 = vcmp.gt.f32.partialorder %v5767_v47, 0.0 }
 0x39e   : > { %v4431_v32 = vpop.eup %4430  ;;  %v3164_v27 = vadd.f32 %v3163_v40, %v3162_v45  ;;  %v3215_v59 = vmul.f32 %v3081_v26, %v3081_v26  ;;  %v2957_v0 = vmin.f32 %v5840_v28, 0.0  ;;  %vm2923_vm4 = vcmp.gt.f32.partialorder %v5786_v62, 0.0 }
 0x39f   : > { %v3084_v54 = vsel %vm2924_vm8, %v5767_v47, %v3650_v51  ;;  %v3649_v43 = vadd.f32 -1.0, %v4431_v32  ;;  %v3265_v24 = vadd.f32 %v3264_v36, %v3263_v56  ;;  %v3165_v34 = vsel %vm3093_vm7, %v3081_v26, 0.0  ;;  %v2674_v47 = vld [vmem:[#allocation2 + $0xe8] sm:$0xff] }
 0x3a0   : > { %3117 = vst.msk [vmem:[%s6013_s6 + $0xb8] sm:$0xff] %vm3093_vm7, %v3084_v54  ;;  %v3013_v53 = vmul.f32 1.442695, %v2957_v0  ;;  %v5877_v39 = vmul.f32 %v2847_v8, %v2672_v41  ;;  %v3216_v38 = vmul.f32 %v3082_v50, %v3082_v50  ;;  %v3166_v1 = vadd.f32 %v3165_v34, %v3164_v27  ;;  %v2862_v11 = vpop.permute.xlu0 %2861 }
 0x3a1   : > { %v3083_v30 = vsel %vm2923_vm4, %v5786_v62, %v3649_v43  ;;  %v3266_v33 = vsel %vm3093_vm7, %v3215_v59, 0.0  ;;  %v2867_v62 = vpop.permute.xlu1 %2866  ;;  %v5885_v18 = vmul.f32 %v2842_v9, %v2671_v42  ;;  %v5887_v55 = vmul.f32 %v2857_v63, %v2674_v47 }
 0x3a2   : > { %3116 = vst.msk [vmem:[%s6013_s6 + $0xb0] sm:$0xff] %vm3093_vm7, %v3083_v30  ;;  %4434 = vpow2.f32 %v3013_v53  ;;  %v2960_v21 = vmin.f32 %v5877_v39, 0.0  ;;  %v3267_v52 = vadd.f32 %v3266_v33, %v3265_v24  ;;  %v3167_v2 = vsel %vm3093_vm7, %v3082_v50, 0.0 }
 0x3a3   : > { %vm2926_vm6 = vcmp.gt.f32.partialorder %v5796_v31, 0.0  ;;  %v5891_v12 = vmul.f32 %v2852_v60, %v2673_v13  ;;  %v3268_v20 = vsel %vm3093_vm7, %v3216_v38, 0.0  ;;  %v3168_v22 = vadd.f32 %v3167_v2, %v3166_v1 }
 0x3a4   : > { %v3019_v48 = vmul.f32 1.442695, %v2960_v21  ;;  %v5894_v17 = vmul.f32 %v2867_v62, %v2676_v4  ;;  %v3217_v37 = vmul.f32 %v3083_v30, %v3083_v30  ;;  %v2959_v49 = vmin.f32 %v5885_v18, 0.0 }
 0x3a5   : > { %v4433_v61 = vpop.eup %4432  ;;  %v2962_v8 = vmin.f32 %v5887_v55, 0.0  ;;  %v3269_v14 = vadd.f32 %v3268_v20, %v3267_v52  ;;  %v2961_v7 = vmin.f32 %v5891_v12, 0.0  ;;  %v3169_v29 = vsel %vm3093_vm7, %v3083_v30, 0.0 }
 0x3a6   : > { %v3652_v3 = vadd.f32 -1.0, %v4433_v61  ;;  %4436 = vpow2.f32 %v3019_v48  ;;  %v3017_v44 = vmul.f32 1.442695, %v2959_v49  ;;  %v3170_v57 = vadd.f32 %v3169_v29, %v3168_v22 }
 0x3a7   : > { %v3023_v16 = vmul.f32 1.442695, %v2962_v8  ;;  %v3021_v23 = vmul.f32 1.442695, %v2961_v7  ;;  %v2964_v6 = vmin.f32 %v5894_v17, 0.0  ;;  %v5906_v58 = vmul.f32 %v2862_v11, %v2675_v46 }
 0x3a8   : > { %v3086_v5 = vsel %vm2926_vm6, %v5796_v31, %v3652_v3  ;;  %v3218_v10 = vmul.f32 %v3084_v54, %v3084_v54  ;;  %v3270_v31 = vsel %vm3093_vm7, %v3217_v37, 0.0  ;;  %4438 = vpow2.f32 %v3017_v44 }
 0x3a9   : > { %3119 = vst.msk [vmem:[%s6013_s6 + $0xc8] sm:$0xff] %vm3093_vm7, %v3086_v5  ;;  %v3271_v50 = vadd.f32 %v3270_v31, %v3269_v14  ;;  %4440 = vpow2.f32 %v3023_v16  ;;  %v3027_v15 = vmul.f32 1.442695, %v2964_v6  ;;  %v2963_v9 = vmin.f32 %v5906_v58, 0.0 }
 0x3aa   : > { %v3171_v45 = vsel %vm3093_vm7, %v3084_v54, 0.0  ;;  %4442 = vpow2.f32 %v3021_v23  ;;  %v3272_v26 = vsel %vm3093_vm7, %v3218_v10, 0.0  ;;  %vm2925_vm15 = vcmp.gt.f32.partialorder %v5840_v28, 0.0 }
 0x3ab   : > { %v3172_v40 = vadd.f32 %v3171_v45, %v3170_v57  ;;  %4444 = vpow2.f32 %v3027_v15  ;;  %v3025_v25 = vmul.f32 1.442695, %v2963_v9  ;;  %v3273_v63 = vadd.f32 %v3272_v26, %v3271_v50 }
 0x3ac   : > { %v4435_v35 = vpop.eup %4434  ;;  %v3220_v59 = vmul.f32 %v3086_v5, %v3086_v5  ;;  %vm2928_vm2 = vcmp.gt.f32.partialorder %v5877_v39, 0.0  ;;  %v3175_v24 = vsel %vm3093_vm7, %v3086_v5, 0.0  ;;  %vm2927_vm0 = vcmp.gt.f32.partialorder %v5885_v18, 0.0 }
 0x3ad   : > { %v3651_v19 = vadd.f32 -1.0, %v4435_v35  ;;  %4446 = vpow2.f32 %v3025_v25  ;;  %vm2930_vm3 = vcmp.gt.f32.partialorder %v5887_v55, 0.0  ;;  %vm2929_vm5 = vcmp.gt.f32.partialorder %v5891_v12, 0.0 }
 0x3ae   : > { %v3276_v47 = vsel %vm3093_vm7, %v3220_v59, 0.0  ;;  %vm2932_vm9 = vcmp.gt.f32.partialorder %v5894_v17, 0.0  ;;  %vm2931_vm13 = vcmp.gt.f32.partialorder %v5906_v58, 0.0  ;;  %vm3296_vm14 = vcmask 1040384  }
 0x3af   : > { %v3085_v51 = vsel %vm2925_vm15, %v5840_v28, %v3651_v19  ;;  %vm3298_vm11 = vcmask 58368  }
 0x3b0   : > { %v4437_v32 = vpop.eup %4436  ;;  %3118 = vst.msk [vmem:[%s6013_s6 + $0xc0] sm:$0xff] %vm3093_vm7, %v3085_v51  ;;  %v3173_v36 = vsel %vm3093_vm7, %v3085_v51, 0.0  ;;  %v3219_v56 = vmul.f32 %v3085_v51, %v3085_v51 }
 0x3b1   : > { %v3174_v27 = vadd.f32 %v3173_v36, %v3172_v40  ;;  %v3654_v41 = vadd.f32 -1.0, %v4437_v32 }
 0x3b2   : > { %v3274_v54 = vsel %vm3093_vm7, %v3219_v56, 0.0  ;;  %v4439_v0 = vpop.eup %4438 }
 0x3b3   : > { %v3275_v43 = vadd.f32 %v3274_v54, %v3273_v63  ;;  %v3088_v28 = vsel %vm2928_vm2, %v5877_v39, %v3654_v41  ;;  %v4441_v34 = vpop.eup %4440  ;;  %v3653_v30 = vadd.f32 -1.0, %v4439_v0  ;;  %v3176_v53 = vadd.f32 %v3175_v24, %v3174_v27 }
 0x3b4   : > { %3121 = vst.msk [vmem:[%s6013_s6 + $0xd8] sm:$0xff] %vm3093_vm7, %v3088_v28  ;;  %v4443_v42 = vpop.eup %4442  ;;  %v3656_v60 = vadd.f32 -1.0, %v4441_v34  ;;  %v3222_v38 = vmul.f32 %v3088_v28, %v3088_v28  ;;  %v3179_v48 = vsel %vm3093_vm7, %v3088_v28, 0.0 }
 0x3b5   : > { %v4445_v39 = vpop.eup %4444  ;;  %v3087_v1 = vsel %vm2927_vm0, %v5885_v18, %v3653_v30  ;;  %v3277_v13 = vadd.f32 %v3276_v47, %v3275_v43  ;;  %v3655_v33 = vadd.f32 -1.0, %v4443_v42 }
 0x3b6   : > { %3120 = vst.msk [vmem:[%s6013_s6 + $0xd0] sm:$0xff] %vm3093_vm7, %v3087_v1  ;;  %v3177_v21 = vsel %vm3093_vm7, %v3087_v1, 0.0  ;;  %v3221_v62 = vmul.f32 %v3087_v1, %v3087_v1  ;;  %v3090_v4 = vsel %vm2930_vm3, %v5887_v55, %v3656_v60  ;;  %v3658_v52 = vadd.f32 -1.0, %v4445_v39 }
 0x3b7   : > { %v4447_v61 = vpop.eup %4446  ;;  %v3178_v2 = vadd.f32 %v3177_v21, %v3176_v53  ;;  %3123 = vst.msk [vmem:[%s6013_s6 + $0xe8] sm:$0xff] %vm3093_vm7, %v3090_v4  ;;  %v3089_v18 = vsel %vm2929_vm5, %v5891_v12, %v3655_v33  ;;  %v3280_v12 = vsel %vm3093_vm7, %v3222_v38, 0.0  ;;  %v3224_v49 = vmul.f32 %v3090_v4, %v3090_v4 }
 0x3b8   : > { %v3278_v20 = vsel %vm3093_vm7, %v3221_v62, 0.0  ;;  %3122 = vst.msk [vmem:[%s6013_s6 + $0xe0] sm:$0xff] %vm3093_vm7, %v3089_v18  ;;  %v3223_v55 = vmul.f32 %v3089_v18, %v3089_v18  ;;  %v3092_v22 = vsel %vm2932_vm9, %v5894_v17, %v3658_v52  ;;  %v3181_v8 = vsel %vm3093_vm7, %v3089_v18, 0.0 }
 0x3b9   : > { %v3279_v3 = vadd.f32 %v3278_v20, %v3277_v13  ;;  %v3180_v37 = vadd.f32 %v3179_v48, %v3178_v2  ;;  %3125 = vst.msk [vmem:[%s6013_s6 + $0xf8] sm:$0xff] %vm3093_vm7, %v3092_v22  ;;  %v3657_v11 = vadd.f32 -1.0, %v4447_v61  ;;  %v3183_v5 = vsel %vm3093_vm7, %v3090_v4, 0.0 }
 0x3ba   : > { %v3282_v17 = vsel %vm3093_vm7, %v3223_v55, 0.0  ;;  %v3284_v57 = vsel %vm3093_vm7, %v3224_v49, 0.0  ;;  %v3226_v23 = vmul.f32 %v3092_v22, %v3092_v22  ;;  %v3187_v50 = vsel %vm3093_vm7, %v3092_v22, 0.0 }
 0x3bb   : > { %v3182_v46 = vadd.f32 %v3181_v8, %v3180_v37  ;;  %v3281_v14 = vadd.f32 %v3280_v12, %v3279_v3  ;;  %v3091_v7 = vsel %vm2931_vm13, %v5906_v58, %v3657_v11 }
 0x3bc   : > { %3124 = vst.msk [vmem:[%s6013_s6 + $0xf0] sm:$0xff] %vm3093_vm7, %v3091_v7  ;;  %v3225_v16 = vmul.f32 %v3091_v7, %v3091_v7  ;;  %v3185_v6 = vsel %vm3093_vm7, %v3091_v7, 0.0  ;;  %v3288_v35 = vsel %vm3093_vm7, %v3226_v23, 0.0 }
 0x3bd   : > { %v3283_v29 = vadd.f32 %v3282_v17, %v3281_v14  ;;  %v3184_v44 = vadd.f32 %v3183_v5, %v3182_v46 }
 0x3be   : > { %v3286_v15 = vsel %vm3093_vm7, %v3225_v16, 0.0 }
 0x3bf   : > { %v3186_v10 = vadd.f32 %v3185_v6, %v3184_v44  ;;  %v3285_v31 = vadd.f32 %v3284_v57, %v3283_v29 }
 0x3c1   : > { %v3188_v58 = vadd.f32 %v3187_v50, %v3186_v10  ;;  %v3287_v9 = vadd.f32 %v3286_v15, %v3285_v31 }
 0x3c3   : > { %v3189_v45 = vrot.slane %v3188_v58, 4  ;;  %v3289_v19 = vadd.f32 %v3288_v35, %v3287_v9 }
 0x3c5   : > { %v3190_v40 = vadd.f32 %v3189_v45, %v3188_v58  ;;  %v3290_v25 = vrot.slane %v3289_v19, 4 }
 0x3c7   : > { %v3191_v26 = vrot.slane %v3190_v40, 2  ;;  %v3291_v51 = vadd.f32 %v3290_v25, %v3289_v19 }
 0x3c9   : > { %v3192_v63 = vadd.f32 %v3191_v26, %v3190_v40  ;;  %v3292_v32 = vrot.slane %v3291_v51, 2 }
 0x3cb   : > { %v3193_v36 = vrot.slane %v3192_v63, 1  ;;  %v3293_v56 = vadd.f32 %v3292_v32, %v3291_v51 }
 0x3cd   : > { %v3294_v27 = vrot.slane %v3293_v56, 1  ;;  %v3194_v41 = vadd.f32 %v3193_v36, %v3192_v63 }
 0x3cf   : > { %v3295_v59 = vadd.f32 %v3294_v27, %v3293_v56 }
 0x3d1   : > { %v3297_v54 = vsel %vm3296_vm14, %v3194_v41, %v3295_v59 }
 0x3d2   : > { %3299 = vst.msk [vmem:[#allocation6] sm:$0x3] %vm3298_vm11, %v3297_v54 }
 0x3d3 PF: > { %p5972_p10 = scmp.eq.s32.totalorder %s3417_s0, 2  ;;  %s4507_s8 = smov [#allocation6]  }
 0x3d4   : > { %s3318_s9 = sshll.u32 %s4507_s8, 4  ;;  %s3319_s9 = int_to_ptr.vmem [resolvable:$true] %s3318_s9 }
 0x3d5   : > { %s4448_s10 = scalar_lea.vmem %s3319_s9, 32  ;;  %p4455_p0 = scmp.lt.s32.totalorder %s3319_s9, %s3319_s9 }
 0x3d6   : > { %p4449_p11 = scmp.ne.s32.totalorder %s3319_s9, %s4448_s10  ;;  %p4456_p1 = scmp.lt.s32.totalorder %s4448_s10, %s4448_s10 }
 0x3d8   : > { %p4450_p12 = pnand %p4449_p11, %p5972_p10  ;;  %p4457_p2 = por %p4456_p1, %p4455_p0 }
 0x3da   : > { %p4451_p13 = pneg %p4450_p12 }
 0x3dc   : > { %p4458_p3 = pnand %p4457_p2, %p4451_p13 }
 0x3de   : > { %4461 = shalt.err (!%p4458_p3)
}
 0x3df   : > { %s4462_s0 = scalar_lea.hbm %s6014_s7, 32 }
 0x3e0   : > { %p4463_p4 = scmp.ne.s32.totalorder %s6014_s7, %s4462_s0  ;;  %p4468_p7 = scmp.lt.u32.totalorder %s4462_s0, %s6014_s7 }
 0x3e2   : > { %p4464_p5 = pnand %p4463_p4, %p5972_p10 }
 0x3e4   : > { %p4465_p6 = pneg %p4464_p5 }
 0x3e6   : > { %p4470_p8 = pnand %p4468_p7, %p4465_p6 }
 0x3e8   : > { %4473 = shalt.err (!%p4470_p8)
}
 0x3e9   : > { %3865 = dma.vmem_to_hbm [thread:$0]  (%p5972_p10), %s3319_s9, 32, %s6014_s7, [#allocation7]  }
 0x3ea   : > { %4487 = dma.done.wait (%p5972_p10), [#allocation7], 32  }
 0x3eb   : > { %4489 = vsyncadd (%p5972_p10), [#allocation7], 4294967264 }
 0x3ec PF: > { %s21_s30 = sadd.s32 1, %s4500_s30   ;;  %s6150_s28 = smov %s4496_s29 }
 0x3ed   : > { %p18_p9 = scmp.ge.s32.totalorder %s21_s30, 5   ;;  %s6151_s29 = smov %s6153_s1 }
 0x3ef   :  { %20 = sbr.rel (!%p18_p9) target bundleno = 5 (0x5), region = 94 }
 0x3f6   :  { %3339 = vsyncpa [#allocation7], 1 }
 0x3f7   :  { %3341 = vsyncpa [#allocation7 + $0x1], 1 }

</bundles_post_ra>
